<compile_context>
chip_gen: v7x
topology: tpu7x:2x2x1
jax: 0.10.0
libtpu: 0.0.40
codegen_flags: <defaults>
</compile_context>

<pallas_src>
import functools

import jax
import jax.numpy as jnp
import numpy as np
from jax import lax
from jax.experimental import pallas as pl
from jax.experimental.pallas import tpu as pltpu

LANE = 128
SUBLANE = 8


def _round_up(x, m):
    return ((x + m - 1) // m) * m


# ----------------------------------------------------------------------------
# Pallas kernels
# ----------------------------------------------------------------------------
def _cell_update(gates, c_prev, hp):
    """PyTorch LSTM cell nonlinearity. Gate order i, f, g, o; each slice is
    hp lanes wide (hp % 128 == 0) -> free vreg views, no cross-lane relayout."""
    i = jax.nn.sigmoid(gates[:, 0 * hp:1 * hp])
    f = jax.nn.sigmoid(gates[:, 1 * hp:2 * hp])
    g = jnp.tanh(gates[:, 2 * hp:3 * hp])
    o = jax.nn.sigmoid(gates[:, 3 * hp:4 * hp])
    c = f * c_prev + i * g
    h = o * jnp.tanh(c)
    return h, c


def encoder_lstm_kernel(x_ref, wih_ref, whh_ref, b_ref, h_out_ref, gx_scr,
                        *, seq_len, bp, hp):
    """Single invocation.  x_ref: (S*Bp, Ep) time-major flattened embeddings.
    Writes only the final hidden state (Bp, Hp)."""
    # Hoisted input matmul: one big (S*Bp, Ep) @ (Ep, 4Hp) MXU matmul (+ bias).
    gx_scr[...] = (
        jnp.dot(x_ref[...], wih_ref[...], preferred_element_type=jnp.float32)
        + b_ref[...]
    )
    whh = whh_ref[...]
    zeros = jnp.zeros((bp, hp), jnp.float32)

    def step(t, carry):
        h, c = carry
        row = pl.multiple_of(t * bp, bp)
        gates = gx_scr[pl.ds(row, bp), :] + jnp.dot(
            h, whh, preferred_element_type=jnp.float32)
        return _cell_update(gates, c, hp)

    h, _ = lax.fori_loop(0, seq_len, step, (zeros, zeros), unroll=True)
    h_out_ref[...] = h.astype(h_out_ref.dtype)


def decoder_lstm_kernel(x_ref, h0_ref, wih_ref, whh_ref, b_ref, wlin_ref,
                        blin_ref, y_ref, gx_scr, hall_scr,
                        *, seq_len, bp, hp):
    """Single invocation. Decoder LSTM initialized with (h0, h0); the Linear
    projection is done once over all timesteps after the recurrence."""
    gx_scr[...] = (
        jnp.dot(x_ref[...], wih_ref[...], preferred_element_type=jnp.float32)
        + b_ref[...]
    )
    whh = whh_ref[...]
    h0 = h0_ref[...]

    def step(t, carry):
        h, c = carry
        row = pl.multiple_of(t * bp, bp)
        gates = gx_scr[pl.ds(row, bp), :] + jnp.dot(
            h, whh, preferred_element_type=jnp.float32)
        h_new, c_new = _cell_update(gates, c, hp)
        hall_scr[pl.ds(row, bp), :] = h_new
        return (h_new, c_new)

    lax.fori_loop(0, seq_len, step, (h0, h0), unroll=True)

    # Hoisted output projection: (S*Bp, Hp) @ (Hp, Vp) + b, lane-dense store.
    y_ref[...] = (
        jnp.dot(hall_scr[...], wlin_ref[...], preferred_element_type=jnp.float32)
        + blin_ref[...]
    ).astype(y_ref.dtype)


# ----------------------------------------------------------------------------
# Wrappers calling pallas_call
# ----------------------------------------------------------------------------
def run_encoder(x_flat, wih_t, whh_t, bias, *, seq_len, bp, hp):
    m, ep = x_flat.shape
    kern = functools.partial(encoder_lstm_kernel, seq_len=seq_len, bp=bp, hp=hp)
    return pl.pallas_call(
        kern,
        out_shape=jax.ShapeDtypeStruct((bp, hp), jnp.float32),
        grid_spec=pltpu.PrefetchScalarGridSpec(
            num_scalar_prefetch=0,
            grid=(1,),
            in_specs=[
                pl.BlockSpec((m, ep), lambda i: (0, 0)),
                pl.BlockSpec((ep, 4 * hp), lambda i: (0, 0)),
                pl.BlockSpec((hp, 4 * hp), lambda i: (0, 0)),
                pl.BlockSpec((1, 4 * hp), lambda i: (0, 0)),
            ],
            out_specs=pl.BlockSpec((bp, hp), lambda i: (0, 0)),
            scratch_shapes=[pltpu.VMEM((m, 4 * hp), jnp.float32)],
        ),
        compiler_params=pltpu.CompilerParams(
            dimension_semantics=("arbitrary",)),
    )(x_flat, wih_t, whh_t, bias)


def run_decoder(x_flat, h0, wih_t, whh_t, bias, wlin_t, blin,
                *, seq_len, bp, hp):
    m, ep = x_flat.shape
    vp = wlin_t.shape[1]
    kern = functools.partial(decoder_lstm_kernel, seq_len=seq_len, bp=bp, hp=hp)
    return pl.pallas_call(
        kern,
        out_shape=jax.ShapeDtypeStruct((m, vp), jnp.float32),
        grid_spec=pltpu.PrefetchScalarGridSpec(
            num_scalar_prefetch=0,
            grid=(1,),
            in_specs=[
                pl.BlockSpec((m, ep), lambda i: (0, 0)),
                pl.BlockSpec((bp, hp), lambda i: (0, 0)),
                pl.BlockSpec((ep, 4 * hp), lambda i: (0, 0)),
                pl.BlockSpec((hp, 4 * hp), lambda i: (0, 0)),
                pl.BlockSpec((1, 4 * hp), lambda i: (0, 0)),
                pl.BlockSpec((hp, vp), lambda i: (0, 0)),
                pl.BlockSpec((1, vp), lambda i: (0, 0)),
            ],
            out_specs=pl.BlockSpec((m, vp), lambda i: (0, 0)),
            scratch_shapes=[
                pltpu.VMEM((m, 4 * hp), jnp.float32),
                pltpu.VMEM((m, hp), jnp.float32),
            ],
        ),
        compiler_params=pltpu.CompilerParams(
            dimension_semantics=("arbitrary",)),
    )(x_flat, h0, wih_t, whh_t, bias, wlin_t, blin)


# ----------------------------------------------------------------------------
# Parameter padding to TPU tile sizes (zero padding preserves semantics:
# padded gate columns get zero weights/bias -> padded hidden units stay 0).
# ----------------------------------------------------------------------------
def _pad2d(a, rows, cols):
    return jnp.pad(a, ((0, rows - a.shape[0]), (0, cols - a.shape[1])))


def _pad_gate_cols(w, rows_p, h, hp):
    """w: (rows, 4h) with gate order i,f,g,o. Pad each gate block independently
    -> (rows_p, 4hp) so gate slices stay 128-lane aligned."""
    blocks = [_pad2d(w[:, k * h:(k + 1) * h], rows_p, hp) for k in range(4)]
    return jnp.concatenate(blocks, axis=1)


def pad_params(p):
    E = p["enc_wih_t"].shape[0]
    H = p["enc_whh_t"].shape[0]
    V = p["lin_w_t"].shape[1]
    Ep = _round_up(E, LANE)
    Hp = _round_up(H, LANE)
    Vp = _round_up(V, LANE)
    return {
        "enc_embed": _pad2d(p["enc_embed"], p["enc_embed"].shape[0], Ep),
        "dec_embed": _pad2d(p["dec_embed"], p["dec_embed"].shape[0], Ep),
        "enc_wih_t": _pad_gate_cols(p["enc_wih_t"], Ep, H, Hp),
        "enc_whh_t": _pad_gate_cols(p["enc_whh_t"], Hp, H, Hp),
        "enc_bias": _pad_gate_cols(p["enc_bias"], 1, H, Hp),
        "dec_wih_t": _pad_gate_cols(p["dec_wih_t"], Ep, H, Hp),
        "dec_whh_t": _pad_gate_cols(p["dec_whh_t"], Hp, H, Hp),
        "dec_bias": _pad_gate_cols(p["dec_bias"], 1, H, Hp),
        "lin_w_t": _pad2d(p["lin_w_t"], Hp, Vp),
        "lin_b": _pad2d(p["lin_b"], 1, Vp),
    }


# ----------------------------------------------------------------------------
# Seq2Seq forward (matches the PyTorch module semantics)
# ----------------------------------------------------------------------------
@functools.partial(jax.jit, static_argnames=("vocab_size",))
def seq2seq_forward(pp, x, t, *, vocab_size):
    d_x = t[:, :-1]
    d_t = t[:, 1:]
    B, s_src = x.shape
    s_dec = d_x.shape[1]
    bp = _round_up(B, SUBLANE)
    ep = pp["enc_embed"].shape[1]
    hp = pp["enc_whh_t"].shape[0]
    vp = pp["lin_w_t"].shape[1]

    # ----- encoder -----
    # Gather embeddings directly time-major (index with transposed ids), pad B.
    emb_e = jnp.take(pp["enc_embed"], x.T, axis=0)           # (S, B, Ep)
    emb_e = jnp.pad(emb_e, ((0, 0), (0, bp - B), (0, 0)))    # (S, Bp, Ep)
    h = run_encoder(emb_e.reshape(s_src * bp, ep),
                    pp["enc_wih_t"], pp["enc_whh_t"], pp["enc_bias"],
                    seq_len=s_src, bp=bp, hp=hp)             # (Bp, Hp)

    # ----- decoder (+ fused output projection) -----
    emb_d = jnp.take(pp["dec_embed"], d_x.T, axis=0)         # (S_dec, B, Ep)
    emb_d = jnp.pad(emb_d, ((0, 0), (0, bp - B), (0, 0)))    # (S_dec, Bp, Ep)
    y_flat = run_decoder(emb_d.reshape(s_dec * bp, ep), h,
                         pp["dec_wih_t"], pp["dec_whh_t"], pp["dec_bias"],
                         pp["lin_w_t"], pp["lin_b"],
                         seq_len=s_dec, bp=bp, hp=hp)        # (S_dec*Bp, Vp)

    y = y_flat.reshape(s_dec, bp, vp)[:, :B, :vocab_size]    # strip padding
    y = jnp.transpose(y, (1, 0, 2))                          # (B, S_dec, V)
    return y, d_t


# ----------------------------------------------------------------------------
# Pure-JAX reference (lax.scan LSTM, unpadded params) for verification
# ----------------------------------------------------------------------------
def _lstm_ref(x_seq, h0, c0, wih_t, whh_t, bias, H):
    def step(carry, x_t):
        h_prev, c_prev = carry
        g = x_t @ wih_t + h_prev @ whh_t + bias
        i = jax.nn.sigmoid(g[:, :H])
        f = jax.nn.sigmoid(g[:, H:2 * H])
        gg = jnp.tanh(g[:, 2 * H:3 * H])
        o = jax.nn.sigmoid(g[:, 3 * H:])
        c = f * c_prev + i * gg
        h = o * jnp.tanh(c)
        return (h, c), h
    (_, _), hs = jax.lax.scan(step, (h0, c0), x_seq)
    return hs  # (S, B, H)


def seq2seq_ref(params, x, t):
    d_x, d_t = t[:, :-1], t[:, 1:]
    B = x.shape[0]
    H = params["enc_whh_t"].shape[0]
    emb_e = jnp.transpose(jnp.take(params["enc_embed"], x, axis=0), (1, 0, 2))
    zeros = jnp.zeros((B, H), jnp.float32)
    hs = _lstm_ref(emb_e, zeros, zeros, params["enc_wih_t"],
                   params["enc_whh_t"], params["enc_bias"], H)
    h = hs[-1]
    emb_d = jnp.transpose(jnp.take(params["dec_embed"], d_x, axis=0), (1, 0, 2))
    hd = _lstm_ref(emb_d, h, h, params["dec_wih_t"], params["dec_whh_t"],
                   params["dec_bias"], H)
    y = hd @ params["lin_w_t"] + params["lin_b"]
    return jnp.transpose(y, (1, 0, 2)), d_t


# ----------------------------------------------------------------------------
# Deterministic parameter init (shapes per the PyTorch module __init__)
# ----------------------------------------------------------------------------
def init_params(key, vocab_size, wv_size, hidden_size):
    ks = jax.random.split(key, 12)
    bound = 1.0 / np.sqrt(hidden_size)

    def uni(k, shape):
        return jax.random.uniform(k, shape, jnp.float32, -bound, bound)

    return {
        # nn.Embedding weight ~ N(0,1), then /= 100
        "enc_embed": jax.random.normal(ks[0], (vocab_size, wv_size), jnp.float32) / 100.0,
        "dec_embed": jax.random.normal(ks[1], (vocab_size, wv_size), jnp.float32) / 100.0,
        # LSTM: W_ih (4H, E), W_hh (4H, H), b_ih + b_hh -> stored transposed/combined
        "enc_wih_t": uni(ks[2], (wv_size, 4 * hidden_size)),
        "enc_whh_t": uni(ks[3], (hidden_size, 4 * hidden_size)),
        "enc_bias": (uni(ks[4], (1, 4 * hidden_size)) + uni(ks[5], (1, 4 * hidden_size))),
        "dec_wih_t": uni(ks[6], (wv_size, 4 * hidden_size)),
        "dec_whh_t": uni(ks[7], (hidden_size, 4 * hidden_size)),
        "dec_bias": (uni(ks[8], (1, 4 * hidden_size)) + uni(ks[9], (1, 4 * hidden_size))),
        # nn.Linear(hidden, vocab): weight (V, H) -> store transposed (H, V)
        "lin_w_t": uni(ks[10], (hidden_size, vocab_size)),
        "lin_b": uni(ks[11], (1, vocab_size)),
    }


if __name__ == "__main__":
    # Small shapes consistent with the module's forward:
    #   x: (B, S_src) int tokens, t: (B, S_tgt) int tokens
    B, S_SRC, S_TGT = 2, 8, 8
    VOCAB, WV, HIDDEN = 16, 16, 32

    key = jax.random.PRNGKey(0)
    kp, kx, kt = jax.random.split(key, 3)
    params = init_params(kp, VOCAB, WV, HIDDEN)
    padded = pad_params(params)

    x = jax.random.randint(kx, (B, S_SRC), 0, VOCAB, dtype=jnp.int32)
    t = jax.random.randint(kt, (B, S_TGT), 0, VOCAB, dtype=jnp.int32)

    y, d_t = seq2seq_forward(padded, x, t, vocab_size=VOCAB)
    y = jax.block_until_ready(y)
    d_t = jax.block_until_ready(d_t)

    assert y.shape == (B, S_TGT - 1, VOCAB)
    assert d_t.shape == (B, S_TGT - 1)

    # Verify against pure-JAX reference (unpadded math).
    y_ref, d_t_ref = seq2seq_ref(params, x, t)
    np.testing.assert_allclose(np.asarray(y), np.asarray(y_ref), atol=1e-4, rtol=1e-4)
    np.testing.assert_array_equal(np.asarray(d_t), np.asarray(d_t_ref))

    print("KERNEL_OK")
</pallas_src>

<mosaic_0001>
module attributes {stable_mosaic.version = 11 : i64} {
  func.func @encoder_lstm_kernel(%arg0: i32, %arg1: memref<64x128xf32, #tpu.memory_space<vmem>>, %arg2: memref<128x512xf32, #tpu.memory_space<vmem>>, %arg3: memref<128x512xf32, #tpu.memory_space<vmem>>, %arg4: memref<1x512xf32, #tpu.memory_space<vmem>>, %arg5: memref<8x128xf32, #tpu.memory_space<vmem>>, %arg6: memref<64x512xf32, #tpu.memory_space<vmem>>) attributes {dimension_semantics = [#tpu.dimension_semantics<arbitrary>], iteration_bounds = array<i64: 1>, scalar_prefetch = 0 : i64, scratch_operands = 1 : i64, tpu.core_type = #tpu.core_type<tc>, window_params = [{pipeline_mode = #tpu.pipeline_mode<synchronous>, transform_indices = @transform_0, window_bounds = array<i64: 64, 128>}, {pipeline_mode = #tpu.pipeline_mode<synchronous>, transform_indices = @transform_1, window_bounds = array<i64: 128, 512>}, {pipeline_mode = #tpu.pipeline_mode<synchronous>, transform_indices = @transform_2, window_bounds = array<i64: 128, 512>}, {pipeline_mode = #tpu.pipeline_mode<synchronous>, transform_indices = @transform_3, window_bounds = array<i64: 1, 512>}, {pipeline_mode = #tpu.pipeline_mode<synchronous>, transform_indices = @transform_4, window_bounds = array<i64: 8, 128>}]} {
    %c0 = arith.constant 0 : index
    %c0_0 = arith.constant 0 : index
    %0 = vector.load %arg1[%c0, %c0_0] : memref<64x128xf32, #tpu.memory_space<vmem>>, vector<64x128xf32>
    %c0_1 = arith.constant 0 : index
    %c0_2 = arith.constant 0 : index
    %1 = vector.load %arg2[%c0_1, %c0_2] : memref<128x512xf32, #tpu.memory_space<vmem>>, vector<128x512xf32>
    %cst = arith.constant dense<0.000000e+00> : vector<64x512xf32>
    %2 = tpu.matmul %0, %1, %cst {dimension_numbers = #tpu.dot_dimension_numbers<[1], [0], [0], [1], [0, 0, 1, 1], [], []>} : vector<64x128xf32>, vector<128x512xf32>, vector<64x512xf32> -> vector<64x512xf32>
    %c0_3 = arith.constant 0 : index
    %c0_4 = arith.constant 0 : index
    %3 = vector.load %arg4[%c0_3, %c0_4] : memref<1x512xf32, #tpu.memory_space<vmem>>, vector<1x512xf32>
    %4 = vector.broadcast %3 : vector<1x512xf32> to vector<64x512xf32>
    %5 = arith.addf %2, %4 : vector<64x512xf32>
    %c0_5 = arith.constant 0 : index
    %c0_6 = arith.constant 0 : index
    %6 = vector.load %arg6[%c0_5, %c0_6] : memref<64x512xf32, #tpu.memory_space<vmem>>, vector<64x512xf32>
    tpu.vector_store %arg6[%c0_5, %c0_6], %5 {strides = array<i32>} : memref<64x512xf32, #tpu.memory_space<vmem>>, vector<64x512xf32>,
    %c0_7 = arith.constant 0 : index
    %c0_8 = arith.constant 0 : index
    %7 = vector.load %arg3[%c0_7, %c0_8] : memref<128x512xf32, #tpu.memory_space<vmem>>, vector<128x512xf32>
    %cst_9 = arith.constant 0.000000e+00 : f32
    %8 = vector.broadcast %cst_9 : f32 to vector<8x128xf32>
    %c0_i32 = arith.constant 0 : i32
    %c8_i32 = arith.constant 8 : i32
    %9 = arith.muli %c0_i32, %c8_i32 : i32
    %10 = tpu.assume_multiple %9, 8 : i32
    %11 = arith.index_cast %10 : i32 to index
    %c0_10 = arith.constant 0 : index
    %12 = vector.load %arg6[%11, %c0_10] : memref<64x512xf32, #tpu.memory_space<vmem>>, vector<8x512xf32>
    %cst_11 = arith.constant dense<0.000000e+00> : vector<8x512xf32>
    %13 = tpu.matmul %8, %7, %cst_11 {dimension_numbers = #tpu.dot_dimension_numbers<[1], [0], [0], [1], [0, 0, 1, 1], [], []>} : vector<8x128xf32>, vector<128x512xf32>, vector<8x512xf32> -> vector<8x512xf32>
    %14 = arith.addf %12, %13 : vector<8x512xf32>
    %15 = vector.extract_strided_slice %14 {offsets = [0, 0], sizes = [8, 128], strides = [1, 1]} : vector<8x512xf32> to vector<8x128xf32>
    %16 = arith.negf %15 : vector<8x128xf32>
    %17 = math.exp %16 : vector<8x128xf32>
    %cst_12 = arith.constant 1.000000e+00 : f32
    %18 = vector.broadcast %cst_12 : f32 to vector<8x128xf32>
    %19 = arith.addf %18, %17 : vector<8x128xf32>
    %20 = arith.divf %18, %19 : vector<8x128xf32>
    %21 = vector.extract_strided_slice %14 {offsets = [0, 128], sizes = [8, 128], strides = [1, 1]} : vector<8x512xf32> to vector<8x128xf32>
    %22 = arith.negf %21 : vector<8x128xf32>
    %23 = math.exp %22 : vector<8x128xf32>
    %cst_13 = arith.constant 1.000000e+00 : f32
    %24 = vector.broadcast %cst_13 : f32 to vector<8x128xf32>
    %25 = arith.addf %24, %23 : vector<8x128xf32>
    %26 = arith.divf %24, %25 : vector<8x128xf32>
    %27 = vector.extract_strided_slice %14 {offsets = [0, 256], sizes = [8, 128], strides = [1, 1]} : vector<8x512xf32> to vector<8x128xf32>
    %28 = math.tanh %27 : vector<8x128xf32>
    %29 = vector.extract_strided_slice %14 {offsets = [0, 384], sizes = [8, 128], strides = [1, 1]} : vector<8x512xf32> to vector<8x128xf32>
    %30 = arith.negf %29 : vector<8x128xf32>
    %31 = math.exp %30 : vector<8x128xf32>
    %cst_14 = arith.constant 1.000000e+00 : f32
    %32 = vector.broadcast %cst_14 : f32 to vector<8x128xf32>
    %33 = arith.addf %32, %31 : vector<8x128xf32>
    %34 = arith.divf %32, %33 : vector<8x128xf32>
    %35 = arith.mulf %26, %8 : vector<8x128xf32>
    %36 = arith.mulf %20, %28 : vector<8x128xf32>
    %37 = arith.addf %35, %36 : vector<8x128xf32>
    %38 = math.tanh %37 : vector<8x128xf32>
    %39 = arith.mulf %34, %38 : vector<8x128xf32>
    %c1_i32 = arith.constant 1 : i32
    %c8_i32_15 = arith.constant 8 : i32
    %40 = arith.muli %c1_i32, %c8_i32_15 : i32
    %41 = tpu.assume_multiple %40, 8 : i32
    %42 = arith.index_cast %41 : i32 to index
    %c0_16 = arith.constant 0 : index
    %43 = vector.load %arg6[%42, %c0_16] : memref<64x512xf32, #tpu.memory_space<vmem>>, vector<8x512xf32>
    %cst_17 = arith.constant dense<0.000000e+00> : vector<8x512xf32>
    %44 = tpu.matmul %39, %7, %cst_17 {dimension_numbers = #tpu.dot_dimension_numbers<[1], [0], [0], [1], [0, 0, 1, 1], [], []>} : vector<8x128xf32>, vector<128x512xf32>, vector<8x512xf32> -> vector<8x512xf32>
    %45 = arith.addf %43, %44 : vector<8x512xf32>
    %46 = vector.extract_strided_slice %45 {offsets = [0, 0], sizes = [8, 128], strides = [1, 1]} : vector<8x512xf32> to vector<8x128xf32>
    %47 = arith.negf %46 : vector<8x128xf32>
    %48 = math.exp %47 : vector<8x128xf32>
    %cst_18 = arith.constant 1.000000e+00 : f32
    %49 = vector.broadcast %cst_18 : f32 to vector<8x128xf32>
    %50 = arith.addf %49, %48 : vector<8x128xf32>
    %51 = arith.divf %49, %50 : vector<8x128xf32>
    %52 = vector.extract_strided_slice %45 {offsets = [0, 128], sizes = [8, 128], strides = [1, 1]} : vector<8x512xf32> to vector<8x128xf32>
    %53 = arith.negf %52 : vector<8x128xf32>
    %54 = math.exp %53 : vector<8x128xf32>
    %cst_19 = arith.constant 1.000000e+00 : f32
    %55 = vector.broadcast %cst_19 : f32 to vector<8x128xf32>
    %56 = arith.addf %55, %54 : vector<8x128xf32>
    %57 = arith.divf %55, %56 : vector<8x128xf32>
    %58 = vector.extract_strided_slice %45 {offsets = [0, 256], sizes = [8, 128], strides = [1, 1]} : vector<8x512xf32> to vector<8x128xf32>
    %59 = math.tanh %58 : vector<8x128xf32>
    %60 = vector.extract_strided_slice %45 {offsets = [0, 384], sizes = [8, 128], strides = [1, 1]} : vector<8x512xf32> to vector<8x128xf32>
    %61 = arith.negf %60 : vector<8x128xf32>
    %62 = math.exp %61 : vector<8x128xf32>
    %cst_20 = arith.constant 1.000000e+00 : f32
    %63 = vector.broadcast %cst_20 : f32 to vector<8x128xf32>
    %64 = arith.addf %63, %62 : vector<8x128xf32>
    %65 = arith.divf %63, %64 : vector<8x128xf32>
    %66 = arith.mulf %57, %37 : vector<8x128xf32>
    %67 = arith.mulf %51, %59 : vector<8x128xf32>
    %68 = arith.addf %66, %67 : vector<8x128xf32>
    %69 = math.tanh %68 : vector<8x128xf32>
    %70 = arith.mulf %65, %69 : vector<8x128xf32>
    %c2_i32 = arith.constant 2 : i32
    %c8_i32_21 = arith.constant 8 : i32
    %71 = arith.muli %c2_i32, %c8_i32_21 : i32
    %72 = tpu.assume_multiple %71, 8 : i32
    %73 = arith.index_cast %72 : i32 to index
    %c0_22 = arith.constant 0 : index
    %74 = vector.load %arg6[%73, %c0_22] : memref<64x512xf32, #tpu.memory_space<vmem>>, vector<8x512xf32>
    %cst_23 = arith.constant dense<0.000000e+00> : vector<8x512xf32>
    %75 = tpu.matmul %70, %7, %cst_23 {dimension_numbers = #tpu.dot_dimension_numbers<[1], [0], [0], [1], [0, 0, 1, 1], [], []>} : vector<8x128xf32>, vector<128x512xf32>, vector<8x512xf32> -> vector<8x512xf32>
    %76 = arith.addf %74, %75 : vector<8x512xf32>
    %77 = vector.extract_strided_slice %76 {offsets = [0, 0], sizes = [8, 128], strides = [1, 1]} : vector<8x512xf32> to vector<8x128xf32>
    %78 = arith.negf %77 : vector<8x128xf32>
    %79 = math.exp %78 : vector<8x128xf32>
    %cst_24 = arith.constant 1.000000e+00 : f32
    %80 = vector.broadcast %cst_24 : f32 to vector<8x128xf32>
    %81 = arith.addf %80, %79 : vector<8x128xf32>
    %82 = arith.divf %80, %81 : vector<8x128xf32>
    %83 = vector.extract_strided_slice %76 {offsets = [0, 128], sizes = [8, 128], strides = [1, 1]} : vector<8x512xf32> to vector<8x128xf32>
    %84 = arith.negf %83 : vector<8x128xf32>
    %85 = math.exp %84 : vector<8x128xf32>
    %cst_25 = arith.constant 1.000000e+00 : f32
    %86 = vector.broadcast %cst_25 : f32 to vector<8x128xf32>
    %87 = arith.addf %86, %85 : vector<8x128xf32>
    %88 = arith.divf %86, %87 : vector<8x128xf32>
    %89 = vector.extract_strided_slice %76 {offsets = [0, 256], sizes = [8, 128], strides = [1, 1]} : vector<8x512xf32> to vector<8x128xf32>
    %90 = math.tanh %89 : vector<8x128xf32>
    %91 = vector.extract_strided_slice %76 {offsets = [0, 384], sizes = [8, 128], strides = [1, 1]} : vector<8x512xf32> to vector<8x128xf32>
    %92 = arith.negf %91 : vector<8x128xf32>
    %93 = math.exp %92 : vector<8x128xf32>
    %cst_26 = arith.constant 1.000000e+00 : f32
    %94 = vector.broadcast %cst_26 : f32 to vector<8x128xf32>
    %95 = arith.addf %94, %93 : vector<8x128xf32>
    %96 = arith.divf %94, %95 : vector<8x128xf32>
    %97 = arith.mulf %88, %68 : vector<8x128xf32>
    %98 = arith.mulf %82, %90 : vector<8x128xf32>
    %99 = arith.addf %97, %98 : vector<8x128xf32>
    %100 = math.tanh %99 : vector<8x128xf32>
    %101 = arith.mulf %96, %100 : vector<8x128xf32>
    %c3_i32 = arith.constant 3 : i32
    %c8_i32_27 = arith.constant 8 : i32
    %102 = arith.muli %c3_i32, %c8_i32_27 : i32
    %103 = tpu.assume_multiple %102, 8 : i32
    %104 = arith.index_cast %103 : i32 to index
    %c0_28 = arith.constant 0 : index
    %105 = vector.load %arg6[%104, %c0_28] : memref<64x512xf32, #tpu.memory_space<vmem>>, vector<8x512xf32>
    %cst_29 = arith.constant dense<0.000000e+00> : vector<8x512xf32>
    %106 = tpu.matmul %101, %7, %cst_29 {dimension_numbers = #tpu.dot_dimension_numbers<[1], [0], [0], [1], [0, 0, 1, 1], [], []>} : vector<8x128xf32>, vector<128x512xf32>, vector<8x512xf32> -> vector<8x512xf32>
    %107 = arith.addf %105, %106 : vector<8x512xf32>
    %108 = vector.extract_strided_slice %107 {offsets = [0, 0], sizes = [8, 128], strides = [1, 1]} : vector<8x512xf32> to vector<8x128xf32>
    %109 = arith.negf %108 : vector<8x128xf32>
    %110 = math.exp %109 : vector<8x128xf32>
    %cst_30 = arith.constant 1.000000e+00 : f32
    %111 = vector.broadcast %cst_30 : f32 to vector<8x128xf32>
    %112 = arith.addf %111, %110 : vector<8x128xf32>
    %113 = arith.divf %111, %112 : vector<8x128xf32>
    %114 = vector.extract_strided_slice %107 {offsets = [0, 128], sizes = [8, 128], strides = [1, 1]} : vector<8x512xf32> to vector<8x128xf32>
    %115 = arith.negf %114 : vector<8x128xf32>
    %116 = math.exp %115 : vector<8x128xf32>
    %cst_31 = arith.constant 1.000000e+00 : f32
    %117 = vector.broadcast %cst_31 : f32 to vector<8x128xf32>
    %118 = arith.addf %117, %116 : vector<8x128xf32>
    %119 = arith.divf %117, %118 : vector<8x128xf32>
    %120 = vector.extract_strided_slice %107 {offsets = [0, 256], sizes = [8, 128], strides = [1, 1]} : vector<8x512xf32> to vector<8x128xf32>
    %121 = math.tanh %120 : vector<8x128xf32>
    %122 = vector.extract_strided_slice %107 {offsets = [0, 384], sizes = [8, 128], strides = [1, 1]} : vector<8x512xf32> to vector<8x128xf32>
    %123 = arith.negf %122 : vector<8x128xf32>
    %124 = math.exp %123 : vector<8x128xf32>
    %cst_32 = arith.constant 1.000000e+00 : f32
    %125 = vector.broadcast %cst_32 : f32 to vector<8x128xf32>
    %126 = arith.addf %125, %124 : vector<8x128xf32>
    %127 = arith.divf %125, %126 : vector<8x128xf32>
    %128 = arith.mulf %119, %99 : vector<8x128xf32>
    %129 = arith.mulf %113, %121 : vector<8x128xf32>
    %130 = arith.addf %128, %129 : vector<8x128xf32>
    %131 = math.tanh %130 : vector<8x128xf32>
    %132 = arith.mulf %127, %131 : vector<8x128xf32>
    %c4_i32 = arith.constant 4 : i32
    %c8_i32_33 = arith.constant 8 : i32
    %133 = arith.muli %c4_i32, %c8_i32_33 : i32
    %134 = tpu.assume_multiple %133, 8 : i32
    %135 = arith.index_cast %134 : i32 to index
    %c0_34 = arith.constant 0 : index
    %136 = vector.load %arg6[%135, %c0_34] : memref<64x512xf32, #tpu.memory_space<vmem>>, vector<8x512xf32>
    %cst_35 = arith.constant dense<0.000000e+00> : vector<8x512xf32>
    %137 = tpu.matmul %132, %7, %cst_35 {dimension_numbers = #tpu.dot_dimension_numbers<[1], [0], [0], [1], [0, 0, 1, 1], [], []>} : vector<8x128xf32>, vector<128x512xf32>, vector<8x512xf32> -> vector<8x512xf32>
    %138 = arith.addf %136, %137 : vector<8x512xf32>
    %139 = vector.extract_strided_slice %138 {offsets = [0, 0], sizes = [8, 128], strides = [1, 1]} : vector<8x512xf32> to vector<8x128xf32>
    %140 = arith.negf %139 : vector<8x128xf32>
    %141 = math.exp %140 : vector<8x128xf32>
    %cst_36 = arith.constant 1.000000e+00 : f32
    %142 = vector.broadcast %cst_36 : f32 to vector<8x128xf32>
    %143 = arith.addf %142, %141 : vector<8x128xf32>
    %144 = arith.divf %142, %143 : vector<8x128xf32>
    %145 = vector.extract_strided_slice %138 {offsets = [0, 128], sizes = [8, 128], strides = [1, 1]} : vector<8x512xf32> to vector<8x128xf32>
    %146 = arith.negf %145 : vector<8x128xf32>
    %147 = math.exp %146 : vector<8x128xf32>
    %cst_37 = arith.constant 1.000000e+00 : f32
    %148 = vector.broadcast %cst_37 : f32 to vector<8x128xf32>
    %149 = arith.addf %148, %147 : vector<8x128xf32>
    %150 = arith.divf %148, %149 : vector<8x128xf32>
    %151 = vector.extract_strided_slice %138 {offsets = [0, 256], sizes = [8, 128], strides = [1, 1]} : vector<8x512xf32> to vector<8x128xf32>
    %152 = math.tanh %151 : vector<8x128xf32>
    %153 = vector.extract_strided_slice %138 {offsets = [0, 384], sizes = [8, 128], strides = [1, 1]} : vector<8x512xf32> to vector<8x128xf32>
    %154 = arith.negf %153 : vector<8x128xf32>
    %155 = math.exp %154 : vector<8x128xf32>
    %cst_38 = arith.constant 1.000000e+00 : f32
    %156 = vector.broadcast %cst_38 : f32 to vector<8x128xf32>
    %157 = arith.addf %156, %155 : vector<8x128xf32>
    %158 = arith.divf %156, %157 : vector<8x128xf32>
    %159 = arith.mulf %150, %130 : vector<8x128xf32>
    %160 = arith.mulf %144, %152 : vector<8x128xf32>
    %161 = arith.addf %159, %160 : vector<8x128xf32>
    %162 = math.tanh %161 : vector<8x128xf32>
    %163 = arith.mulf %158, %162 : vector<8x128xf32>
    %c5_i32 = arith.constant 5 : i32
    %c8_i32_39 = arith.constant 8 : i32
    %164 = arith.muli %c5_i32, %c8_i32_39 : i32
    %165 = tpu.assume_multiple %164, 8 : i32
    %166 = arith.index_cast %165 : i32 to index
    %c0_40 = arith.constant 0 : index
    %167 = vector.load %arg6[%166, %c0_40] : memref<64x512xf32, #tpu.memory_space<vmem>>, vector<8x512xf32>
    %cst_41 = arith.constant dense<0.000000e+00> : vector<8x512xf32>
    %168 = tpu.matmul %163, %7, %cst_41 {dimension_numbers = #tpu.dot_dimension_numbers<[1], [0], [0], [1], [0, 0, 1, 1], [], []>} : vector<8x128xf32>, vector<128x512xf32>, vector<8x512xf32> -> vector<8x512xf32>
    %169 = arith.addf %167, %168 : vector<8x512xf32>
    %170 = vector.extract_strided_slice %169 {offsets = [0, 0], sizes = [8, 128], strides = [1, 1]} : vector<8x512xf32> to vector<8x128xf32>
    %171 = arith.negf %170 : vector<8x128xf32>
    %172 = math.exp %171 : vector<8x128xf32>
    %cst_42 = arith.constant 1.000000e+00 : f32
    %173 = vector.broadcast %cst_42 : f32 to vector<8x128xf32>
    %174 = arith.addf %173, %172 : vector<8x128xf32>
    %175 = arith.divf %173, %174 : vector<8x128xf32>
    %176 = vector.extract_strided_slice %169 {offsets = [0, 128], sizes = [8, 128], strides = [1, 1]} : vector<8x512xf32> to vector<8x128xf32>
    %177 = arith.negf %176 : vector<8x128xf32>
    %178 = math.exp %177 : vector<8x128xf32>
    %cst_43 = arith.constant 1.000000e+00 : f32
    %179 = vector.broadcast %cst_43 : f32 to vector<8x128xf32>
    %180 = arith.addf %179, %178 : vector<8x128xf32>
    %181 = arith.divf %179, %180 : vector<8x128xf32>
    %182 = vector.extract_strided_slice %169 {offsets = [0, 256], sizes = [8, 128], strides = [1, 1]} : vector<8x512xf32> to vector<8x128xf32>
    %183 = math.tanh %182 : vector<8x128xf32>
    %184 = vector.extract_strided_slice %169 {offsets = [0, 384], sizes = [8, 128], strides = [1, 1]} : vector<8x512xf32> to vector<8x128xf32>
    %185 = arith.negf %184 : vector<8x128xf32>
    %186 = math.exp %185 : vector<8x128xf32>
    %cst_44 = arith.constant 1.000000e+00 : f32
    %187 = vector.broadcast %cst_44 : f32 to vector<8x128xf32>
    %188 = arith.addf %187, %186 : vector<8x128xf32>
    %189 = arith.divf %187, %188 : vector<8x128xf32>
    %190 = arith.mulf %181, %161 : vector<8x128xf32>
    %191 = arith.mulf %175, %183 : vector<8x128xf32>
    %192 = arith.addf %190, %191 : vector<8x128xf32>
    %193 = math.tanh %192 : vector<8x128xf32>
    %194 = arith.mulf %189, %193 : vector<8x128xf32>
    %c6_i32 = arith.constant 6 : i32
    %c8_i32_45 = arith.constant 8 : i32
    %195 = arith.muli %c6_i32, %c8_i32_45 : i32
    %196 = tpu.assume_multiple %195, 8 : i32
    %197 = arith.index_cast %196 : i32 to index
    %c0_46 = arith.constant 0 : index
    %198 = vector.load %arg6[%197, %c0_46] : memref<64x512xf32, #tpu.memory_space<vmem>>, vector<8x512xf32>
    %cst_47 = arith.constant dense<0.000000e+00> : vector<8x512xf32>
    %199 = tpu.matmul %194, %7, %cst_47 {dimension_numbers = #tpu.dot_dimension_numbers<[1], [0], [0], [1], [0, 0, 1, 1], [], []>} : vector<8x128xf32>, vector<128x512xf32>, vector<8x512xf32> -> vector<8x512xf32>
    %200 = arith.addf %198, %199 : vector<8x512xf32>
    %201 = vector.extract_strided_slice %200 {offsets = [0, 0], sizes = [8, 128], strides = [1, 1]} : vector<8x512xf32> to vector<8x128xf32>
    %202 = arith.negf %201 : vector<8x128xf32>
    %203 = math.exp %202 : vector<8x128xf32>
    %cst_48 = arith.constant 1.000000e+00 : f32
    %204 = vector.broadcast %cst_48 : f32 to vector<8x128xf32>
    %205 = arith.addf %204, %203 : vector<8x128xf32>
    %206 = arith.divf %204, %205 : vector<8x128xf32>
    %207 = vector.extract_strided_slice %200 {offsets = [0, 128], sizes = [8, 128], strides = [1, 1]} : vector<8x512xf32> to vector<8x128xf32>
    %208 = arith.negf %207 : vector<8x128xf32>
    %209 = math.exp %208 : vector<8x128xf32>
    %cst_49 = arith.constant 1.000000e+00 : f32
    %210 = vector.broadcast %cst_49 : f32 to vector<8x128xf32>
    %211 = arith.addf %210, %209 : vector<8x128xf32>
    %212 = arith.divf %210, %211 : vector<8x128xf32>
    %213 = vector.extract_strided_slice %200 {offsets = [0, 256], sizes = [8, 128], strides = [1, 1]} : vector<8x512xf32> to vector<8x128xf32>
    %214 = math.tanh %213 : vector<8x128xf32>
    %215 = vector.extract_strided_slice %200 {offsets = [0, 384], sizes = [8, 128], strides = [1, 1]} : vector<8x512xf32> to vector<8x128xf32>
    %216 = arith.negf %215 : vector<8x128xf32>
    %217 = math.exp %216 : vector<8x128xf32>
    %cst_50 = arith.constant 1.000000e+00 : f32
    %218 = vector.broadcast %cst_50 : f32 to vector<8x128xf32>
    %219 = arith.addf %218, %217 : vector<8x128xf32>
    %220 = arith.divf %218, %219 : vector<8x128xf32>
    %221 = arith.mulf %212, %192 : vector<8x128xf32>
    %222 = arith.mulf %206, %214 : vector<8x128xf32>
    %223 = arith.addf %221, %222 : vector<8x128xf32>
    %224 = math.tanh %223 : vector<8x128xf32>
    %225 = arith.mulf %220, %224 : vector<8x128xf32>
    %c7_i32 = arith.constant 7 : i32
    %c8_i32_51 = arith.constant 8 : i32
    %226 = arith.muli %c7_i32, %c8_i32_51 : i32
    %227 = tpu.assume_multiple %226, 8 : i32
    %228 = arith.index_cast %227 : i32 to index
    %c0_52 = arith.constant 0 : index
    %229 = vector.load %arg6[%228, %c0_52] : memref<64x512xf32, #tpu.memory_space<vmem>>, vector<8x512xf32>
    %cst_53 = arith.constant dense<0.000000e+00> : vector<8x512xf32>
    %230 = tpu.matmul %225, %7, %cst_53 {dimension_numbers = #tpu.dot_dimension_numbers<[1], [0], [0], [1], [0, 0, 1, 1], [], []>} : vector<8x128xf32>, vector<128x512xf32>, vector<8x512xf32> -> vector<8x512xf32>
    %231 = arith.addf %229, %230 : vector<8x512xf32>
    %232 = vector.extract_strided_slice %231 {offsets = [0, 0], sizes = [8, 128], strides = [1, 1]} : vector<8x512xf32> to vector<8x128xf32>
    %233 = arith.negf %232 : vector<8x128xf32>
    %234 = math.exp %233 : vector<8x128xf32>
    %cst_54 = arith.constant 1.000000e+00 : f32
    %235 = vector.broadcast %cst_54 : f32 to vector<8x128xf32>
    %236 = arith.addf %235, %234 : vector<8x128xf32>
    %237 = arith.divf %235, %236 : vector<8x128xf32>
    %238 = vector.extract_strided_slice %231 {offsets = [0, 128], sizes = [8, 128], strides = [1, 1]} : vector<8x512xf32> to vector<8x128xf32>
    %239 = arith.negf %238 : vector<8x128xf32>
    %240 = math.exp %239 : vector<8x128xf32>
    %cst_55 = arith.constant 1.000000e+00 : f32
    %241 = vector.broadcast %cst_55 : f32 to vector<8x128xf32>
    %242 = arith.addf %241, %240 : vector<8x128xf32>
    %243 = arith.divf %241, %242 : vector<8x128xf32>
    %244 = vector.extract_strided_slice %231 {offsets = [0, 256], sizes = [8, 128], strides = [1, 1]} : vector<8x512xf32> to vector<8x128xf32>
    %245 = math.tanh %244 : vector<8x128xf32>
    %246 = vector.extract_strided_slice %231 {offsets = [0, 384], sizes = [8, 128], strides = [1, 1]} : vector<8x512xf32> to vector<8x128xf32>
    %247 = arith.negf %246 : vector<8x128xf32>
    %248 = math.exp %247 : vector<8x128xf32>
    %cst_56 = arith.constant 1.000000e+00 : f32
    %249 = vector.broadcast %cst_56 : f32 to vector<8x128xf32>
    %250 = arith.addf %249, %248 : vector<8x128xf32>
    %251 = arith.divf %249, %250 : vector<8x128xf32>
    %252 = arith.mulf %243, %223 : vector<8x128xf32>
    %253 = arith.mulf %237, %245 : vector<8x128xf32>
    %254 = arith.addf %252, %253 : vector<8x128xf32>
    %255 = math.tanh %254 : vector<8x128xf32>
    %256 = arith.mulf %251, %255 : vector<8x128xf32>
    %c8_i32_57 = arith.constant 8 : i32
    %c0_58 = arith.constant 0 : index
    %c0_59 = arith.constant 0 : index
    %257 = vector.load %arg5[%c0_58, %c0_59] : memref<8x128xf32, #tpu.memory_space<vmem>>, vector<8x128xf32>
    tpu.vector_store %arg5[%c0_58, %c0_59], %256 {strides = array<i32>} : memref<8x128xf32, #tpu.memory_space<vmem>>, vector<8x128xf32>,
    return
  }
  func.func @transform_0(%arg0: i32) -> (i32, i32) {
    %c0_i32 = arith.constant 0 : i32
    %c0_i32_0 = arith.constant 0 : i32
    %c0_i32_1 = arith.constant 0 : i32
    return %c0_i32, %c0_i32_0 : i32, i32
  }
  func.func @transform_1(%arg0: i32) -> (i32, i32) {
    %c0_i32 = arith.constant 0 : i32
    %c0_i32_0 = arith.constant 0 : i32
    %c0_i32_1 = arith.constant 0 : i32
    return %c0_i32, %c0_i32_0 : i32, i32
  }
  func.func @transform_2(%arg0: i32) -> (i32, i32) {
    %c0_i32 = arith.constant 0 : i32
    %c0_i32_0 = arith.constant 0 : i32
    %c0_i32_1 = arith.constant 0 : i32
    return %c0_i32, %c0_i32_0 : i32, i32
  }
  func.func @transform_3(%arg0: i32) -> (i32, i32) {
    %c0_i32 = arith.constant 0 : i32
    %c0_i32_0 = arith.constant 0 : i32
    %c0_i32_1 = arith.constant 0 : i32
    return %c0_i32, %c0_i32_0 : i32, i32
  }
  func.func @transform_4(%arg0: i32) -> (i32, i32) {
    %c0_i32 = arith.constant 0 : i32
    %c0_i32_0 = arith.constant 0 : i32
    %c0_i32_1 = arith.constant 0 : i32
    return %c0_i32, %c0_i32_0 : i32, i32
  }
}

module attributes {stable_mosaic.version = 11 : i64} {
  func.func @decoder_lstm_kernel(%arg0: i32, %arg1: memref<56x128xf32, #tpu.memory_space<vmem>>, %arg2: memref<8x128xf32, #tpu.memory_space<vmem>>, %arg3: memref<128x512xf32, #tpu.memory_space<vmem>>, %arg4: memref<128x512xf32, #tpu.memory_space<vmem>>, %arg5: memref<1x512xf32, #tpu.memory_space<vmem>>, %arg6: memref<128x128xf32, #tpu.memory_space<vmem>>, %arg7: memref<1x128xf32, #tpu.memory_space<vmem>>, %arg8: memref<56x128xf32, #tpu.memory_space<vmem>>, %arg9: memref<56x512xf32, #tpu.memory_space<vmem>>, %arg10: memref<56x128xf32, #tpu.memory_space<vmem>>) attributes {dimension_semantics = [#tpu.dimension_semantics<arbitrary>], iteration_bounds = array<i64: 1>, scalar_prefetch = 0 : i64, scratch_operands = 2 : i64, tpu.core_type = #tpu.core_type<tc>, window_params = [{pipeline_mode = #tpu.pipeline_mode<synchronous>, transform_indices = @transform_0, window_bounds = array<i64: 56, 128>}, {pipeline_mode = #tpu.pipeline_mode<synchronous>, transform_indices = @transform_1, window_bounds = array<i64: 8, 128>}, {pipeline_mode = #tpu.pipeline_mode<synchronous>, transform_indices = @transform_2, window_bounds = array<i64: 128, 512>}, {pipeline_mode = #tpu.pipeline_mode<synchronous>, transform_indices = @transform_3, window_bounds = array<i64: 128, 512>}, {pipeline_mode = #tpu.pipeline_mode<synchronous>, transform_indices = @transform_4, window_bounds = array<i64: 1, 512>}, {pipeline_mode = #tpu.pipeline_mode<synchronous>, transform_indices = @transform_5, window_bounds = array<i64: 128, 128>}, {pipeline_mode = #tpu.pipeline_mode<synchronous>, transform_indices = @transform_6, window_bounds = array<i64: 1, 128>}, {pipeline_mode = #tpu.pipeline_mode<synchronous>, transform_indices = @transform_7, window_bounds = array<i64: 56, 128>}]} {
    %c0 = arith.constant 0 : index
    %c0_0 = arith.constant 0 : index
    %0 = vector.load %arg1[%c0, %c0_0] : memref<56x128xf32, #tpu.memory_space<vmem>>, vector<56x128xf32>
    %c0_1 = arith.constant 0 : index
    %c0_2 = arith.constant 0 : index
    %1 = vector.load %arg3[%c0_1, %c0_2] : memref<128x512xf32, #tpu.memory_space<vmem>>, vector<128x512xf32>
    %cst = arith.constant dense<0.000000e+00> : vector<56x512xf32>
    %2 = tpu.matmul %0, %1, %cst {dimension_numbers = #tpu.dot_dimension_numbers<[1], [0], [0], [1], [0, 0, 1, 1], [], []>} : vector<56x128xf32>, vector<128x512xf32>, vector<56x512xf32> -> vector<56x512xf32>
    %c0_3 = arith.constant 0 : index
    %c0_4 = arith.constant 0 : index
    %3 = vector.load %arg5[%c0_3, %c0_4] : memref<1x512xf32, #tpu.memory_space<vmem>>, vector<1x512xf32>
    %4 = vector.broadcast %3 : vector<1x512xf32> to vector<56x512xf32>
    %5 = arith.addf %2, %4 : vector<56x512xf32>
    %c0_5 = arith.constant 0 : index
    %c0_6 = arith.constant 0 : index
    %6 = vector.load %arg9[%c0_5, %c0_6] : memref<56x512xf32, #tpu.memory_space<vmem>>, vector<56x512xf32>
    tpu.vector_store %arg9[%c0_5, %c0_6], %5 {strides = array<i32>} : memref<56x512xf32, #tpu.memory_space<vmem>>, vector<56x512xf32>,
    %c0_7 = arith.constant 0 : index
    %c0_8 = arith.constant 0 : index
    %7 = vector.load %arg4[%c0_7, %c0_8] : memref<128x512xf32, #tpu.memory_space<vmem>>, vector<128x512xf32>
    %c0_9 = arith.constant 0 : index
    %c0_10 = arith.constant 0 : index
    %8 = vector.load %arg2[%c0_9, %c0_10] : memref<8x128xf32, #tpu.memory_space<vmem>>, vector<8x128xf32>
    %c0_i32 = arith.constant 0 : i32
    %c8_i32 = arith.constant 8 : i32
    %9 = arith.muli %c0_i32, %c8_i32 : i32
    %10 = tpu.assume_multiple %9, 8 : i32
    %11 = arith.index_cast %10 : i32 to index
    %c0_11 = arith.constant 0 : index
    %12 = vector.load %arg9[%11, %c0_11] : memref<56x512xf32, #tpu.memory_space<vmem>>, vector<8x512xf32>
    %cst_12 = arith.constant dense<0.000000e+00> : vector<8x512xf32>
    %13 = tpu.matmul %8, %7, %cst_12 {dimension_numbers = #tpu.dot_dimension_numbers<[1], [0], [0], [1], [0, 0, 1, 1], [], []>} : vector<8x128xf32>, vector<128x512xf32>, vector<8x512xf32> -> vector<8x512xf32>
    %14 = arith.addf %12, %13 : vector<8x512xf32>
    %15 = vector.extract_strided_slice %14 {offsets = [0, 0], sizes = [8, 128], strides = [1, 1]} : vector<8x512xf32> to vector<8x128xf32>
    %16 = arith.negf %15 : vector<8x128xf32>
    %17 = math.exp %16 : vector<8x128xf32>
    %cst_13 = arith.constant 1.000000e+00 : f32
    %18 = vector.broadcast %cst_13 : f32 to vector<8x128xf32>
    %19 = arith.addf %18, %17 : vector<8x128xf32>
    %20 = arith.divf %18, %19 : vector<8x128xf32>
    %21 = vector.extract_strided_slice %14 {offsets = [0, 128], sizes = [8, 128], strides = [1, 1]} : vector<8x512xf32> to vector<8x128xf32>
    %22 = arith.negf %21 : vector<8x128xf32>
    %23 = math.exp %22 : vector<8x128xf32>
    %cst_14 = arith.constant 1.000000e+00 : f32
    %24 = vector.broadcast %cst_14 : f32 to vector<8x128xf32>
    %25 = arith.addf %24, %23 : vector<8x128xf32>
    %26 = arith.divf %24, %25 : vector<8x128xf32>
    %27 = vector.extract_strided_slice %14 {offsets = [0, 256], sizes = [8, 128], strides = [1, 1]} : vector<8x512xf32> to vector<8x128xf32>
    %28 = math.tanh %27 : vector<8x128xf32>
    %29 = vector.extract_strided_slice %14 {offsets = [0, 384], sizes = [8, 128], strides = [1, 1]} : vector<8x512xf32> to vector<8x128xf32>
    %30 = arith.negf %29 : vector<8x128xf32>
    %31 = math.exp %30 : vector<8x128xf32>
    %cst_15 = arith.constant 1.000000e+00 : f32
    %32 = vector.broadcast %cst_15 : f32 to vector<8x128xf32>
    %33 = arith.addf %32, %31 : vector<8x128xf32>
    %34 = arith.divf %32, %33 : vector<8x128xf32>
    %35 = arith.mulf %26, %8 : vector<8x128xf32>
    %36 = arith.mulf %20, %28 : vector<8x128xf32>
    %37 = arith.addf %35, %36 : vector<8x128xf32>
    %38 = math.tanh %37 : vector<8x128xf32>
    %39 = arith.mulf %34, %38 : vector<8x128xf32>
    %40 = arith.index_cast %10 : i32 to index
    %c0_16 = arith.constant 0 : index
    %41 = vector.load %arg10[%40, %c0_16] : memref<56x128xf32, #tpu.memory_space<vmem>>, vector<8x128xf32>
    tpu.vector_store %arg10[%40, %c0_16], %39 {strides = array<i32>} : memref<56x128xf32, #tpu.memory_space<vmem>>, vector<8x128xf32>,
    %c1_i32 = arith.constant 1 : i32
    %c8_i32_17 = arith.constant 8 : i32
    %42 = arith.muli %c1_i32, %c8_i32_17 : i32
    %43 = tpu.assume_multiple %42, 8 : i32
    %44 = arith.index_cast %43 : i32 to index
    %c0_18 = arith.constant 0 : index
    %45 = vector.load %arg9[%44, %c0_18] : memref<56x512xf32, #tpu.memory_space<vmem>>, vector<8x512xf32>
    %cst_19 = arith.constant dense<0.000000e+00> : vector<8x512xf32>
    %46 = tpu.matmul %39, %7, %cst_19 {dimension_numbers = #tpu.dot_dimension_numbers<[1], [0], [0], [1], [0, 0, 1, 1], [], []>} : vector<8x128xf32>, vector<128x512xf32>, vector<8x512xf32> -> vector<8x512xf32>
    %47 = arith.addf %45, %46 : vector<8x512xf32>
    %48 = vector.extract_strided_slice %47 {offsets = [0, 0], sizes = [8, 128], strides = [1, 1]} : vector<8x512xf32> to vector<8x128xf32>
    %49 = arith.negf %48 : vector<8x128xf32>
    %50 = math.exp %49 : vector<8x128xf32>
    %cst_20 = arith.constant 1.000000e+00 : f32
    %51 = vector.broadcast %cst_20 : f32 to vector<8x128xf32>
    %52 = arith.addf %51, %50 : vector<8x128xf32>
    %53 = arith.divf %51, %52 : vector<8x128xf32>
    %54 = vector.extract_strided_slice %47 {offsets = [0, 128], sizes = [8, 128], strides = [1, 1]} : vector<8x512xf32> to vector<8x128xf32>
    %55 = arith.negf %54 : vector<8x128xf32>
    %56 = math.exp %55 : vector<8x128xf32>
    %cst_21 = arith.constant 1.000000e+00 : f32
    %57 = vector.broadcast %cst_21 : f32 to vector<8x128xf32>
    %58 = arith.addf %57, %56 : vector<8x128xf32>
    %59 = arith.divf %57, %58 : vector<8x128xf32>
    %60 = vector.extract_strided_slice %47 {offsets = [0, 256], sizes = [8, 128], strides = [1, 1]} : vector<8x512xf32> to vector<8x128xf32>
    %61 = math.tanh %60 : vector<8x128xf32>
    %62 = vector.extract_strided_slice %47 {offsets = [0, 384], sizes = [8, 128], strides = [1, 1]} : vector<8x512xf32> to vector<8x128xf32>
    %63 = arith.negf %62 : vector<8x128xf32>
    %64 = math.exp %63 : vector<8x128xf32>
    %cst_22 = arith.constant 1.000000e+00 : f32
    %65 = vector.broadcast %cst_22 : f32 to vector<8x128xf32>
    %66 = arith.addf %65, %64 : vector<8x128xf32>
    %67 = arith.divf %65, %66 : vector<8x128xf32>
    %68 = arith.mulf %59, %37 : vector<8x128xf32>
    %69 = arith.mulf %53, %61 : vector<8x128xf32>
    %70 = arith.addf %68, %69 : vector<8x128xf32>
    %71 = math.tanh %70 : vector<8x128xf32>
    %72 = arith.mulf %67, %71 : vector<8x128xf32>
    %73 = arith.index_cast %43 : i32 to index
    %c0_23 = arith.constant 0 : index
    %74 = vector.load %arg10[%73, %c0_23] : memref<56x128xf32, #tpu.memory_space<vmem>>, vector<8x128xf32>
    tpu.vector_store %arg10[%73, %c0_23], %72 {strides = array<i32>} : memref<56x128xf32, #tpu.memory_space<vmem>>, vector<8x128xf32>,
    %c2_i32 = arith.constant 2 : i32
    %c8_i32_24 = arith.constant 8 : i32
    %75 = arith.muli %c2_i32, %c8_i32_24 : i32
    %76 = tpu.assume_multiple %75, 8 : i32
    %77 = arith.index_cast %76 : i32 to index
    %c0_25 = arith.constant 0 : index
    %78 = vector.load %arg9[%77, %c0_25] : memref<56x512xf32, #tpu.memory_space<vmem>>, vector<8x512xf32>
    %cst_26 = arith.constant dense<0.000000e+00> : vector<8x512xf32>
    %79 = tpu.matmul %72, %7, %cst_26 {dimension_numbers = #tpu.dot_dimension_numbers<[1], [0], [0], [1], [0, 0, 1, 1], [], []>} : vector<8x128xf32>, vector<128x512xf32>, vector<8x512xf32> -> vector<8x512xf32>
    %80 = arith.addf %78, %79 : vector<8x512xf32>
    %81 = vector.extract_strided_slice %80 {offsets = [0, 0], sizes = [8, 128], strides = [1, 1]} : vector<8x512xf32> to vector<8x128xf32>
    %82 = arith.negf %81 : vector<8x128xf32>
    %83 = math.exp %82 : vector<8x128xf32>
    %cst_27 = arith.constant 1.000000e+00 : f32
    %84 = vector.broadcast %cst_27 : f32 to vector<8x128xf32>
    %85 = arith.addf %84, %83 : vector<8x128xf32>
    %86 = arith.divf %84, %85 : vector<8x128xf32>
    %87 = vector.extract_strided_slice %80 {offsets = [0, 128], sizes = [8, 128], strides = [1, 1]} : vector<8x512xf32> to vector<8x128xf32>
    %88 = arith.negf %87 : vector<8x128xf32>
    %89 = math.exp %88 : vector<8x128xf32>
    %cst_28 = arith.constant 1.000000e+00 : f32
    %90 = vector.broadcast %cst_28 : f32 to vector<8x128xf32>
    %91 = arith.addf %90, %89 : vector<8x128xf32>
    %92 = arith.divf %90, %91 : vector<8x128xf32>
    %93 = vector.extract_strided_slice %80 {offsets = [0, 256], sizes = [8, 128], strides = [1, 1]} : vector<8x512xf32> to vector<8x128xf32>
    %94 = math.tanh %93 : vector<8x128xf32>
    %95 = vector.extract_strided_slice %80 {offsets = [0, 384], sizes = [8, 128], strides = [1, 1]} : vector<8x512xf32> to vector<8x128xf32>
    %96 = arith.negf %95 : vector<8x128xf32>
    %97 = math.exp %96 : vector<8x128xf32>
    %cst_29 = arith.constant 1.000000e+00 : f32
    %98 = vector.broadcast %cst_29 : f32 to vector<8x128xf32>
    %99 = arith.addf %98, %97 : vector<8x128xf32>
    %100 = arith.divf %98, %99 : vector<8x128xf32>
    %101 = arith.mulf %92, %70 : vector<8x128xf32>
    %102 = arith.mulf %86, %94 : vector<8x128xf32>
    %103 = arith.addf %101, %102 : vector<8x128xf32>
    %104 = math.tanh %103 : vector<8x128xf32>
    %105 = arith.mulf %100, %104 : vector<8x128xf32>
    %106 = arith.index_cast %76 : i32 to index
    %c0_30 = arith.constant 0 : index
    %107 = vector.load %arg10[%106, %c0_30] : memref<56x128xf32, #tpu.memory_space<vmem>>, vector<8x128xf32>
    tpu.vector_store %arg10[%106, %c0_30], %105 {strides = array<i32>} : memref<56x128xf32, #tpu.memory_space<vmem>>, vector<8x128xf32>,
    %c3_i32 = arith.constant 3 : i32
    %c8_i32_31 = arith.constant 8 : i32
    %108 = arith.muli %c3_i32, %c8_i32_31 : i32
    %109 = tpu.assume_multiple %108, 8 : i32
    %110 = arith.index_cast %109 : i32 to index
    %c0_32 = arith.constant 0 : index
    %111 = vector.load %arg9[%110, %c0_32] : memref<56x512xf32, #tpu.memory_space<vmem>>, vector<8x512xf32>
    %cst_33 = arith.constant dense<0.000000e+00> : vector<8x512xf32>
    %112 = tpu.matmul %105, %7, %cst_33 {dimension_numbers = #tpu.dot_dimension_numbers<[1], [0], [0], [1], [0, 0, 1, 1], [], []>} : vector<8x128xf32>, vector<128x512xf32>, vector<8x512xf32> -> vector<8x512xf32>
    %113 = arith.addf %111, %112 : vector<8x512xf32>
    %114 = vector.extract_strided_slice %113 {offsets = [0, 0], sizes = [8, 128], strides = [1, 1]} : vector<8x512xf32> to vector<8x128xf32>
    %115 = arith.negf %114 : vector<8x128xf32>
    %116 = math.exp %115 : vector<8x128xf32>
    %cst_34 = arith.constant 1.000000e+00 : f32
    %117 = vector.broadcast %cst_34 : f32 to vector<8x128xf32>
    %118 = arith.addf %117, %116 : vector<8x128xf32>
    %119 = arith.divf %117, %118 : vector<8x128xf32>
    %120 = vector.extract_strided_slice %113 {offsets = [0, 128], sizes = [8, 128], strides = [1, 1]} : vector<8x512xf32> to vector<8x128xf32>
    %121 = arith.negf %120 : vector<8x128xf32>
    %122 = math.exp %121 : vector<8x128xf32>
    %cst_35 = arith.constant 1.000000e+00 : f32
    %123 = vector.broadcast %cst_35 : f32 to vector<8x128xf32>
    %124 = arith.addf %123, %122 : vector<8x128xf32>
    %125 = arith.divf %123, %124 : vector<8x128xf32>
    %126 = vector.extract_strided_slice %113 {offsets = [0, 256], sizes = [8, 128], strides = [1, 1]} : vector<8x512xf32> to vector<8x128xf32>
    %127 = math.tanh %126 : vector<8x128xf32>
    %128 = vector.extract_strided_slice %113 {offsets = [0, 384], sizes = [8, 128], strides = [1, 1]} : vector<8x512xf32> to vector<8x128xf32>
    %129 = arith.negf %128 : vector<8x128xf32>
    %130 = math.exp %129 : vector<8x128xf32>
    %cst_36 = arith.constant 1.000000e+00 : f32
    %131 = vector.broadcast %cst_36 : f32 to vector<8x128xf32>
    %132 = arith.addf %131, %130 : vector<8x128xf32>
    %133 = arith.divf %131, %132 : vector<8x128xf32>
    %134 = arith.mulf %125, %103 : vector<8x128xf32>
    %135 = arith.mulf %119, %127 : vector<8x128xf32>
    %136 = arith.addf %134, %135 : vector<8x128xf32>
    %137 = math.tanh %136 : vector<8x128xf32>
    %138 = arith.mulf %133, %137 : vector<8x128xf32>
    %139 = arith.index_cast %109 : i32 to index
    %c0_37 = arith.constant 0 : index
    %140 = vector.load %arg10[%139, %c0_37] : memref<56x128xf32, #tpu.memory_space<vmem>>, vector<8x128xf32>
    tpu.vector_store %arg10[%139, %c0_37], %138 {strides = array<i32>} : memref<56x128xf32, #tpu.memory_space<vmem>>, vector<8x128xf32>,
    %c4_i32 = arith.constant 4 : i32
    %c8_i32_38 = arith.constant 8 : i32
    %141 = arith.muli %c4_i32, %c8_i32_38 : i32
    %142 = tpu.assume_multiple %141, 8 : i32
    %143 = arith.index_cast %142 : i32 to index
    %c0_39 = arith.constant 0 : index
    %144 = vector.load %arg9[%143, %c0_39] : memref<56x512xf32, #tpu.memory_space<vmem>>, vector<8x512xf32>
    %cst_40 = arith.constant dense<0.000000e+00> : vector<8x512xf32>
    %145 = tpu.matmul %138, %7, %cst_40 {dimension_numbers = #tpu.dot_dimension_numbers<[1], [0], [0], [1], [0, 0, 1, 1], [], []>} : vector<8x128xf32>, vector<128x512xf32>, vector<8x512xf32> -> vector<8x512xf32>
    %146 = arith.addf %144, %145 : vector<8x512xf32>
    %147 = vector.extract_strided_slice %146 {offsets = [0, 0], sizes = [8, 128], strides = [1, 1]} : vector<8x512xf32> to vector<8x128xf32>
    %148 = arith.negf %147 : vector<8x128xf32>
    %149 = math.exp %148 : vector<8x128xf32>
    %cst_41 = arith.constant 1.000000e+00 : f32
    %150 = vector.broadcast %cst_41 : f32 to vector<8x128xf32>
    %151 = arith.addf %150, %149 : vector<8x128xf32>
    %152 = arith.divf %150, %151 : vector<8x128xf32>
    %153 = vector.extract_strided_slice %146 {offsets = [0, 128], sizes = [8, 128], strides = [1, 1]} : vector<8x512xf32> to vector<8x128xf32>
    %154 = arith.negf %153 : vector<8x128xf32>
    %155 = math.exp %154 : vector<8x128xf32>
    %cst_42 = arith.constant 1.000000e+00 : f32
    %156 = vector.broadcast %cst_42 : f32 to vector<8x128xf32>
    %157 = arith.addf %156, %155 : vector<8x128xf32>
    %158 = arith.divf %156, %157 : vector<8x128xf32>
    %159 = vector.extract_strided_slice %146 {offsets = [0, 256], sizes = [8, 128], strides = [1, 1]} : vector<8x512xf32> to vector<8x128xf32>
    %160 = math.tanh %159 : vector<8x128xf32>
    %161 = vector.extract_strided_slice %146 {offsets = [0, 384], sizes = [8, 128], strides = [1, 1]} : vector<8x512xf32> to vector<8x128xf32>
    %162 = arith.negf %161 : vector<8x128xf32>
    %163 = math.exp %162 : vector<8x128xf32>
    %cst_43 = arith.constant 1.000000e+00 : f32
    %164 = vector.broadcast %cst_43 : f32 to vector<8x128xf32>
    %165 = arith.addf %164, %163 : vector<8x128xf32>
    %166 = arith.divf %164, %165 : vector<8x128xf32>
    %167 = arith.mulf %158, %136 : vector<8x128xf32>
    %168 = arith.mulf %152, %160 : vector<8x128xf32>
    %169 = arith.addf %167, %168 : vector<8x128xf32>
    %170 = math.tanh %169 : vector<8x128xf32>
    %171 = arith.mulf %166, %170 : vector<8x128xf32>
    %172 = arith.index_cast %142 : i32 to index
    %c0_44 = arith.constant 0 : index
    %173 = vector.load %arg10[%172, %c0_44] : memref<56x128xf32, #tpu.memory_space<vmem>>, vector<8x128xf32>
    tpu.vector_store %arg10[%172, %c0_44], %171 {strides = array<i32>} : memref<56x128xf32, #tpu.memory_space<vmem>>, vector<8x128xf32>,
    %c5_i32 = arith.constant 5 : i32
    %c8_i32_45 = arith.constant 8 : i32
    %174 = arith.muli %c5_i32, %c8_i32_45 : i32
    %175 = tpu.assume_multiple %174, 8 : i32
    %176 = arith.index_cast %175 : i32 to index
    %c0_46 = arith.constant 0 : index
    %177 = vector.load %arg9[%176, %c0_46] : memref<56x512xf32, #tpu.memory_space<vmem>>, vector<8x512xf32>
    %cst_47 = arith.constant dense<0.000000e+00> : vector<8x512xf32>
    %178 = tpu.matmul %171, %7, %cst_47 {dimension_numbers = #tpu.dot_dimension_numbers<[1], [0], [0], [1], [0, 0, 1, 1], [], []>} : vector<8x128xf32>, vector<128x512xf32>, vector<8x512xf32> -> vector<8x512xf32>
    %179 = arith.addf %177, %178 : vector<8x512xf32>
    %180 = vector.extract_strided_slice %179 {offsets = [0, 0], sizes = [8, 128], strides = [1, 1]} : vector<8x512xf32> to vector<8x128xf32>
    %181 = arith.negf %180 : vector<8x128xf32>
    %182 = math.exp %181 : vector<8x128xf32>
    %cst_48 = arith.constant 1.000000e+00 : f32
    %183 = vector.broadcast %cst_48 : f32 to vector<8x128xf32>
    %184 = arith.addf %183, %182 : vector<8x128xf32>
    %185 = arith.divf %183, %184 : vector<8x128xf32>
    %186 = vector.extract_strided_slice %179 {offsets = [0, 128], sizes = [8, 128], strides = [1, 1]} : vector<8x512xf32> to vector<8x128xf32>
    %187 = arith.negf %186 : vector<8x128xf32>
    %188 = math.exp %187 : vector<8x128xf32>
    %cst_49 = arith.constant 1.000000e+00 : f32
    %189 = vector.broadcast %cst_49 : f32 to vector<8x128xf32>
    %190 = arith.addf %189, %188 : vector<8x128xf32>
    %191 = arith.divf %189, %190 : vector<8x128xf32>
    %192 = vector.extract_strided_slice %179 {offsets = [0, 256], sizes = [8, 128], strides = [1, 1]} : vector<8x512xf32> to vector<8x128xf32>
    %193 = math.tanh %192 : vector<8x128xf32>
    %194 = vector.extract_strided_slice %179 {offsets = [0, 384], sizes = [8, 128], strides = [1, 1]} : vector<8x512xf32> to vector<8x128xf32>
    %195 = arith.negf %194 : vector<8x128xf32>
    %196 = math.exp %195 : vector<8x128xf32>
    %cst_50 = arith.constant 1.000000e+00 : f32
    %197 = vector.broadcast %cst_50 : f32 to vector<8x128xf32>
    %198 = arith.addf %197, %196 : vector<8x128xf32>
    %199 = arith.divf %197, %198 : vector<8x128xf32>
    %200 = arith.mulf %191, %169 : vector<8x128xf32>
    %201 = arith.mulf %185, %193 : vector<8x128xf32>
    %202 = arith.addf %200, %201 : vector<8x128xf32>
    %203 = math.tanh %202 : vector<8x128xf32>
    %204 = arith.mulf %199, %203 : vector<8x128xf32>
    %205 = arith.index_cast %175 : i32 to index
    %c0_51 = arith.constant 0 : index
    %206 = vector.load %arg10[%205, %c0_51] : memref<56x128xf32, #tpu.memory_space<vmem>>, vector<8x128xf32>
    tpu.vector_store %arg10[%205, %c0_51], %204 {strides = array<i32>} : memref<56x128xf32, #tpu.memory_space<vmem>>, vector<8x128xf32>,
    %c6_i32 = arith.constant 6 : i32
    %c8_i32_52 = arith.constant 8 : i32
    %207 = arith.muli %c6_i32, %c8_i32_52 : i32
    %208 = tpu.assume_multiple %207, 8 : i32
    %209 = arith.index_cast %208 : i32 to index
    %c0_53 = arith.constant 0 : index
    %210 = vector.load %arg9[%209, %c0_53] : memref<56x512xf32, #tpu.memory_space<vmem>>, vector<8x512xf32>
    %cst_54 = arith.constant dense<0.000000e+00> : vector<8x512xf32>
    %211 = tpu.matmul %204, %7, %cst_54 {dimension_numbers = #tpu.dot_dimension_numbers<[1], [0], [0], [1], [0, 0, 1, 1], [], []>} : vector<8x128xf32>, vector<128x512xf32>, vector<8x512xf32> -> vector<8x512xf32>
    %212 = arith.addf %210, %211 : vector<8x512xf32>
    %213 = vector.extract_strided_slice %212 {offsets = [0, 0], sizes = [8, 128], strides = [1, 1]} : vector<8x512xf32> to vector<8x128xf32>
    %214 = arith.negf %213 : vector<8x128xf32>
    %215 = math.exp %214 : vector<8x128xf32>
    %cst_55 = arith.constant 1.000000e+00 : f32
    %216 = vector.broadcast %cst_55 : f32 to vector<8x128xf32>
    %217 = arith.addf %216, %215 : vector<8x128xf32>
    %218 = arith.divf %216, %217 : vector<8x128xf32>
    %219 = vector.extract_strided_slice %212 {offsets = [0, 128], sizes = [8, 128], strides = [1, 1]} : vector<8x512xf32> to vector<8x128xf32>
    %220 = arith.negf %219 : vector<8x128xf32>
    %221 = math.exp %220 : vector<8x128xf32>
    %cst_56 = arith.constant 1.000000e+00 : f32
    %222 = vector.broadcast %cst_56 : f32 to vector<8x128xf32>
    %223 = arith.addf %222, %221 : vector<8x128xf32>
    %224 = arith.divf %222, %223 : vector<8x128xf32>
    %225 = vector.extract_strided_slice %212 {offsets = [0, 256], sizes = [8, 128], strides = [1, 1]} : vector<8x512xf32> to vector<8x128xf32>
    %226 = math.tanh %225 : vector<8x128xf32>
    %227 = vector.extract_strided_slice %212 {offsets = [0, 384], sizes = [8, 128], strides = [1, 1]} : vector<8x512xf32> to vector<8x128xf32>
    %228 = arith.negf %227 : vector<8x128xf32>
    %229 = math.exp %228 : vector<8x128xf32>
    %cst_57 = arith.constant 1.000000e+00 : f32
    %230 = vector.broadcast %cst_57 : f32 to vector<8x128xf32>
    %231 = arith.addf %230, %229 : vector<8x128xf32>
    %232 = arith.divf %230, %231 : vector<8x128xf32>
    %233 = arith.mulf %224, %202 : vector<8x128xf32>
    %234 = arith.mulf %218, %226 : vector<8x128xf32>
    %235 = arith.addf %233, %234 : vector<8x128xf32>
    %236 = math.tanh %235 : vector<8x128xf32>
    %237 = arith.mulf %232, %236 : vector<8x128xf32>
    %238 = arith.index_cast %208 : i32 to index
    %c0_58 = arith.constant 0 : index
    %239 = vector.load %arg10[%238, %c0_58] : memref<56x128xf32, #tpu.memory_space<vmem>>, vector<8x128xf32>
    tpu.vector_store %arg10[%238, %c0_58], %237 {strides = array<i32>} : memref<56x128xf32, #tpu.memory_space<vmem>>, vector<8x128xf32>,
    %c7_i32 = arith.constant 7 : i32
    %c0_59 = arith.constant 0 : index
    %c0_60 = arith.constant 0 : index
    %240 = vector.load %arg10[%c0_59, %c0_60] : memref<56x128xf32, #tpu.memory_space<vmem>>, vector<56x128xf32>
    %c0_61 = arith.constant 0 : index
    %c0_62 = arith.constant 0 : index
    %241 = vector.load %arg6[%c0_61, %c0_62] : memref<128x128xf32, #tpu.memory_space<vmem>>, vector<128x128xf32>
    %cst_63 = arith.constant dense<0.000000e+00> : vector<56x128xf32>
    %242 = tpu.matmul %240, %241, %cst_63 {dimension_numbers = #tpu.dot_dimension_numbers<[1], [0], [0], [1], [0, 0, 1, 1], [], []>} : vector<56x128xf32>, vector<128x128xf32>, vector<56x128xf32> -> vector<56x128xf32>
    %c0_64 = arith.constant 0 : index
    %c0_65 = arith.constant 0 : index
    %243 = vector.load %arg7[%c0_64, %c0_65] : memref<1x128xf32, #tpu.memory_space<vmem>>, vector<1x128xf32>
    %244 = vector.broadcast %243 : vector<1x128xf32> to vector<56x128xf32>
    %245 = arith.addf %242, %244 : vector<56x128xf32>
    %c0_66 = arith.constant 0 : index
    %c0_67 = arith.constant 0 : index
    %246 = vector.load %arg8[%c0_66, %c0_67] : memref<56x128xf32, #tpu.memory_space<vmem>>, vector<56x128xf32>
    tpu.vector_store %arg8[%c0_66, %c0_67], %245 {strides = array<i32>} : memref<56x128xf32, #tpu.memory_space<vmem>>, vector<56x128xf32>,
    return
  }
  func.func @transform_0(%arg0: i32) -> (i32, i32) {
    %c0_i32 = arith.constant 0 : i32
    %c0_i32_0 = arith.constant 0 : i32
    %c0_i32_1 = arith.constant 0 : i32
    return %c0_i32, %c0_i32_0 : i32, i32
  }
  func.func @transform_1(%arg0: i32) -> (i32, i32) {
    %c0_i32 = arith.constant 0 : i32
    %c0_i32_0 = arith.constant 0 : i32
    %c0_i32_1 = arith.constant 0 : i32
    return %c0_i32, %c0_i32_0 : i32, i32
  }
  func.func @transform_2(%arg0: i32) -> (i32, i32) {
    %c0_i32 = arith.constant 0 : i32
    %c0_i32_0 = arith.constant 0 : i32
    %c0_i32_1 = arith.constant 0 : i32
    return %c0_i32, %c0_i32_0 : i32, i32
  }
  func.func @transform_3(%arg0: i32) -> (i32, i32) {
    %c0_i32 = arith.constant 0 : i32
    %c0_i32_0 = arith.constant 0 : i32
    %c0_i32_1 = arith.constant 0 : i32
    return %c0_i32, %c0_i32_0 : i32, i32
  }
  func.func @transform_4(%arg0: i32) -> (i32, i32) {
    %c0_i32 = arith.constant 0 : i32
    %c0_i32_0 = arith.constant 0 : i32
    %c0_i32_1 = arith.constant 0 : i32
    return %c0_i32, %c0_i32_0 : i32, i32
  }
  func.func @transform_5(%arg0: i32) -> (i32, i32) {
    %c0_i32 = arith.constant 0 : i32
    %c0_i32_0 = arith.constant 0 : i32
    %c0_i32_1 = arith.constant 0 : i32
    return %c0_i32, %c0_i32_0 : i32, i32
  }
  func.func @transform_6(%arg0: i32) -> (i32, i32) {
    %c0_i32 = arith.constant 0 : i32
    %c0_i32_0 = arith.constant 0 : i32
    %c0_i32_1 = arith.constant 0 : i32
    return %c0_i32, %c0_i32_0 : i32, i32
  }
  func.func @transform_7(%arg0: i32) -> (i32, i32) {
    %c0_i32 = arith.constant 0 : i32
    %c0_i32_0 = arith.constant 0 : i32
    %c0_i32_1 = arith.constant 0 : i32
    return %c0_i32, %c0_i32_0 : i32, i32
  }
}

</mosaic_0001>

<bundles_post_ra>
// kernel: seq2seq_forward.2
= control target key start
LH: loop header
LB: loop body
LE: loop exit
PB: predicated region body
PF: predicated region fallthrough
CT: control target
= control target key end

     0   :  { %9 = vsyncpa [#allocation4], 0  ;;  %s3238_s0 = inlined_call_operand.vmem [shape: f32[64,128], index: 0, kind: input, shape index: {}]   ;;  %s3239_s1 = inlined_call_operand.hbm [shape: f32[128,512], index: 1, kind: input, shape index: {}]   ;;  %s3240_s2 = inlined_call_operand.hbm [shape: f32[128,512], index: 2, kind: input, shape index: {}]   ;;  %s3241_s3 = inlined_call_operand.vmem [shape: f32[1,512], index: 3, kind: input, shape index: {}]   ;;  %s3242_s4 = inlined_call_operand.vmem [shape: f32[8,128], index: 4, kind: output, shape index: {}]  }
   0x1   :  { %10 = vsyncpa [#allocation6], 0  ;;  %s2736_s15 = smov [#allocation3]   ;;  %s2688_s19 = scalar_lea.hbm %s3239_s1, 8192 }
   0x2   :  { %s18_s16 = sshll.u32 %s2736_s15, 4  ;;  %p2689_p0 = scmp.ne.s32.totalorder %s3239_s1, %s2688_s19  ;;  %s19_s16 = int_to_ptr.vmem [resolvable:$true] %s18_s16 }
   0x3   :  { %p2692_p1 = scmp.lt.u32.totalorder %s2688_s19, %s3239_s1 }
   0x5   :  { %p2694_p2 = pnand %p2692_p1, %p2689_p0 }
   0x7   :  { %2697 = shalt.err (!%p2694_p2)
}
   0x8   :  { %s2698_s24 = scalar_lea.vmem %s19_s16, 8192  ;;  %p2703_p4 = scmp.lt.s32.totalorder %s19_s16, %s19_s16 }
   0x9   :  { %p2699_p3 = scmp.ne.s32.totalorder %s19_s16, %s2698_s24  ;;  %p2704_p5 = scmp.lt.s32.totalorder %s2698_s24, %s2698_s24 }
   0xb   :  { %p2705_p6 = por %p2704_p5, %p2703_p4 }
   0xd   :  { %p2706_p7 = pnand %p2705_p6, %p2699_p3 }
   0xf   :  { %2709 = shalt.err (!%p2706_p7)
}
  0x10   :  { %s2737_s25 = smov 512   ;;  %s2738_s26 = smov 32  }
  0x11   :  { %24 = dma.hbm_to_vmem [thread:$0]  %s3239_s1, 8192, %s19_s16, [#allocation4], %s2737_s25, %s2737_s25, %s2738_s26  }
  0x12   :  { %s2739_s29 = smov [#allocation5]   ;;  %s2710_s7 = scalar_lea.hbm %s3240_s2, 8192 }
  0x13   :  { %s30_s30 = sshll.u32 %s2739_s29, 4  ;;  %p2711_p8 = scmp.ne.s32.totalorder %s3240_s2, %s2710_s7  ;;  %s31_s30 = int_to_ptr.vmem [resolvable:$true] %s30_s30 }
  0x14   :  { %p2714_p9 = scmp.lt.u32.totalorder %s2710_s7, %s3240_s2 }
  0x16   :  { %p2716_p10 = pnand %p2714_p9, %p2711_p8 }
  0x18   :  { %2719 = shalt.err (!%p2716_p10)
}
  0x19   :  { %s2720_s12 = scalar_lea.vmem %s31_s30, 8192  ;;  %p2725_p12 = scmp.lt.s32.totalorder %s31_s30, %s31_s30 }
  0x1a   :  { %p2721_p11 = scmp.ne.s32.totalorder %s31_s30, %s2720_s12  ;;  %p2726_p13 = scmp.lt.s32.totalorder %s2720_s12, %s2720_s12 }
  0x1c   :  { %p2727_p0 = por %p2726_p13, %p2725_p12 }
  0x1e   :  { %p2728_p1 = pnand %p2727_p0, %p2721_p11 }
  0x20   :  { %2731 = shalt.err (!%p2728_p1)
}
  0x21   :  { %36 = dma.hbm_to_vmem [thread:$0]  %s3240_s2, 8192, %s31_s30, [#allocation6], %s2737_s25, %s2737_s25, %s2738_s26  }
  0x22   :  { %2732 = dma.done.wait [#allocation4], 8192  }
  0x23   :  { %2733 = vsyncadd [#allocation4], 4294959104 }
  0x24   :  { %2734 = dma.done.wait [#allocation6], 8192  }
  0x25   :  { %2735 = vsyncadd [#allocation6], 4294959104  ;;  %v2740_v0 = vmov 0.0   ;;  %v54_v1 = vld [vmem:[#allocation3 + $0x8] sm:$0xff]  ;;  %v56_v3 = vld [vmem:[#allocation3 + $0x18] sm:$0xff] }
  0x26   :  { %203 = vmatprep.mubr.f32.mxu0 %v2740_v0  ;;  %316 = vmatprep.mubr.f32.mxu1 %v2740_v0  ;;  %v58_v2 = vld [vmem:[#allocation3 + $0x28] sm:$0xff]  ;;  %v60_v5 = vld [vmem:[#allocation3 + $0x38] sm:$0xff]  ;;  %v53_v6 = vld [vmem:[#allocation3] sm:$0xff] }
  0x27   :  { %v1915_v4 = vpack.c.bf16 %v58_v2, %v54_v1  ;;  %v57_v7 = vld [vmem:[#allocation3 + $0x20] sm:$0xff]  ;;  %v1947_v8 = vpack.c.bf16 %v60_v5, %v56_v3  ;;  %v55_v10 = vld [vmem:[#allocation3 + $0x10] sm:$0xff]  ;;  %v62_v12 = vld [vmem:[#allocation3 + $0x48] sm:$0xff] }
  0x28   :  { %v1917_v9 = vpack.c.bf16 %v57_v7, %v53_v6  ;;  %v59_v11 = vld [vmem:[#allocation3 + $0x30] sm:$0xff]  ;;  %v66_v14 = vld [vmem:[#allocation3 + $0x68] sm:$0xff]  ;;  %v64_v15 = vld [vmem:[#allocation3 + $0x58] sm:$0xff] }
  0x29   :  { %1916 = vmatprep.subr.bf16.mxu0 %v1915_v4  ;;  %v1949_v13 = vpack.c.bf16 %v59_v11, %v55_v10  ;;  %v68_v16 = vld [vmem:[#allocation3 + $0x78] sm:$0xff]  ;;  %1948 = vmatprep.subr.bf16.mxu1 %v1947_v8  ;;  %v1919_v17 = vpack.c.bf16 %v66_v14, %v62_v12  ;;  %v61_v19 = vld [vmem:[#allocation3 + $0x40] sm:$0xff]  ;;  %v63_v21 = vld [vmem:[#allocation3 + $0x50] sm:$0xff] }
  0x2a   :  { %1918 = vmatpush1.bf16.msra.mxu0 %v1917_v9  ;;  %v1951_v18 = vpack.c.bf16 %v68_v16, %v64_v15  ;;  %v65_v20 = vld [vmem:[#allocation3 + $0x60] sm:$0xff]  ;;  %v67_v23 = vld [vmem:[#allocation3 + $0x70] sm:$0xff]  ;;  %v70_v24 = vld [vmem:[#allocation3 + $0x88] sm:$0xff] }
  0x2b   :  { %1950 = vmatpush1.bf16.msra.mxu1 %v1949_v13  ;;  %v1921_v22 = vpack.c.bf16 %v65_v20, %v61_v19  ;;  %v74_v25 = vld [vmem:[#allocation3 + $0xa8] sm:$0xff]  ;;  %1920 = vmatprep.subr.bf16.mxu0 %v1919_v17  ;;  %v1953_v26 = vpack.c.bf16 %v67_v23, %v63_v21  ;;  %v72_v28 = vld [vmem:[#allocation3 + $0x98] sm:$0xff]  ;;  %v69_v30 = vld [vmem:[#allocation3 + $0x80] sm:$0xff] }
  0x2c   :  { %1952 = vmatprep.subr.bf16.mxu1 %v1951_v18  ;;  %v1923_v27 = vpack.c.bf16 %v74_v25, %v70_v24  ;;  %v76_v29 = vld [vmem:[#allocation3 + $0xb8] sm:$0xff]  ;;  %v73_v32 = vld [vmem:[#allocation3 + $0xa0] sm:$0xff]  ;;  %v71_v33 = vld [vmem:[#allocation3 + $0x90] sm:$0xff] }
  0x2d   :  { %v1955_v31 = vpack.c.bf16 %v76_v29, %v72_v28  ;;  %v75_v34 = vld [vmem:[#allocation3 + $0xb0] sm:$0xff]  ;;  %v1925_v35 = vpack.c.bf16 %v73_v32, %v69_v30  ;;  %v78_v36 = vld [vmem:[#allocation3 + $0xc8] sm:$0xff]  ;;  %v80_v38 = vld [vmem:[#allocation3 + $0xd8] sm:$0xff] }
  0x2e   :  { %1922 = vmatpush1.bf16.msra.mxu0 %v1921_v22  ;;  %v82_v37 = vld [vmem:[#allocation3 + $0xe8] sm:$0xff]  ;;  %v1957_v39 = vpack.c.bf16 %v75_v34, %v71_v33  ;;  %v84_v41 = vld [vmem:[#allocation3 + $0xf8] sm:$0xff]  ;;  %v77_v42 = vld [vmem:[#allocation3 + $0xc0] sm:$0xff] }
  0x2f   :  { %1954 = vmatpush1.bf16.msra.mxu1 %v1953_v26  ;;  %1924 = vmatprep.subr.bf16.mxu0 %v1923_v27  ;;  %v1927_v40 = vpack.c.bf16 %v82_v37, %v78_v36  ;;  %v81_v43 = vld [vmem:[#allocation3 + $0xe0] sm:$0xff]  ;;  %v1959_v44 = vpack.c.bf16 %v84_v41, %v80_v38  ;;  %v79_v45 = vld [vmem:[#allocation3 + $0xd0] sm:$0xff]  ;;  %v86_v47 = vld [vmem:[#allocation3 + $0x108] sm:$0xff] }
  0x30   :  { %1956 = vmatprep.subr.bf16.mxu1 %v1955_v31  ;;  %v83_v46 = vld [vmem:[#allocation3 + $0xf0] sm:$0xff]  ;;  %v90_v48 = vld [vmem:[#allocation3 + $0x128] sm:$0xff]  ;;  %v88_v49 = vld [vmem:[#allocation3 + $0x118] sm:$0xff]  ;;  %v1929_v51 = vpack.c.bf16 %v81_v43, %v77_v42 }
  0x31   :  { %v92_v50 = vld [vmem:[#allocation3 + $0x138] sm:$0xff]  ;;  %v1961_v52 = vpack.c.bf16 %v83_v46, %v79_v45  ;;  %v1931_v53 = vpack.c.bf16 %v90_v48, %v86_v47  ;;  %v85_v54 = vld [vmem:[#allocation3 + $0x100] sm:$0xff]  ;;  %v87_v56 = vld [vmem:[#allocation3 + $0x110] sm:$0xff] }
  0x32   :  { %1926 = vmatpush1.bf16.msra.mxu0 %v1925_v35  ;;  %v89_v55 = vld [vmem:[#allocation3 + $0x120] sm:$0xff]  ;;  %v1963_v57 = vpack.c.bf16 %v92_v50, %v88_v49  ;;  %v91_v58 = vld [vmem:[#allocation3 + $0x130] sm:$0xff]  ;;  %v94_v59 = vld [vmem:[#allocation3 + $0x148] sm:$0xff] }
  0x33   :  { %1958 = vmatpush1.bf16.msra.mxu1 %v1957_v39  ;;  %1928 = vmatprep.subr.bf16.mxu0 %v1927_v40  ;;  %v98_v60 = vld [vmem:[#allocation3 + $0x168] sm:$0xff]  ;;  %v96_v61 = vld [vmem:[#allocation3 + $0x158] sm:$0xff]  ;;  %v1933_v63 = vpack.c.bf16 %v89_v55, %v85_v54  ;;  %v1965_v1 = vpack.c.bf16 %v91_v58, %v87_v56  ;;  %v93_v3 = vld [vmem:[#allocation3 + $0x140] sm:$0xff] }
  0x34   :  { %1960 = vmatprep.subr.bf16.mxu1 %v1959_v44  ;;  %v100_v62 = vld [vmem:[#allocation3 + $0x178] sm:$0xff]  ;;  %v1935_v2 = vpack.c.bf16 %v98_v60, %v94_v59  ;;  %v97_v4 = vld [vmem:[#allocation3 + $0x160] sm:$0xff]  ;;  %v95_v5 = vld [vmem:[#allocation3 + $0x150] sm:$0xff] }
  0x35   :  { %v1967_v6 = vpack.c.bf16 %v100_v62, %v96_v61  ;;  %v99_v7 = vld [vmem:[#allocation3 + $0x170] sm:$0xff]  ;;  %v102_v8 = vld [vmem:[#allocation3 + $0x188] sm:$0xff]  ;;  %v104_v10 = vld [vmem:[#allocation3 + $0x198] sm:$0xff]  ;;  %v1937_v12 = vpack.c.bf16 %v97_v4, %v93_v3 }
  0x36   :  { %1930 = vmatpush1.bf16.msra.mxu0 %v1929_v51  ;;  %v106_v9 = vld [vmem:[#allocation3 + $0x1a8] sm:$0xff]  ;;  %v108_v11 = vld [vmem:[#allocation3 + $0x1b8] sm:$0xff]  ;;  %v1969_v13 = vpack.c.bf16 %v99_v7, %v95_v5  ;;  %v101_v15 = vld [vmem:[#allocation3 + $0x180] sm:$0xff] }
  0x37   :  { %1962 = vmatpush1.bf16.msra.mxu1 %v1961_v52  ;;  %1932 = vmatprep.subr.bf16.mxu0 %v1931_v53  ;;  %v1939_v14 = vpack.c.bf16 %v106_v9, %v102_v8  ;;  %v105_v16 = vld [vmem:[#allocation3 + $0x1a0] sm:$0xff]  ;;  %v103_v17 = vld [vmem:[#allocation3 + $0x190] sm:$0xff]  ;;  %v1971_v18 = vpack.c.bf16 %v108_v11, %v104_v10  ;;  %v110_v20 = vld [vmem:[#allocation3 + $0x1c8] sm:$0xff] }
  0x38   :  { %1964 = vmatprep.subr.bf16.mxu1 %v1963_v57  ;;  %v107_v19 = vld [vmem:[#allocation3 + $0x1b0] sm:$0xff]  ;;  %v114_v21 = vld [vmem:[#allocation3 + $0x1e8] sm:$0xff]  ;;  %v112_v22 = vld [vmem:[#allocation3 + $0x1d8] sm:$0xff]  ;;  %v1941_v24 = vpack.c.bf16 %v105_v16, %v101_v15 }
  0x39   :  { %v116_v23 = vld [vmem:[#allocation3 + $0x1f8] sm:$0xff]  ;;  %v1973_v25 = vpack.c.bf16 %v107_v19, %v103_v17  ;;  %v1943_v26 = vpack.c.bf16 %v114_v21, %v110_v20  ;;  %v109_v27 = vld [vmem:[#allocation3 + $0x1c0] sm:$0xff]  ;;  %v111_v29 = vld [vmem:[#allocation3 + $0x1d0] sm:$0xff] }
  0x3a   :  { %1934 = vmatpush1.bf16.msra.mxu0 %v1933_v63  ;;  %v113_v28 = vld [vmem:[#allocation3 + $0x1e0] sm:$0xff]  ;;  %v1975_v30 = vpack.c.bf16 %v116_v23, %v112_v22  ;;  %v115_v31 = vld [vmem:[#allocation3 + $0x1f0] sm:$0xff]  ;;  %v398_v32 = vld [vmem:[#allocation5 + $0x8] sm:$0xff] }
  0x3b   :  { %1966 = vmatpush1.bf16.msra.mxu1 %v1965_v1  ;;  %1936 = vmatprep.subr.bf16.mxu0 %v1935_v2  ;;  %v402_v33 = vld [vmem:[#allocation5 + $0x28] sm:$0xff]  ;;  %v400_v34 = vld [vmem:[#allocation5 + $0x18] sm:$0xff]  ;;  %v1945_v36 = vpack.c.bf16 %v113_v28, %v109_v27  ;;  %v1977_v37 = vpack.c.bf16 %v115_v31, %v111_v29  ;;  %v397_v39 = vld [vmem:[#allocation5] sm:$0xff] }
  0x3c   :  { %1968 = vmatprep.subr.bf16.mxu1 %v1967_v6  ;;  %v404_v35 = vld [vmem:[#allocation5 + $0x38] sm:$0xff]  ;;  %v2792_v38 = vpack.c.bf16 %v402_v33, %v398_v32  ;;  %v401_v40 = vld [vmem:[#allocation5 + $0x20] sm:$0xff]  ;;  %v399_v42 = vld [vmem:[#allocation5 + $0x10] sm:$0xff] }
  0x3d   :  { %v2794_v41 = vpack.c.bf16 %v404_v35, %v400_v34  ;;  %v403_v43 = vld [vmem:[#allocation5 + $0x30] sm:$0xff]  ;;  %v406_v44 = vld [vmem:[#allocation5 + $0x48] sm:$0xff]  ;;  %v45_v46 = vld [vmem:[%s3238_s0] sm:$0xff]  ;;  %v2799_v47 = vpack.c.bf16 %v401_v40, %v397_v39 }
  0x3e   :  { %1938 = vmatpush1.bf16.msra.mxu0 %v1937_v12  ;;  %v410_v45 = vld [vmem:[#allocation5 + $0x68] sm:$0xff]  ;;  %v408_v48 = vld [vmem:[#allocation5 + $0x58] sm:$0xff]  ;;  %v2802_v50 = vpack.c.bf16 %v403_v43, %v399_v42  ;;  %v405_v51 = vld [vmem:[#allocation5 + $0x40] sm:$0xff] }
  0x3f   :  { %1970 = vmatpush1.bf16.msra.mxu1 %v1969_v13  ;;  %1940 = vmatprep.subr.bf16.mxu0 %v1939_v14  ;;  %v412_v49 = vld [vmem:[#allocation5 + $0x78] sm:$0xff]  ;;  %v409_v52 = vld [vmem:[#allocation5 + $0x60] sm:$0xff]  ;;  %v2805_v53 = vpack.c.bf16 %v410_v45, %v406_v44  ;;  %v407_v54 = vld [vmem:[#allocation5 + $0x50] sm:$0xff] }
  0x40   :  { %1972 = vmatprep.subr.bf16.mxu1 %v1971_v18  ;;  %v411_v55 = vld [vmem:[#allocation5 + $0x70] sm:$0xff]  ;;  %v2807_v56 = vpack.c.bf16 %v412_v49, %v408_v48  ;;  %v414_v57 = vld [vmem:[#allocation5 + $0x88] sm:$0xff]  ;;  %v2813_v60 = vpack.c.bf16 %v409_v52, %v405_v51  ;;  %v416_v61 = vld [vmem:[#allocation5 + $0x98] sm:$0xff] }
  0x41   :  { %v418_v58 = vld [vmem:[#allocation5 + $0xa8] sm:$0xff]  ;;  %v420_v62 = vld [vmem:[#allocation5 + $0xb8] sm:$0xff]  ;;  %v2817_v63 = vpack.c.bf16 %v411_v55, %v407_v54  ;;  %v413_v1 = vld [vmem:[#allocation5 + $0x80] sm:$0xff] }
  0x42   :  { %1942 = vmatpush1.bf16.msra.mxu0 %v1941_v24  ;;  %v46_v59 = vld [vmem:[%s3238_s0 + $0x8] sm:$0xff]  ;;  %v417_v2 = vld [vmem:[#allocation5 + $0xa0] sm:$0xff]  ;;  %v2821_v3 = vpack.c.bf16 %v418_v58, %v414_v57  ;;  %v415_v4 = vld [vmem:[#allocation5 + $0x90] sm:$0xff]  ;;  %v2824_v6 = vpack.c.bf16 %v420_v62, %v416_v61 }
  0x43   :  { %1974 = vmatpush1.bf16.msra.mxu1 %v1973_v25  ;;  %1944 = vmatprep.subr.bf16.mxu0 %v1943_v26  ;;  %v419_v5 = vld [vmem:[#allocation5 + $0xb0] sm:$0xff]  ;;  %v422_v7 = vld [vmem:[#allocation5 + $0xc8] sm:$0xff]  ;;  %v2830_v10 = vpack.c.bf16 %v417_v2, %v413_v1  ;;  %v424_v11 = vld [vmem:[#allocation5 + $0xd8] sm:$0xff] }
  0x44   :  { %1976 = vmatprep.subr.bf16.mxu1 %v1975_v30  ;;  %v426_v8 = vld [vmem:[#allocation5 + $0xe8] sm:$0xff]  ;;  %v47_v9 = vld [vmem:[%s3238_s0 + $0x10] sm:$0xff]  ;;  %v428_v12 = vld [vmem:[#allocation5 + $0xf8] sm:$0xff]  ;;  %v2834_v13 = vpack.c.bf16 %v419_v5, %v415_v4 }
  0x45   :  { %v421_v14 = vld [vmem:[#allocation5 + $0xc0] sm:$0xff]  ;;  %v2838_v16 = vpack.c.bf16 %v426_v8, %v422_v7  ;;  %v423_v17 = vld [vmem:[#allocation5 + $0xd0] sm:$0xff]  ;;  %v2841_v19 = vpack.c.bf16 %v428_v12, %v424_v11  ;;  %v430_v20 = vld [vmem:[#allocation5 + $0x108] sm:$0xff] }
  0x46   :  { %1946 = vmatpush1.bf16.msra.mxu0 %v1945_v36  ;;  %v425_v15 = vld [vmem:[#allocation5 + $0xe0] sm:$0xff]  ;;  %v427_v18 = vld [vmem:[#allocation5 + $0xf0] sm:$0xff]  ;;  %v434_v21 = vld [vmem:[#allocation5 + $0x128] sm:$0xff] }
  0x47   :  { %1978 = vmatpush1.bf16.msra.mxu1 %v1977_v37  ;;  %1980 = vmatprep.subr.bf16.mxu0 %v2792_v38  ;;  %v48_v22 = vld [vmem:[%s3238_s0 + $0x18] sm:$0xff]  ;;  %v2847_v23 = vpack.c.bf16 %v425_v15, %v421_v14  ;;  %v2851_v26 = vpack.c.bf16 %v427_v18, %v423_v17  ;;  %v429_v27 = vld [vmem:[#allocation5 + $0x100] sm:$0xff]  ;;  %v2855_v29 = vpack.c.bf16 %v434_v21, %v430_v20  ;;  %v431_v30 = vld [vmem:[#allocation5 + $0x110] sm:$0xff] }
  0x48   :  { %2012 = vmatprep.subr.bf16.mxu1 %v2794_v41  ;;  %v432_v24 = vld [vmem:[#allocation5 + $0x118] sm:$0xff]  ;;  %v433_v28 = vld [vmem:[#allocation5 + $0x120] sm:$0xff]  ;;  %v435_v31 = vld [vmem:[#allocation5 + $0x130] sm:$0xff] }
  0x49   :  { %204 = vmatmul.mubr.f32.vlgmr.msra.gmra.mrb[0].mxu0 %v45_v46  ;;  %v436_v25 = vld [vmem:[#allocation5 + $0x138] sm:$0xff]  ;;  %v438_v33 = vld [vmem:[#allocation5 + $0x148] sm:$0xff]  ;;  %v49_v35 = vld [vmem:[%s3238_s0 + $0x20] sm:$0xff]  ;;  %v2864_v36 = vpack.c.bf16 %v433_v28, %v429_v27  ;;  %v2868_v40 = vpack.c.bf16 %v435_v31, %v431_v30  ;;  %v119_v28 = vlaneseq }
  0x4a   :  { %317 = vmatmul.mubr.f32.vlgmr.msra.gmra.mrb[0].mxu1 %v45_v46  ;;  %1982 = vmatpush1.bf16.msra.mxu0 %v2799_v47  ;;  %v2858_v32 = vpack.c.bf16 %v436_v25, %v432_v24  ;;  %v442_v34 = vld [vmem:[#allocation5 + $0x168] sm:$0xff]  ;;  %v440_v37 = vld [vmem:[#allocation5 + $0x158] sm:$0xff]  ;;  %v437_v42 = vld [vmem:[#allocation5 + $0x140] sm:$0xff] }
  0x4b   :  { %2014 = vmatpush1.bf16.msra.mxu1 %v2802_v50  ;;  %209 = vmatprep.mubr.f32.mxu0 %v2740_v0  ;;  %v444_v39 = vld [vmem:[#allocation5 + $0x178] sm:$0xff]  ;;  %v441_v43 = vld [vmem:[#allocation5 + $0x160] sm:$0xff]  ;;  %v2872_v44 = vpack.c.bf16 %v442_v34, %v438_v33  ;;  %v439_v45 = vld [vmem:[#allocation5 + $0x150] sm:$0xff]  ;;  %v120_v30 = vshrl.u32 %v119_v28, 7 }
  0x4c   :  { %322 = vmatprep.mubr.f32.mxu1 %v2740_v0  ;;  %1984 = vmatprep.subr.bf16.mxu0 %v2805_v53  ;;  %v443_v46 = vld [vmem:[#allocation5 + $0x170] sm:$0xff]  ;;  %v2875_v48 = vpack.c.bf16 %v444_v39, %v440_v37  ;;  %v446_v49 = vld [vmem:[#allocation5 + $0x188] sm:$0xff]  ;;  %v2881_v54 = vpack.c.bf16 %v441_v43, %v437_v42  ;;  %v448_v55 = vld [vmem:[#allocation5 + $0x198] sm:$0xff] }
  0x4d   :  { %210 = vmatmul.mubr.f32.gmra.mrb[2].mxu0 %v46_v59  ;;  %2016 = vmatprep.subr.bf16.mxu1 %v2807_v56  ;;  %v450_v51 = vld [vmem:[#allocation5 + $0x1a8] sm:$0xff]  ;;  %v452_v57 = vld [vmem:[#allocation5 + $0x1b8] sm:$0xff]  ;;  %v2885_v58 = vpack.c.bf16 %v443_v46, %v439_v45  ;;  %v449_v61 = vld [vmem:[#allocation5 + $0x1a0] sm:$0xff]  ;;  %v121_v31 = vsub.s32 0, %v120_v30  ;;  %v125_v34 = vsub.s32 1, %v120_v30  ;;  %v133_v42 = vsub.s32 3, %v120_v30 }
  0x4e   :  { %323 = vmatmul.mubr.f32.gmra.mrb[2].mxu1 %v46_v59  ;;  %1986 = vmatpush1.bf16.msra.mxu0 %v2813_v60  ;;  %v50_v52 = vld [vmem:[%s3238_s0 + $0x28] sm:$0xff]  ;;  %v445_v59 = vld [vmem:[#allocation5 + $0x180] sm:$0xff]  ;;  %v2889_v62 = vpack.c.bf16 %v450_v51, %v446_v49  ;;  %v447_v1 = vld [vmem:[#allocation5 + $0x190] sm:$0xff]  ;;  %v2892_v4 = vpack.c.bf16 %v452_v57, %v448_v55 }
  0x4f   :  { %2018 = vmatpush1.bf16.msra.mxu1 %v2817_v63  ;;  %215 = vmatprep.mubr.f32.mxu0 %v2740_v0  ;;  %v451_v2 = vld [vmem:[#allocation5 + $0x1b0] sm:$0xff]  ;;  %v454_v5 = vld [vmem:[#allocation5 + $0x1c8] sm:$0xff]  ;;  %v456_v11 = vld [vmem:[#allocation5 + $0x1d8] sm:$0xff] }
  0x50   :  { %328 = vmatprep.mubr.f32.mxu1 %v2740_v0  ;;  %1988 = vmatprep.subr.bf16.mxu0 %v2821_v3  ;;  %v458_v7 = vld [vmem:[#allocation5 + $0x1e8] sm:$0xff]  ;;  %v51_v8 = vld [vmem:[%s3238_s0 + $0x30] sm:$0xff]  ;;  %v460_v12 = vld [vmem:[#allocation5 + $0x1f8] sm:$0xff]  ;;  %v2902_v14 = vpack.c.bf16 %v451_v2, %v447_v1 }
  0x51   :  { %216 = vmatmul.mubr.f32.gmra.mrb[4].mxu0 %v47_v9  ;;  %2020 = vmatprep.subr.bf16.mxu1 %v2824_v6  ;;  %v453_v15 = vld [vmem:[#allocation5 + $0x1c0] sm:$0xff]  ;;  %v2906_v18 = vpack.c.bf16 %v458_v7, %v454_v5  ;;  %v455_v20 = vld [vmem:[#allocation5 + $0x1d0] sm:$0xff]  ;;  %v52_v24 = vld [vmem:[%s3238_s0 + $0x38] sm:$0xff] }
  0x52   :  { %329 = vmatmul.mubr.f32.gmra.mrb[4].mxu1 %v47_v9  ;;  %1990 = vmatpush1.bf16.msra.mxu0 %v2830_v10  ;;  %v2898_v9 = vpack.c.bf16 %v449_v61, %v445_v59  ;;  %v457_v17 = vld [vmem:[#allocation5 + $0x1e0] sm:$0xff]  ;;  %v459_v21 = vld [vmem:[#allocation5 + $0x1f0] sm:$0xff]  ;;  %v129_v59 = vsub.s32 2, %v120_v30 }
  0x53   :  { %2022 = vmatpush1.bf16.msra.mxu1 %v2834_v13  ;;  %221 = vmatprep.mubr.f32.mxu0 %v2740_v0  ;;  %v2915_v25 = vpack.c.bf16 %v457_v17, %v453_v15  ;;  %v2919_v27 = vpack.c.bf16 %v459_v21, %v455_v20  ;;  %v117_v33 = vld [vmem:[%s3241_s3] sm:$0xf] }
  0x54   :  { %334 = vmatprep.mubr.f32.mxu1 %v2740_v0  ;;  %1992 = vmatprep.subr.bf16.mxu0 %v2838_v16  ;;  %v2971_v37 = vrot.slane %v117_v33, %v125_v34  ;;  %v2975_v57 = vrot.slane %v117_v33, %v133_v42  ;;  %v2978_v1 = vrot.slane %v117_v33, %v129_v59 }
  0x55   :  { %222 = vmatmul.mubr.f32.gmra.mrb[6].mxu0 %v48_v22  ;;  %2024 = vmatprep.subr.bf16.mxu1 %v2841_v19 }
  0x56   :  { %335 = vmatmul.mubr.f32.gmra.mrb[6].mxu1 %v48_v22  ;;  %1994 = vmatpush1.bf16.msra.mxu0 %v2847_v23  ;;  %v2909_v22 = vpack.c.bf16 %v460_v12, %v456_v11 }
  0x57   :  { %2026 = vmatpush1.bf16.msra.mxu1 %v2851_v26  ;;  %227 = vmatprep.mubr.f32.mxu0 %v2740_v0 }
  0x58   :  { %340 = vmatprep.mubr.f32.mxu1 %v2740_v0  ;;  %1996 = vmatprep.subr.bf16.mxu0 %v2855_v29 }
  0x59   :  { %228 = vmatmul.mubr.f32.gmra.mrb[8].mxu0 %v49_v35  ;;  %2028 = vmatprep.subr.bf16.mxu1 %v2858_v32 }
  0x5a   :  { %341 = vmatmul.mubr.f32.gmra.mrb[8].mxu1 %v49_v35  ;;  %1998 = vmatpush1.bf16.msra.mxu0 %v2864_v36  ;;  %v2969_v35 = vrot.slane %v117_v33, %v121_v31 }
  0x5b   :  { %2030 = vmatpush1.bf16.msra.mxu1 %v2868_v40  ;;  %233 = vmatprep.mubr.f32.mxu0 %v2740_v0 }
  0x5c   :  { %346 = vmatprep.mubr.f32.mxu1 %v2740_v0  ;;  %2000 = vmatprep.subr.bf16.mxu0 %v2872_v44 }
  0x5d   :  { %234 = vmatmul.mubr.f32.gmra.mrb[10].mxu0 %v50_v52  ;;  %2032 = vmatprep.subr.bf16.mxu1 %v2875_v48 }
  0x5e   :  { %347 = vmatmul.mubr.f32.gmra.mrb[10].mxu1 %v50_v52  ;;  %2002 = vmatpush1.bf16.msra.mxu0 %v2881_v54 }
  0x5f   :  { %2034 = vmatpush1.bf16.msra.mxu1 %v2885_v58  ;;  %239 = vmatprep.mubr.f32.mxu0 %v2740_v0 }
  0x60   :  { %352 = vmatprep.mubr.f32.mxu1 %v2740_v0  ;;  %2004 = vmatprep.subr.bf16.mxu0 %v2889_v62 }
  0x61   :  { %240 = vmatmul.mubr.f32.gmra.mrb[12].mxu0 %v51_v8  ;;  %2036 = vmatprep.subr.bf16.mxu1 %v2892_v4 }
  0x62   :  { %353 = vmatmul.mubr.f32.gmra.mrb[12].mxu1 %v51_v8  ;;  %2006 = vmatpush1.bf16.msra.mxu0 %v2898_v9 }
  0x63   :  { %2038 = vmatpush1.bf16.msra.mxu1 %v2902_v14  ;;  %245 = vmatprep.mubr.f32.mxu0 %v2740_v0 }
  0x64   :  { %358 = vmatprep.mubr.f32.mxu1 %v2740_v0  ;;  %2008 = vmatprep.subr.bf16.mxu0 %v2906_v18 }
  0x65   :  { %246 = vmatmul.mubr.f32.gmra.mrb[14].mxu0 %v52_v24  ;;  %2040 = vmatprep.subr.bf16.mxu1 %v2909_v22 }
  0x66   :  { %359 = vmatmul.mubr.f32.gmra.mrb[14].mxu1 %v52_v24  ;;  %2010 = vmatpush1.bf16.msra.mxu0 %v2915_v25 }
  0x67   :  { %2042 = vmatpush1.bf16.msra.mxu1 %v2919_v27  ;;  %532 = vmatprep.mubr.f32.mxu0 %v2740_v0 }
  0x68   :  { %603 = vmatprep.mubr.f32.mxu1 %v2740_v0  ;;  %2044 = vmatprep.subr.bf16.mxu0 %v2792_v38 }
  0x69   :  { %533 = vmatmul.mubr.f32.vlgmr.msra.gmra.mrb[0].mxu0 %v2740_v0  ;;  %2076 = vmatprep.subr.bf16.mxu1 %v2794_v41 }
  0x6a   :  { %604 = vmatmul.mubr.f32.vlgmr.msra.gmra.mrb[0].mxu1 %v2740_v0  ;;  %2046 = vmatpush1.bf16.msra.mxu0 %v2799_v47 }
  0x6b   :  { %2078 = vmatpush1.bf16.msra.mxu1 %v2802_v50  ;;  %2048 = vmatprep.subr.bf16.mxu0 %v2805_v53 }
  0x6c   :  { %2080 = vmatprep.subr.bf16.mxu1 %v2807_v56  ;;  %709 = vmatprep.mubr.f32.mxu0 %v2740_v0 }
  0x6d   :  { %780 = vmatprep.mubr.f32.mxu1 %v2740_v0 }
  0x6e   :  { %2050 = vmatpush1.bf16.msra.mxu0 %v2813_v60 }
  0x6f   :  { %2082 = vmatpush1.bf16.msra.mxu1 %v2817_v63  ;;  %2052 = vmatprep.subr.bf16.mxu0 %v2821_v3 }
  0x70   :  { %2084 = vmatprep.subr.bf16.mxu1 %v2824_v6 }
  0x72   :  { %2054 = vmatpush1.bf16.msra.mxu0 %v2830_v10 }
  0x73   :  { %2086 = vmatpush1.bf16.msra.mxu1 %v2834_v13  ;;  %2056 = vmatprep.subr.bf16.mxu0 %v2838_v16 }
  0x74   :  { %2088 = vmatprep.subr.bf16.mxu1 %v2841_v19 }
  0x76   :  { %2058 = vmatpush1.bf16.msra.mxu0 %v2847_v23 }
  0x77   :  { %2090 = vmatpush1.bf16.msra.mxu1 %v2851_v26  ;;  %2060 = vmatprep.subr.bf16.mxu0 %v2855_v29 }
  0x78   :  { %2092 = vmatprep.subr.bf16.mxu1 %v2858_v32 }
  0x7a   :  { %2062 = vmatpush1.bf16.msra.mxu0 %v2864_v36 }
  0x7b   :  { %2094 = vmatpush1.bf16.msra.mxu1 %v2868_v40  ;;  %2064 = vmatprep.subr.bf16.mxu0 %v2872_v44 }
  0x7c   :  { %2096 = vmatprep.subr.bf16.mxu1 %v2875_v48 }
  0x7e   :  { %2066 = vmatpush1.bf16.msra.mxu0 %v2881_v54 }
  0x7f   :  { %2098 = vmatpush1.bf16.msra.mxu1 %v2885_v58  ;;  %2068 = vmatprep.subr.bf16.mxu0 %v2889_v62 }
  0x80   :  { %2100 = vmatprep.subr.bf16.mxu1 %v2892_v4 }
  0x82   :  { %2070 = vmatpush1.bf16.msra.mxu0 %v2898_v9 }
  0x83   :  { %2102 = vmatpush1.bf16.msra.mxu1 %v2902_v14  ;;  %2072 = vmatprep.subr.bf16.mxu0 %v2906_v18 }
  0x84   :  { %2104 = vmatprep.subr.bf16.mxu1 %v2909_v22 }
  0x86   :  { %2074 = vmatpush1.bf16.msra.mxu0 %v2915_v25 }
  0x87   :  { %2106 = vmatpush1.bf16.msra.mxu1 %v2919_v27  ;;  %2108 = vmatprep.subr.bf16.mxu0 %v2792_v38 }
  0x88   :  { %2140 = vmatprep.subr.bf16.mxu1 %v2794_v41 }
 0x13c   :  { %v534_v39 = vpop.f32.mrb[0].mxu0 }
 0x13d   :  { %v2491_v43 = vadd.f32 %v534_v39, %v2969_v35  ;;  %v605_v45 = vpop.f32.mrb[0].mxu1  ;;  %v536_v46 = vpop.f32.mrb[1].mxu0 }
 0x13e   :  { %v2492_v49 = vadd.f32 %v536_v46, %v2971_v37  ;;  %v607_v51 = vpop.f32.mrb[1].mxu1  ;;  %v2507_v5 = vadd.f32 %v605_v45, %v2978_v1 }
 0x13f   :  { %v1891_v52 = vmul.f32 -1.442695, %v2491_v43  ;;  %v2508_v61 = vadd.f32 %v607_v51, %v2975_v57 }
 0x140   :  { %v1892_v55 = vmul.f32 -1.442695, %v2492_v49 }
 0x141   :  { %2560 = vpow2.f32 %v1891_v52  ;;  %v1893_v2 = vmul.f32 -1.442695, %v2508_v61 }
 0x142   :  { %2562 = vpow2.f32 %v1892_v55 }
 0x143   :  { %2564 = vpow2.f32 %v1893_v2 }
 0x144   :  { %2566 = vtanh.f32 %v2507_v5 }
 0x14b   :  { %v2561_v7 = vpop.eup %2560 }
 0x14c   :  { %v2563_v8 = vpop.eup %2562  ;;  %v617_v11 = vadd.f32 1.0, %v2561_v7 }
 0x14d   :  { %v623_v12 = vadd.f32 1.0, %v2563_v8  ;;  %v2565_v15 = vpop.eup %2564 }
 0x14e   :  { %2568 = vrcp.f32 %v617_v11  ;;  %v2567_v17 = vpop.eup %2566  ;;  %v630_v28 = vadd.f32 1.0, %v2565_v15 }
 0x14f   :  { %2570 = vrcp.f32 %v623_v12 }
 0x150   :  { %2572 = vrcp.f32 %v630_v28 }
 0x158   :  { %v2569_v20 = vpop.eup %2568 }
 0x159   :  { %v2571_v21 = vpop.eup %2570  ;;  %v634_v24 = vmul.f32 %v2569_v20, %v2567_v17 }
 0x15a   :  { %v633_v30 = vmul.f32 0.0, %v2571_v21  ;;  %v2573_v33 = vpop.eup %2572 }
 0x15c   :  { %v2981_v31 = vadd.f32 %v634_v24, %v633_v30 }
 0x15e   :  { %2574 = vtanh.f32 %v2981_v31 }
 0x168   :  { %v2575_v34 = vpop.eup %2574 }
 0x169   :  { %v637_v39 = vmul.f32 %v2575_v34, %v2573_v33 }
 0x16b   :  { %710 = vmatmul.mubr.f32.vlgmr.msra.gmra.mrb[2].mxu0 %v637_v39  ;;  %781 = vmatmul.mubr.f32.vlgmr.msra.gmra.mrb[2].mxu1 %v637_v39 }
 0x16c   :  { %2110 = vmatpush1.bf16.msra.mxu0 %v2799_v47  ;;  %2142 = vmatpush1.bf16.msra.mxu1 %v2802_v50 }
 0x16d   :  { %2112 = vmatprep.subr.bf16.mxu0 %v2805_v53  ;;  %2144 = vmatprep.subr.bf16.mxu1 %v2807_v56 }
 0x16e   :  { %886 = vmatprep.mubr.f32.mxu0 %v2740_v0  ;;  %957 = vmatprep.mubr.f32.mxu1 %v2740_v0 }
 0x170   :  { %2114 = vmatpush1.bf16.msra.mxu0 %v2813_v60  ;;  %2146 = vmatpush1.bf16.msra.mxu1 %v2817_v63 }
 0x171   :  { %2116 = vmatprep.subr.bf16.mxu0 %v2821_v3  ;;  %2148 = vmatprep.subr.bf16.mxu1 %v2824_v6 }
 0x174   :  { %2118 = vmatpush1.bf16.msra.mxu0 %v2830_v10  ;;  %2150 = vmatpush1.bf16.msra.mxu1 %v2834_v13 }
 0x175   :  { %2120 = vmatprep.subr.bf16.mxu0 %v2838_v16  ;;  %2152 = vmatprep.subr.bf16.mxu1 %v2841_v19 }
 0x178   :  { %2122 = vmatpush1.bf16.msra.mxu0 %v2847_v23  ;;  %2154 = vmatpush1.bf16.msra.mxu1 %v2851_v26 }
 0x179   :  { %2124 = vmatprep.subr.bf16.mxu0 %v2855_v29  ;;  %2156 = vmatprep.subr.bf16.mxu1 %v2858_v32 }
 0x17c   :  { %2126 = vmatpush1.bf16.msra.mxu0 %v2864_v36  ;;  %2158 = vmatpush1.bf16.msra.mxu1 %v2868_v40 }
 0x17d   :  { %2128 = vmatprep.subr.bf16.mxu0 %v2872_v44  ;;  %2160 = vmatprep.subr.bf16.mxu1 %v2875_v48 }
 0x180   :  { %2130 = vmatpush1.bf16.msra.mxu0 %v2881_v54  ;;  %2162 = vmatpush1.bf16.msra.mxu1 %v2885_v58 }
 0x181   :  { %2132 = vmatprep.subr.bf16.mxu0 %v2889_v62  ;;  %2164 = vmatprep.subr.bf16.mxu1 %v2892_v4 }
 0x184   :  { %2134 = vmatpush1.bf16.msra.mxu0 %v2898_v9  ;;  %2166 = vmatpush1.bf16.msra.mxu1 %v2902_v14 }
 0x185   :  { %2136 = vmatprep.subr.bf16.mxu0 %v2906_v18  ;;  %2168 = vmatprep.subr.bf16.mxu1 %v2909_v22 }
 0x188   :  { %2138 = vmatpush1.bf16.msra.mxu0 %v2915_v25  ;;  %2170 = vmatpush1.bf16.msra.mxu1 %v2919_v27 }
 0x189   :  { %2172 = vmatprep.subr.bf16.mxu0 %v2792_v38  ;;  %2204 = vmatprep.subr.bf16.mxu1 %v2794_v41 }
 0x23e   :  { %v711_v42 = vpop.f32.mrb[2].mxu0  ;;  %v782_v43 = vpop.f32.mrb[2].mxu1 }
 0x23f   :  { %v2493_v45 = vadd.f32 %v711_v42, %v2969_v35  ;;  %v713_v46 = vpop.f32.mrb[3].mxu0  ;;  %v784_v49 = vpop.f32.mrb[3].mxu1  ;;  %v2509_v2 = vadd.f32 %v782_v43, %v2978_v1 }
 0x240   :  { %v2494_v51 = vadd.f32 %v713_v46, %v2971_v37  ;;  %v2510_v59 = vadd.f32 %v784_v49, %v2975_v57 }
 0x241   :  { %v1894_v52 = vmul.f32 -1.442695, %v2493_v45 }
 0x242   :  { %v1895_v55 = vmul.f32 -1.442695, %v2494_v51  ;;  %v1896_v61 = vmul.f32 -1.442695, %v2510_v59 }
 0x243   :  { %2576 = vpow2.f32 %v1894_v52 }
 0x244   :  { %2578 = vpow2.f32 %v1895_v55 }
 0x245   :  { %2580 = vpow2.f32 %v1896_v61 }
 0x246   :  { %2582 = vtanh.f32 %v2509_v2 }
 0x24d   :  { %v2577_v5 = vpop.eup %2576 }
 0x24e   :  { %v2579_v7 = vpop.eup %2578  ;;  %v794_v8 = vadd.f32 1.0, %v2577_v5 }
 0x24f   :  { %v800_v11 = vadd.f32 1.0, %v2579_v7  ;;  %v2581_v12 = vpop.eup %2580 }
 0x250   :  { %2584 = vrcp.f32 %v794_v8  ;;  %v2583_v15 = vpop.eup %2582  ;;  %v807_v24 = vadd.f32 1.0, %v2581_v12 }
 0x251   :  { %2586 = vrcp.f32 %v800_v11 }
 0x252   :  { %2588 = vrcp.f32 %v807_v24 }
 0x25a   :  { %v2585_v17 = vpop.eup %2584 }
 0x25b   :  { %v2587_v20 = vpop.eup %2586  ;;  %v811_v21 = vmul.f32 %v2585_v17, %v2583_v15 }
 0x25c   :  { %v810_v28 = vmul.f32 %v2587_v20, %v2981_v31  ;;  %v2589_v33 = vpop.eup %2588 }
 0x25e   :  { %v3023_v30 = vadd.f32 %v811_v21, %v810_v28 }
 0x260   :  { %2590 = vtanh.f32 %v3023_v30 }
 0x26a   :  { %v2591_v34 = vpop.eup %2590 }
 0x26b   :  { %v814_v39 = vmul.f32 %v2591_v34, %v2589_v33 }
 0x26d   :  { %887 = vmatmul.mubr.f32.vlgmr.msra.gmra.mrb[4].mxu0 %v814_v39  ;;  %958 = vmatmul.mubr.f32.vlgmr.msra.gmra.mrb[4].mxu1 %v814_v39 }
 0x26e   :  { %2174 = vmatpush1.bf16.msra.mxu0 %v2799_v47  ;;  %2206 = vmatpush1.bf16.msra.mxu1 %v2802_v50 }
 0x26f   :  { %2176 = vmatprep.subr.bf16.mxu0 %v2805_v53  ;;  %2208 = vmatprep.subr.bf16.mxu1 %v2807_v56 }
 0x270   :  { %1063 = vmatprep.mubr.f32.mxu0 %v2740_v0  ;;  %1134 = vmatprep.mubr.f32.mxu1 %v2740_v0 }
 0x272   :  { %2178 = vmatpush1.bf16.msra.mxu0 %v2813_v60  ;;  %2210 = vmatpush1.bf16.msra.mxu1 %v2817_v63 }
 0x273   :  { %2180 = vmatprep.subr.bf16.mxu0 %v2821_v3  ;;  %2212 = vmatprep.subr.bf16.mxu1 %v2824_v6 }
 0x276   :  { %2182 = vmatpush1.bf16.msra.mxu0 %v2830_v10  ;;  %2214 = vmatpush1.bf16.msra.mxu1 %v2834_v13 }
 0x277   :  { %2184 = vmatprep.subr.bf16.mxu0 %v2838_v16  ;;  %2216 = vmatprep.subr.bf16.mxu1 %v2841_v19 }
 0x27a   :  { %2186 = vmatpush1.bf16.msra.mxu0 %v2847_v23  ;;  %2218 = vmatpush1.bf16.msra.mxu1 %v2851_v26 }
 0x27b   :  { %2188 = vmatprep.subr.bf16.mxu0 %v2855_v29  ;;  %2220 = vmatprep.subr.bf16.mxu1 %v2858_v32 }
 0x27e   :  { %2190 = vmatpush1.bf16.msra.mxu0 %v2864_v36  ;;  %2222 = vmatpush1.bf16.msra.mxu1 %v2868_v40 }
 0x27f   :  { %2192 = vmatprep.subr.bf16.mxu0 %v2872_v44  ;;  %2224 = vmatprep.subr.bf16.mxu1 %v2875_v48 }
 0x282   :  { %2194 = vmatpush1.bf16.msra.mxu0 %v2881_v54  ;;  %2226 = vmatpush1.bf16.msra.mxu1 %v2885_v58 }
 0x283   :  { %2196 = vmatprep.subr.bf16.mxu0 %v2889_v62  ;;  %2228 = vmatprep.subr.bf16.mxu1 %v2892_v4 }
 0x286   :  { %2198 = vmatpush1.bf16.msra.mxu0 %v2898_v9  ;;  %2230 = vmatpush1.bf16.msra.mxu1 %v2902_v14 }
 0x287   :  { %2200 = vmatprep.subr.bf16.mxu0 %v2906_v18  ;;  %2232 = vmatprep.subr.bf16.mxu1 %v2909_v22 }
 0x28a   :  { %2202 = vmatpush1.bf16.msra.mxu0 %v2915_v25  ;;  %2234 = vmatpush1.bf16.msra.mxu1 %v2919_v27 }
 0x28b   :  { %2236 = vmatprep.subr.bf16.mxu0 %v2792_v38  ;;  %2268 = vmatprep.subr.bf16.mxu1 %v2794_v41 }
 0x340   :  { %v888_v31 = vpop.f32.mrb[4].mxu0  ;;  %v959_v42 = vpop.f32.mrb[4].mxu1 }
 0x341   :  { %v2495_v43 = vadd.f32 %v888_v31, %v2969_v35  ;;  %v890_v45 = vpop.f32.mrb[5].mxu0  ;;  %v961_v46 = vpop.f32.mrb[5].mxu1  ;;  %v2511_v61 = vadd.f32 %v959_v42, %v2978_v1 }
 0x342   :  { %v2496_v49 = vadd.f32 %v890_v45, %v2971_v37  ;;  %v2512_v55 = vadd.f32 %v961_v46, %v2975_v57 }
 0x343   :  { %v1897_v51 = vmul.f32 -1.442695, %v2495_v43 }
 0x344   :  { %v1898_v52 = vmul.f32 -1.442695, %v2496_v49  ;;  %v1899_v59 = vmul.f32 -1.442695, %v2512_v55 }
 0x345   :  { %2592 = vpow2.f32 %v1897_v51 }
 0x346   :  { %2594 = vpow2.f32 %v1898_v52 }
 0x347   :  { %2596 = vpow2.f32 %v1899_v59 }
 0x348   :  { %2598 = vtanh.f32 %v2511_v61 }
 0x34f   :  { %v2593_v2 = vpop.eup %2592 }
 0x350   :  { %v2595_v5 = vpop.eup %2594  ;;  %v971_v7 = vadd.f32 1.0, %v2593_v2 }
 0x351   :  { %v977_v8 = vadd.f32 1.0, %v2595_v5  ;;  %v2597_v11 = vpop.eup %2596 }
 0x352   :  { %2600 = vrcp.f32 %v971_v7  ;;  %v2599_v12 = vpop.eup %2598  ;;  %v984_v21 = vadd.f32 1.0, %v2597_v11 }
 0x353   :  { %2602 = vrcp.f32 %v977_v8 }
 0x354   :  { %2604 = vrcp.f32 %v984_v21 }
 0x35c   :  { %v2601_v15 = vpop.eup %2600 }
 0x35d   :  { %v2603_v17 = vpop.eup %2602  ;;  %v988_v20 = vmul.f32 %v2601_v15, %v2599_v12 }
 0x35e   :  { %v987_v24 = vmul.f32 %v2603_v17, %v3023_v30  ;;  %v2605_v33 = vpop.eup %2604 }
 0x360   :  { %v3065_v28 = vadd.f32 %v988_v20, %v987_v24 }
 0x362   :  { %2606 = vtanh.f32 %v3065_v28 }
 0x36c   :  { %v2607_v34 = vpop.eup %2606 }
 0x36d   :  { %v991_v39 = vmul.f32 %v2607_v34, %v2605_v33 }
 0x36f   :  { %1064 = vmatmul.mubr.f32.vlgmr.msra.gmra.mrb[6].mxu0 %v991_v39  ;;  %1135 = vmatmul.mubr.f32.vlgmr.msra.gmra.mrb[6].mxu1 %v991_v39 }
 0x370   :  { %2238 = vmatpush1.bf16.msra.mxu0 %v2799_v47  ;;  %2270 = vmatpush1.bf16.msra.mxu1 %v2802_v50 }
 0x371   :  { %2240 = vmatprep.subr.bf16.mxu0 %v2805_v53  ;;  %2272 = vmatprep.subr.bf16.mxu1 %v2807_v56 }
 0x372   :  { %1240 = vmatprep.mubr.f32.mxu0 %v2740_v0  ;;  %1311 = vmatprep.mubr.f32.mxu1 %v2740_v0 }
 0x374   :  { %2242 = vmatpush1.bf16.msra.mxu0 %v2813_v60  ;;  %2274 = vmatpush1.bf16.msra.mxu1 %v2817_v63 }
 0x375   :  { %2244 = vmatprep.subr.bf16.mxu0 %v2821_v3  ;;  %2276 = vmatprep.subr.bf16.mxu1 %v2824_v6 }
 0x378   :  { %2246 = vmatpush1.bf16.msra.mxu0 %v2830_v10  ;;  %2278 = vmatpush1.bf16.msra.mxu1 %v2834_v13 }
 0x379   :  { %2248 = vmatprep.subr.bf16.mxu0 %v2838_v16  ;;  %2280 = vmatprep.subr.bf16.mxu1 %v2841_v19 }
 0x37c   :  { %2250 = vmatpush1.bf16.msra.mxu0 %v2847_v23  ;;  %2282 = vmatpush1.bf16.msra.mxu1 %v2851_v26 }
 0x37d   :  { %2252 = vmatprep.subr.bf16.mxu0 %v2855_v29  ;;  %2284 = vmatprep.subr.bf16.mxu1 %v2858_v32 }
 0x380   :  { %2254 = vmatpush1.bf16.msra.mxu0 %v2864_v36  ;;  %2286 = vmatpush1.bf16.msra.mxu1 %v2868_v40 }
 0x381   :  { %2256 = vmatprep.subr.bf16.mxu0 %v2872_v44  ;;  %2288 = vmatprep.subr.bf16.mxu1 %v2875_v48 }
 0x384   :  { %2258 = vmatpush1.bf16.msra.mxu0 %v2881_v54  ;;  %2290 = vmatpush1.bf16.msra.mxu1 %v2885_v58 }
 0x385   :  { %2260 = vmatprep.subr.bf16.mxu0 %v2889_v62  ;;  %2292 = vmatprep.subr.bf16.mxu1 %v2892_v4 }
 0x388   :  { %2262 = vmatpush1.bf16.msra.mxu0 %v2898_v9  ;;  %2294 = vmatpush1.bf16.msra.mxu1 %v2902_v14 }
 0x389   :  { %2264 = vmatprep.subr.bf16.mxu0 %v2906_v18  ;;  %2296 = vmatprep.subr.bf16.mxu1 %v2909_v22 }
 0x38c   :  { %2266 = vmatpush1.bf16.msra.mxu0 %v2915_v25  ;;  %2298 = vmatpush1.bf16.msra.mxu1 %v2919_v27 }
 0x38d   :  { %2300 = vmatprep.subr.bf16.mxu0 %v2792_v38  ;;  %2332 = vmatprep.subr.bf16.mxu1 %v2794_v41 }
 0x442   :  { %v1065_v30 = vpop.f32.mrb[6].mxu0  ;;  %v1136_v31 = vpop.f32.mrb[6].mxu1 }
 0x443   :  { %v2497_v42 = vadd.f32 %v1065_v30, %v2969_v35  ;;  %v1067_v43 = vpop.f32.mrb[7].mxu0  ;;  %v1138_v45 = vpop.f32.mrb[7].mxu1  ;;  %v2513_v59 = vadd.f32 %v1136_v31, %v2978_v1 }
 0x444   :  { %v2498_v46 = vadd.f32 %v1067_v43, %v2971_v37  ;;  %v2514_v52 = vadd.f32 %v1138_v45, %v2975_v57 }
 0x445   :  { %v1900_v49 = vmul.f32 -1.442695, %v2497_v42 }
 0x446   :  { %v1901_v51 = vmul.f32 -1.442695, %v2498_v46  ;;  %v1902_v55 = vmul.f32 -1.442695, %v2514_v52 }
 0x447   :  { %2608 = vpow2.f32 %v1900_v49 }
 0x448   :  { %2610 = vpow2.f32 %v1901_v51 }
 0x449   :  { %2612 = vpow2.f32 %v1902_v55 }
 0x44a   :  { %2614 = vtanh.f32 %v2513_v59 }
 0x451   :  { %v2609_v61 = vpop.eup %2608 }
 0x452   :  { %v2611_v2 = vpop.eup %2610  ;;  %v1148_v5 = vadd.f32 1.0, %v2609_v61 }
 0x453   :  { %v1154_v7 = vadd.f32 1.0, %v2611_v2  ;;  %v2613_v8 = vpop.eup %2612 }
 0x454   :  { %2616 = vrcp.f32 %v1148_v5  ;;  %v2615_v11 = vpop.eup %2614  ;;  %v1161_v20 = vadd.f32 1.0, %v2613_v8 }
 0x455   :  { %2618 = vrcp.f32 %v1154_v7 }
 0x456   :  { %2620 = vrcp.f32 %v1161_v20 }
 0x45e   :  { %v2617_v12 = vpop.eup %2616 }
 0x45f   :  { %v2619_v15 = vpop.eup %2618  ;;  %v1165_v17 = vmul.f32 %v2617_v12, %v2615_v11 }
 0x460   :  { %v1164_v21 = vmul.f32 %v2619_v15, %v3065_v28  ;;  %v2621_v33 = vpop.eup %2620 }
 0x462   :  { %v3107_v24 = vadd.f32 %v1165_v17, %v1164_v21 }
 0x464   :  { %2622 = vtanh.f32 %v3107_v24 }
 0x46e   :  { %v2623_v34 = vpop.eup %2622 }
 0x46f   :  { %v1168_v39 = vmul.f32 %v2623_v34, %v2621_v33 }
 0x471   :  { %1241 = vmatmul.mubr.f32.vlgmr.msra.gmra.mrb[8].mxu0 %v1168_v39  ;;  %1312 = vmatmul.mubr.f32.vlgmr.msra.gmra.mrb[8].mxu1 %v1168_v39 }
 0x472   :  { %2302 = vmatpush1.bf16.msra.mxu0 %v2799_v47  ;;  %2334 = vmatpush1.bf16.msra.mxu1 %v2802_v50 }
 0x473   :  { %2304 = vmatprep.subr.bf16.mxu0 %v2805_v53  ;;  %2336 = vmatprep.subr.bf16.mxu1 %v2807_v56 }
 0x474   :  { %1417 = vmatprep.mubr.f32.mxu0 %v2740_v0  ;;  %1488 = vmatprep.mubr.f32.mxu1 %v2740_v0 }
 0x476   :  { %2306 = vmatpush1.bf16.msra.mxu0 %v2813_v60  ;;  %2338 = vmatpush1.bf16.msra.mxu1 %v2817_v63 }
 0x477   :  { %2308 = vmatprep.subr.bf16.mxu0 %v2821_v3  ;;  %2340 = vmatprep.subr.bf16.mxu1 %v2824_v6 }
 0x47a   :  { %2310 = vmatpush1.bf16.msra.mxu0 %v2830_v10  ;;  %2342 = vmatpush1.bf16.msra.mxu1 %v2834_v13 }
 0x47b   :  { %2312 = vmatprep.subr.bf16.mxu0 %v2838_v16  ;;  %2344 = vmatprep.subr.bf16.mxu1 %v2841_v19 }
 0x47e   :  { %2314 = vmatpush1.bf16.msra.mxu0 %v2847_v23  ;;  %2346 = vmatpush1.bf16.msra.mxu1 %v2851_v26 }
 0x47f   :  { %2316 = vmatprep.subr.bf16.mxu0 %v2855_v29  ;;  %2348 = vmatprep.subr.bf16.mxu1 %v2858_v32 }
 0x482   :  { %2318 = vmatpush1.bf16.msra.mxu0 %v2864_v36  ;;  %2350 = vmatpush1.bf16.msra.mxu1 %v2868_v40 }
 0x483   :  { %2320 = vmatprep.subr.bf16.mxu0 %v2872_v44  ;;  %2352 = vmatprep.subr.bf16.mxu1 %v2875_v48 }
 0x486   :  { %2322 = vmatpush1.bf16.msra.mxu0 %v2881_v54  ;;  %2354 = vmatpush1.bf16.msra.mxu1 %v2885_v58 }
 0x487   :  { %2324 = vmatprep.subr.bf16.mxu0 %v2889_v62  ;;  %2356 = vmatprep.subr.bf16.mxu1 %v2892_v4 }
 0x48a   :  { %2326 = vmatpush1.bf16.msra.mxu0 %v2898_v9  ;;  %2358 = vmatpush1.bf16.msra.mxu1 %v2902_v14 }
 0x48b   :  { %2328 = vmatprep.subr.bf16.mxu0 %v2906_v18  ;;  %2360 = vmatprep.subr.bf16.mxu1 %v2909_v22 }
 0x48e   :  { %2330 = vmatpush1.bf16.msra.mxu0 %v2915_v25  ;;  %2362 = vmatpush1.bf16.msra.mxu1 %v2919_v27 }
 0x48f   :  { %2364 = vmatprep.subr.bf16.mxu0 %v2792_v38  ;;  %2396 = vmatprep.subr.bf16.mxu1 %v2794_v41 }
 0x544   :  { %v1242_v28 = vpop.f32.mrb[8].mxu0  ;;  %v1313_v30 = vpop.f32.mrb[8].mxu1 }
 0x545   :  { %v2499_v31 = vadd.f32 %v1242_v28, %v2969_v35  ;;  %v1244_v42 = vpop.f32.mrb[9].mxu0  ;;  %v1315_v43 = vpop.f32.mrb[9].mxu1  ;;  %v2515_v55 = vadd.f32 %v1313_v30, %v2978_v1 }
 0x546   :  { %v2500_v45 = vadd.f32 %v1244_v42, %v2971_v37  ;;  %v2516_v51 = vadd.f32 %v1315_v43, %v2975_v57 }
 0x547   :  { %v1903_v46 = vmul.f32 -1.442695, %v2499_v31 }
 0x548   :  { %v1904_v49 = vmul.f32 -1.442695, %v2500_v45  ;;  %v1905_v52 = vmul.f32 -1.442695, %v2516_v51 }
 0x549   :  { %2624 = vpow2.f32 %v1903_v46 }
 0x54a   :  { %2626 = vpow2.f32 %v1904_v49 }
 0x54b   :  { %2628 = vpow2.f32 %v1905_v52 }
 0x54c   :  { %2630 = vtanh.f32 %v2515_v55 }
 0x553   :  { %v2625_v59 = vpop.eup %2624 }
 0x554   :  { %v2627_v61 = vpop.eup %2626  ;;  %v1325_v2 = vadd.f32 1.0, %v2625_v59 }
 0x555   :  { %v1331_v5 = vadd.f32 1.0, %v2627_v61  ;;  %v2629_v7 = vpop.eup %2628 }
 0x556   :  { %2632 = vrcp.f32 %v1325_v2  ;;  %v2631_v8 = vpop.eup %2630  ;;  %v1338_v17 = vadd.f32 1.0, %v2629_v7 }
 0x557   :  { %2634 = vrcp.f32 %v1331_v5 }
 0x558   :  { %2636 = vrcp.f32 %v1338_v17 }
 0x560   :  { %v2633_v11 = vpop.eup %2632 }
 0x561   :  { %v2635_v12 = vpop.eup %2634  ;;  %v1342_v15 = vmul.f32 %v2633_v11, %v2631_v8 }
 0x562   :  { %v1341_v20 = vmul.f32 %v2635_v12, %v3107_v24  ;;  %v2637_v33 = vpop.eup %2636 }
 0x564   :  { %v3149_v21 = vadd.f32 %v1342_v15, %v1341_v20 }
 0x566   :  { %2638 = vtanh.f32 %v3149_v21 }
 0x570   :  { %v2639_v34 = vpop.eup %2638 }
 0x571   :  { %v1345_v39 = vmul.f32 %v2639_v34, %v2637_v33 }
 0x573   :  { %1418 = vmatmul.mubr.f32.vlgmr.msra.gmra.mrb[10].mxu0 %v1345_v39  ;;  %1489 = vmatmul.mubr.f32.vlgmr.msra.gmra.mrb[10].mxu1 %v1345_v39 }
 0x574   :  { %2366 = vmatpush1.bf16.msra.mxu0 %v2799_v47  ;;  %2398 = vmatpush1.bf16.msra.mxu1 %v2802_v50 }
 0x575   :  { %2368 = vmatprep.subr.bf16.mxu0 %v2805_v53  ;;  %2400 = vmatprep.subr.bf16.mxu1 %v2807_v56 }
 0x576   :  { %1594 = vmatprep.mubr.f32.mxu0 %v2740_v0  ;;  %1665 = vmatprep.mubr.f32.mxu1 %v2740_v0 }
 0x578   :  { %2370 = vmatpush1.bf16.msra.mxu0 %v2813_v60  ;;  %2402 = vmatpush1.bf16.msra.mxu1 %v2817_v63 }
 0x579   :  { %2372 = vmatprep.subr.bf16.mxu0 %v2821_v3  ;;  %2404 = vmatprep.subr.bf16.mxu1 %v2824_v6 }
 0x57c   :  { %2374 = vmatpush1.bf16.msra.mxu0 %v2830_v10  ;;  %2406 = vmatpush1.bf16.msra.mxu1 %v2834_v13 }
 0x57d   :  { %2376 = vmatprep.subr.bf16.mxu0 %v2838_v16  ;;  %2408 = vmatprep.subr.bf16.mxu1 %v2841_v19 }
 0x580   :  { %2378 = vmatpush1.bf16.msra.mxu0 %v2847_v23  ;;  %2410 = vmatpush1.bf16.msra.mxu1 %v2851_v26 }
 0x581   :  { %2380 = vmatprep.subr.bf16.mxu0 %v2855_v29  ;;  %2412 = vmatprep.subr.bf16.mxu1 %v2858_v32 }
 0x584   :  { %2382 = vmatpush1.bf16.msra.mxu0 %v2864_v36  ;;  %2414 = vmatpush1.bf16.msra.mxu1 %v2868_v40 }
 0x585   :  { %2384 = vmatprep.subr.bf16.mxu0 %v2872_v44  ;;  %2416 = vmatprep.subr.bf16.mxu1 %v2875_v48 }
 0x588   :  { %2386 = vmatpush1.bf16.msra.mxu0 %v2881_v54  ;;  %2418 = vmatpush1.bf16.msra.mxu1 %v2885_v58 }
 0x589   :  { %2388 = vmatprep.subr.bf16.mxu0 %v2889_v62  ;;  %2420 = vmatprep.subr.bf16.mxu1 %v2892_v4 }
 0x58c   :  { %2390 = vmatpush1.bf16.msra.mxu0 %v2898_v9  ;;  %2422 = vmatpush1.bf16.msra.mxu1 %v2902_v14 }
 0x58d   :  { %2392 = vmatprep.subr.bf16.mxu0 %v2906_v18  ;;  %2424 = vmatprep.subr.bf16.mxu1 %v2909_v22 }
 0x590   :  { %2394 = vmatpush1.bf16.msra.mxu0 %v2915_v25  ;;  %2426 = vmatpush1.bf16.msra.mxu1 %v2919_v27 }
 0x591   :  { %2428 = vmatprep.subr.bf16.mxu0 %v2792_v38  ;;  %2460 = vmatprep.subr.bf16.mxu1 %v2794_v41 }
 0x646   :  { %v1419_v24 = vpop.f32.mrb[10].mxu0  ;;  %v1490_v28 = vpop.f32.mrb[10].mxu1 }
 0x647   :  { %v2501_v30 = vadd.f32 %v1419_v24, %v2969_v35  ;;  %v1421_v31 = vpop.f32.mrb[11].mxu0  ;;  %v1492_v42 = vpop.f32.mrb[11].mxu1  ;;  %v2517_v52 = vadd.f32 %v1490_v28, %v2978_v1 }
 0x648   :  { %v2502_v43 = vadd.f32 %v1421_v31, %v2971_v37  ;;  %v2518_v49 = vadd.f32 %v1492_v42, %v2975_v57 }
 0x649   :  { %v1906_v45 = vmul.f32 -1.442695, %v2501_v30 }
 0x64a   :  { %v1907_v46 = vmul.f32 -1.442695, %v2502_v43  ;;  %v1908_v51 = vmul.f32 -1.442695, %v2518_v49 }
 0x64b   :  { %2640 = vpow2.f32 %v1906_v45 }
 0x64c   :  { %2642 = vpow2.f32 %v1907_v46 }
 0x64d   :  { %2644 = vpow2.f32 %v1908_v51 }
 0x64e   :  { %2646 = vtanh.f32 %v2517_v52 }
 0x655   :  { %v2641_v38 = vpop.eup %2640 }
 0x656   :  { %v2643_v55 = vpop.eup %2642  ;;  %v1502_v41 = vadd.f32 1.0, %v2641_v38 }
 0x657   :  { %v1508_v59 = vadd.f32 1.0, %v2643_v55  ;;  %v2645_v61 = vpop.eup %2644 }
 0x658   :  { %2648 = vrcp.f32 %v1502_v41  ;;  %v2647_v2 = vpop.eup %2646  ;;  %v1515_v11 = vadd.f32 1.0, %v2645_v61 }
 0x659   :  { %2650 = vrcp.f32 %v1508_v59 }
 0x65a   :  { %2652 = vrcp.f32 %v1515_v11 }
 0x662   :  { %v2649_v5 = vpop.eup %2648 }
 0x663   :  { %v2651_v7 = vpop.eup %2650  ;;  %v1519_v8 = vmul.f32 %v2649_v5, %v2647_v2 }
 0x664   :  { %v1518_v12 = vmul.f32 %v2651_v7, %v3149_v21  ;;  %v2653_v17 = vpop.eup %2652 }
 0x666   :  { %v3191_v15 = vadd.f32 %v1519_v8, %v1518_v12 }
 0x668   :  { %2654 = vtanh.f32 %v3191_v15 }
 0x672   :  { %v2655_v20 = vpop.eup %2654 }
 0x673   :  { %v1522_v33 = vmul.f32 %v2655_v20, %v2653_v17 }
 0x675   :  { %1595 = vmatmul.mubr.f32.vlgmr.msra.gmra.mrb[12].mxu0 %v1522_v33  ;;  %1666 = vmatmul.mubr.f32.vlgmr.msra.gmra.mrb[12].mxu1 %v1522_v33 }
 0x676   :  { %2430 = vmatpush1.bf16.msra.mxu0 %v2799_v47  ;;  %2462 = vmatpush1.bf16.msra.mxu1 %v2802_v50 }
 0x677   :  { %2432 = vmatprep.subr.bf16.mxu0 %v2805_v53  ;;  %2464 = vmatprep.subr.bf16.mxu1 %v2807_v56 }
 0x678   :  { %1771 = vmatprep.mubr.f32.mxu0 %v2740_v0  ;;  %1842 = vmatprep.mubr.f32.mxu1 %v2740_v0 }
 0x67a   :  { %2434 = vmatpush1.bf16.msra.mxu0 %v2813_v60  ;;  %2466 = vmatpush1.bf16.msra.mxu1 %v2817_v63 }
 0x67b   :  { %2436 = vmatprep.subr.bf16.mxu0 %v2821_v3  ;;  %2468 = vmatprep.subr.bf16.mxu1 %v2824_v6 }
 0x67e   :  { %2438 = vmatpush1.bf16.msra.mxu0 %v2830_v10  ;;  %2470 = vmatpush1.bf16.msra.mxu1 %v2834_v13 }
 0x67f   :  { %2440 = vmatprep.subr.bf16.mxu0 %v2838_v16  ;;  %2472 = vmatprep.subr.bf16.mxu1 %v2841_v19 }
 0x682   :  { %2442 = vmatpush1.bf16.msra.mxu0 %v2847_v23  ;;  %2474 = vmatpush1.bf16.msra.mxu1 %v2851_v26 }
 0x683   :  { %2444 = vmatprep.subr.bf16.mxu0 %v2855_v29  ;;  %2476 = vmatprep.subr.bf16.mxu1 %v2858_v32 }
 0x686   :  { %2446 = vmatpush1.bf16.msra.mxu0 %v2864_v36  ;;  %2478 = vmatpush1.bf16.msra.mxu1 %v2868_v40 }
 0x687   :  { %2448 = vmatprep.subr.bf16.mxu0 %v2872_v44  ;;  %2480 = vmatprep.subr.bf16.mxu1 %v2875_v48 }
 0x68a   :  { %2450 = vmatpush1.bf16.msra.mxu0 %v2881_v54  ;;  %2482 = vmatpush1.bf16.msra.mxu1 %v2885_v58 }
 0x68b   :  { %2452 = vmatprep.subr.bf16.mxu0 %v2889_v62  ;;  %2484 = vmatprep.subr.bf16.mxu1 %v2892_v4 }
 0x68e   :  { %2454 = vmatpush1.bf16.msra.mxu0 %v2898_v9  ;;  %2486 = vmatpush1.bf16.msra.mxu1 %v2902_v14 }
 0x68f   :  { %2456 = vmatprep.subr.bf16.mxu0 %v2906_v18  ;;  %2488 = vmatprep.subr.bf16.mxu1 %v2909_v22 }
 0x692   :  { %2458 = vmatpush1.bf16.msra.mxu0 %v2915_v25  ;;  %2490 = vmatpush1.bf16.msra.mxu1 %v2919_v27 }
 0x748   :  { %v1596_v0 = vpop.f32.mrb[12].mxu0  ;;  %v1667_v47 = vpop.f32.mrb[12].mxu1 }
 0x749   :  { %v2503_v50 = vadd.f32 %v1596_v0, %v2969_v35  ;;  %v1598_v53 = vpop.f32.mrb[13].mxu0  ;;  %v1669_v56 = vpop.f32.mrb[13].mxu1  ;;  %v2519_v13 = vadd.f32 %v1667_v47, %v2978_v1 }
 0x74a   :  { %v2504_v60 = vadd.f32 %v1598_v53, %v2971_v37  ;;  %v2520_v6 = vadd.f32 %v1669_v56, %v2975_v57 }
 0x74b   :  { %v1909_v63 = vmul.f32 -1.442695, %v2503_v50 }
 0x74c   :  { %v1910_v3 = vmul.f32 -1.442695, %v2504_v60  ;;  %v1911_v10 = vmul.f32 -1.442695, %v2520_v6 }
 0x74d   :  { %2656 = vpow2.f32 %v1909_v63 }
 0x74e   :  { %2658 = vpow2.f32 %v1910_v3 }
 0x74f   :  { %2660 = vpow2.f32 %v1911_v10 }
 0x750   :  { %2662 = vtanh.f32 %v2519_v13 }
 0x757   :  { %v2657_v16 = vpop.eup %2656 }
 0x758   :  { %v2659_v19 = vpop.eup %2658  ;;  %v1679_v23 = vadd.f32 1.0, %v2657_v16 }
 0x759   :  { %v1685_v26 = vadd.f32 1.0, %v2659_v19  ;;  %v2661_v29 = vpop.eup %2660 }
 0x75a   :  { %2664 = vrcp.f32 %v1679_v23  ;;  %v2663_v32 = vpop.eup %2662  ;;  %v1692_v48 = vadd.f32 1.0, %v2661_v29 }
 0x75b   :  { %2666 = vrcp.f32 %v1685_v26 }
 0x75c   :  { %2668 = vrcp.f32 %v1692_v48 }
 0x764   :  { %v2665_v36 = vpop.eup %2664 }
 0x765   :  { %v2667_v40 = vpop.eup %2666  ;;  %v1696_v44 = vmul.f32 %v2665_v36, %v2663_v32 }
 0x766   :  { %v1695_v54 = vmul.f32 %v2667_v40, %v3191_v15  ;;  %v2669_v62 = vpop.eup %2668 }
 0x768   :  { %v1697_v58 = vadd.f32 %v1696_v44, %v1695_v54 }
 0x76a   :  { %2670 = vtanh.f32 %v1697_v58 }
 0x774   :  { %v2671_v4 = vpop.eup %2670 }
 0x775   :  { %v1699_v9 = vmul.f32 %v2671_v4, %v2669_v62 }
 0x777   :  { %1772 = vmatmul.mubr.f32.vlgmr.msra.gmra.mrb[14].mxu0 %v1699_v9  ;;  %1843 = vmatmul.mubr.f32.vlgmr.msra.gmra.mrb[14].mxu1 %v1699_v9 }
 0x84a   :  { %v1773_v14 = vpop.f32.mrb[14].mxu0  ;;  %v1844_v18 = vpop.f32.mrb[14].mxu1 }
 0x84b   :  { %v2505_v22 = vadd.f32 %v1773_v14, %v2969_v35  ;;  %v1775_v25 = vpop.f32.mrb[15].mxu0  ;;  %v1846_v27 = vpop.f32.mrb[15].mxu1  ;;  %v2521_v30 = vadd.f32 %v1844_v18, %v2978_v1 }
 0x84c   :  { %v2506_v21 = vadd.f32 %v1775_v25, %v2971_v37  ;;  %v2522_v24 = vadd.f32 %v1846_v27, %v2975_v57 }
 0x84d   :  { %v1912_v34 = vmul.f32 -1.442695, %v2505_v22 }
 0x84e   :  { %v1913_v39 = vmul.f32 -1.442695, %v2506_v21  ;;  %v1914_v28 = vmul.f32 -1.442695, %v2522_v24 }
 0x84f   :  { %2672 = vpow2.f32 %v1912_v34 }
 0x850   :  { %2674 = vpow2.f32 %v1913_v39 }
 0x851   :  { %2676 = vpow2.f32 %v1914_v28 }
 0x852   :  { %2678 = vtanh.f32 %v2521_v30 }
 0x859   :  { %v2673_v31 = vpop.eup %2672 }
 0x85a   :  { %v2675_v42 = vpop.eup %2674  ;;  %v1856_v43 = vadd.f32 1.0, %v2673_v31 }
 0x85b   :  { %v1862_v45 = vadd.f32 1.0, %v2675_v42  ;;  %v2677_v35 = vpop.eup %2676 }
 0x85c   :  { %2680 = vrcp.f32 %v1856_v43  ;;  %v2679_v46 = vpop.eup %2678  ;;  %v1869_v52 = vadd.f32 1.0, %v2677_v35 }
 0x85d   :  { %2682 = vrcp.f32 %v1862_v45 }
 0x85e   :  { %2684 = vrcp.f32 %v1869_v52 }
 0x866   :  { %v2681_v37 = vpop.eup %2680 }
 0x867   :  { %v2683_v49 = vpop.eup %2682  ;;  %v1873_v51 = vmul.f32 %v2681_v37, %v2679_v46 }
 0x868   :  { %v1872_v38 = vmul.f32 %v2683_v49, %v1697_v58  ;;  %v2685_v57 = vpop.eup %2684 }
 0x86a   :  { %v1874_v55 = vadd.f32 %v1873_v51, %v1872_v38 }
 0x86c   :  { %2686 = vtanh.f32 %v1874_v55 }
 0x876   :  { %v2687_v1 = vpop.eup %2686 }
 0x877   :  { %v1876_v41 = vmul.f32 %v2687_v1, %v2685_v57 }
 0x879   :  { %1877 = vst [vmem:[%s3242_s4] sm:$0xff] %v1876_v41 }
 0x87a   :  { %1882 = vsyncpa [#allocation4], 1 }
 0x87b   :  { %1883 = vsyncpa [#allocation6], 1 }

// kernel: seq2seq_forward.3
= control target key start
LH: loop header
LB: loop body
LE: loop exit
PB: predicated region body
PF: predicated region fallthrough
CT: control target
= control target key end

     0   :  { %v3638_v3 = vmov 0.0   ;;  %vm2632_vm0 = vmmov 0   ;;  %s3630_s2 = inlined_call_operand.vmem [shape: f32[128,512], index: 2, kind: input, shape index: {}]   ;;  %s3631_s3 = inlined_call_operand.vmem [shape: f32[128,512], index: 3, kind: input, shape index: {}]   ;;  %s3632_s0 = inlined_call_operand.vmem [shape: f32[56,128], index: 0, kind: input, shape index: {}]   ;;  %s3633_s1 = inlined_call_operand.vmem [shape: f32[8,128], index: 1, kind: input, shape index: {}]   ;;  %s3634_s4 = inlined_call_operand.vmem [shape: f32[1,512], index: 4, kind: input, shape index: {}]   ;;  %s3635_s5 = inlined_call_operand.vmem [shape: f32[128,128], index: 5, kind: input, shape index: {}]   ;;  %s3636_s6 = inlined_call_operand.vmem [shape: f32[1,128], index: 6, kind: input, shape index: {}]   ;;  %s3637_s7 = inlined_call_operand.vmem [shape: f32[56,128], index: 7, kind: output, shape index: {}]  }
   0x1   :  { %v34_v0 = vld [vmem:[%s3630_s2 + $0x8] sm:$0xff]  ;;  %v33_v2 = vld [vmem:[%s3630_s2] sm:$0xff]  ;;  %183 = vmatprep.mubr.f32.mxu1 %v3638_v3  ;;  %497 = vmatprep.mubr.f32.mxu0 %v3638_v3 }
   0x2   :  { %v38_v1 = vld [vmem:[%s3630_s2 + $0x28] sm:$0xff]  ;;  %v37_v5 = vld [vmem:[%s3630_s2 + $0x20] sm:$0xff] }
   0x3   :  { %v1923_v4 = vpack.c.bf16 %v38_v1, %v34_v0  ;;  %v362_v6 = vld [vmem:[%s3631_s3 + $0x8] sm:$0xff]  ;;  %v1925_v8 = vpack.c.bf16 %v37_v5, %v33_v2  ;;  %v361_v10 = vld [vmem:[%s3631_s3] sm:$0xff] }
   0x4   :  { %v366_v7 = vld [vmem:[%s3631_s3 + $0x28] sm:$0xff]  ;;  %v365_v11 = vld [vmem:[%s3631_s3 + $0x20] sm:$0xff] }
   0x5   :  { %v2693_v9 = vpack.c.bf16 %v366_v7, %v362_v6  ;;  %v42_v12 = vld [vmem:[%s3630_s2 + $0x48] sm:$0xff]  ;;  %1924 = vmatprep.subr.bf16.mxu1 %v1923_v4  ;;  %v2704_v13 = vpack.c.bf16 %v365_v11, %v361_v10  ;;  %v41_v15 = vld [vmem:[%s3630_s2 + $0x40] sm:$0xff] }
   0x6   :  { %v46_v14 = vld [vmem:[%s3630_s2 + $0x68] sm:$0xff]  ;;  %v45_v16 = vld [vmem:[%s3630_s2 + $0x60] sm:$0xff]  ;;  %1926 = vmatpush1.bf16.msra.mxu1 %v1925_v8 }
   0x7   :  { %1988 = vmatprep.subr.bf16.mxu0 %v2693_v9  ;;  %v1927_v17 = vpack.c.bf16 %v46_v14, %v42_v12  ;;  %v1929_v18 = vpack.c.bf16 %v45_v16, %v41_v15  ;;  %v370_v19 = vld [vmem:[%s3631_s3 + $0x48] sm:$0xff]  ;;  %v369_v21 = vld [vmem:[%s3631_s3 + $0x40] sm:$0xff] }
   0x8   :  { %v374_v20 = vld [vmem:[%s3631_s3 + $0x68] sm:$0xff]  ;;  %1990 = vmatpush1.bf16.msra.mxu0 %v2704_v13  ;;  %v373_v23 = vld [vmem:[%s3631_s3 + $0x60] sm:$0xff] }
   0x9   :  { %v2726_v22 = vpack.c.bf16 %v374_v20, %v370_v19  ;;  %v50_v24 = vld [vmem:[%s3630_s2 + $0x88] sm:$0xff]  ;;  %1928 = vmatprep.subr.bf16.mxu1 %v1927_v17  ;;  %v2737_v26 = vpack.c.bf16 %v373_v23, %v369_v21  ;;  %v49_v28 = vld [vmem:[%s3630_s2 + $0x80] sm:$0xff] }
   0xa   :  { %v54_v25 = vld [vmem:[%s3630_s2 + $0xa8] sm:$0xff]  ;;  %v53_v29 = vld [vmem:[%s3630_s2 + $0xa0] sm:$0xff]  ;;  %1930 = vmatpush1.bf16.msra.mxu1 %v1929_v18 }
   0xb   :  { %v1931_v27 = vpack.c.bf16 %v54_v25, %v50_v24  ;;  %v378_v30 = vld [vmem:[%s3631_s3 + $0x88] sm:$0xff]  ;;  %1992 = vmatprep.subr.bf16.mxu0 %v2726_v22  ;;  %v377_v32 = vld [vmem:[%s3631_s3 + $0x80] sm:$0xff]  ;;  %v1933_v34 = vpack.c.bf16 %v53_v29, %v49_v28 }
   0xc   :  { %v382_v31 = vld [vmem:[%s3631_s3 + $0xa8] sm:$0xff]  ;;  %v381_v33 = vld [vmem:[%s3631_s3 + $0xa0] sm:$0xff]  ;;  %1994 = vmatpush1.bf16.msra.mxu0 %v2737_v26 }
   0xd   :  { %v2758_v35 = vpack.c.bf16 %v382_v31, %v378_v30  ;;  %v58_v36 = vld [vmem:[%s3630_s2 + $0xc8] sm:$0xff]  ;;  %v57_v38 = vld [vmem:[%s3630_s2 + $0xc0] sm:$0xff]  ;;  %1932 = vmatprep.subr.bf16.mxu1 %v1931_v27  ;;  %v2770_v39 = vpack.c.bf16 %v381_v33, %v377_v32 }
   0xe   :  { %v62_v37 = vld [vmem:[%s3630_s2 + $0xe8] sm:$0xff]  ;;  %v61_v41 = vld [vmem:[%s3630_s2 + $0xe0] sm:$0xff]  ;;  %1934 = vmatpush1.bf16.msra.mxu1 %v1933_v34 }
   0xf   :  { %v1935_v40 = vpack.c.bf16 %v62_v37, %v58_v36  ;;  %v386_v42 = vld [vmem:[%s3631_s3 + $0xc8] sm:$0xff]  ;;  %1996 = vmatprep.subr.bf16.mxu0 %v2758_v35  ;;  %v385_v45 = vld [vmem:[%s3631_s3 + $0xc0] sm:$0xff]  ;;  %v1937_v49 = vpack.c.bf16 %v61_v41, %v57_v38  ;;  %v36_v37 = vld [vmem:[%s3630_s2 + $0x18] sm:$0xff] }
  0x10   :  { %v390_v43 = vld [vmem:[%s3631_s3 + $0xe8] sm:$0xff]  ;;  %v389_v46 = vld [vmem:[%s3631_s3 + $0xe0] sm:$0xff]  ;;  %1998 = vmatpush1.bf16.msra.mxu0 %v2770_v39  ;;  %v40_v38 = vld [vmem:[%s3630_s2 + $0x38] sm:$0xff] }
  0x11   :  { %v2782_v44 = vpack.c.bf16 %v390_v43, %v386_v42  ;;  %v66_v47 = vld [vmem:[%s3630_s2 + $0x108] sm:$0xff]  ;;  %1936 = vmatprep.subr.bf16.mxu1 %v1935_v40  ;;  %v2803_v52 = vpack.c.bf16 %v389_v46, %v385_v45  ;;  %v65_v54 = vld [vmem:[%s3630_s2 + $0x100] sm:$0xff]  ;;  %v1955_v42 = vpack.c.bf16 %v40_v38, %v36_v37  ;;  %v35_v43 = vld [vmem:[%s3630_s2 + $0x10] sm:$0xff] }
  0x12   :  { %v70_v48 = vld [vmem:[%s3630_s2 + $0x128] sm:$0xff]  ;;  %v69_v55 = vld [vmem:[%s3630_s2 + $0x120] sm:$0xff]  ;;  %1938 = vmatpush1.bf16.msra.mxu1 %v1937_v49  ;;  %v39_v45 = vld [vmem:[%s3630_s2 + $0x30] sm:$0xff] }
  0x13   :  { %v394_v50 = vld [vmem:[%s3631_s3 + $0x108] sm:$0xff]  ;;  %v1939_v53 = vpack.c.bf16 %v70_v48, %v66_v47  ;;  %v393_v56 = vld [vmem:[%s3631_s3 + $0x100] sm:$0xff]  ;;  %2000 = vmatprep.subr.bf16.mxu0 %v2782_v44  ;;  %v1941_v63 = vpack.c.bf16 %v69_v55, %v65_v54  ;;  %v44_v46 = vld [vmem:[%s3630_s2 + $0x58] sm:$0xff]  ;;  %v1957_v49 = vpack.c.bf16 %v39_v45, %v35_v43 }
  0x14   :  { %v398_v51 = vld [vmem:[%s3631_s3 + $0x128] sm:$0xff]  ;;  %v397_v58 = vld [vmem:[%s3631_s3 + $0x120] sm:$0xff]  ;;  %2002 = vmatpush1.bf16.msra.mxu0 %v2803_v52  ;;  %v48_v47 = vld [vmem:[%s3630_s2 + $0x78] sm:$0xff] }
  0x15   :  { %v2815_v57 = vpack.c.bf16 %v398_v51, %v394_v50  ;;  %v74_v59 = vld [vmem:[%s3630_s2 + $0x148] sm:$0xff]  ;;  %1940 = vmatprep.subr.bf16.mxu1 %v1939_v53  ;;  %v2833_v0 = vpack.c.bf16 %v397_v58, %v393_v56  ;;  %v73_v2 = vld [vmem:[%s3630_s2 + $0x140] sm:$0xff]  ;;  %v1959_v51 = vpack.c.bf16 %v48_v47, %v44_v46  ;;  %v43_v53 = vld [vmem:[%s3630_s2 + $0x50] sm:$0xff] }
  0x16   :  { %v78_v60 = vld [vmem:[%s3630_s2 + $0x168] sm:$0xff]  ;;  %v77_v4 = vld [vmem:[%s3630_s2 + $0x160] sm:$0xff]  ;;  %1942 = vmatpush1.bf16.msra.mxu1 %v1941_v63  ;;  %v47_v54 = vld [vmem:[%s3630_s2 + $0x70] sm:$0xff] }
  0x17   :  { %v402_v61 = vld [vmem:[%s3631_s3 + $0x148] sm:$0xff]  ;;  %v1943_v1 = vpack.c.bf16 %v78_v60, %v74_v59  ;;  %v401_v5 = vld [vmem:[%s3631_s3 + $0x140] sm:$0xff]  ;;  %2004 = vmatprep.subr.bf16.mxu0 %v2815_v57  ;;  %v1945_v14 = vpack.c.bf16 %v77_v4, %v73_v2  ;;  %v52_v55 = vld [vmem:[%s3630_s2 + $0x98] sm:$0xff]  ;;  %v1961_v58 = vpack.c.bf16 %v47_v54, %v43_v53 }
  0x18   :  { %v406_v62 = vld [vmem:[%s3631_s3 + $0x168] sm:$0xff]  ;;  %v405_v7 = vld [vmem:[%s3631_s3 + $0x160] sm:$0xff]  ;;  %2006 = vmatpush1.bf16.msra.mxu0 %v2833_v0  ;;  %v56_v56 = vld [vmem:[%s3630_s2 + $0xb8] sm:$0xff] }
  0x19   :  { %v2845_v6 = vpack.c.bf16 %v406_v62, %v402_v61  ;;  %v82_v8 = vld [vmem:[%s3630_s2 + $0x188] sm:$0xff]  ;;  %1944 = vmatprep.subr.bf16.mxu1 %v1943_v1  ;;  %v2863_v15 = vpack.c.bf16 %v405_v7, %v401_v5  ;;  %v81_v17 = vld [vmem:[%s3630_s2 + $0x180] sm:$0xff]  ;;  %v1963_v60 = vpack.c.bf16 %v56_v56, %v52_v55  ;;  %v51_v61 = vld [vmem:[%s3630_s2 + $0x90] sm:$0xff] }
  0x1a   :  { %v86_v10 = vld [vmem:[%s3630_s2 + $0x1a8] sm:$0xff]  ;;  %v85_v18 = vld [vmem:[%s3630_s2 + $0x1a0] sm:$0xff]  ;;  %1946 = vmatpush1.bf16.msra.mxu1 %v1945_v14  ;;  %v55_v62 = vld [vmem:[%s3630_s2 + $0xb0] sm:$0xff] }
  0x1b   :  { %v410_v11 = vld [vmem:[%s3631_s3 + $0x188] sm:$0xff]  ;;  %v1947_v16 = vpack.c.bf16 %v86_v10, %v82_v8  ;;  %v409_v19 = vld [vmem:[%s3631_s3 + $0x180] sm:$0xff]  ;;  %2008 = vmatprep.subr.bf16.mxu0 %v2845_v6  ;;  %v1949_v28 = vpack.c.bf16 %v85_v18, %v81_v17  ;;  %v60_v63 = vld [vmem:[%s3630_s2 + $0xd8] sm:$0xff]  ;;  %v1965_v2 = vpack.c.bf16 %v55_v62, %v51_v61 }
  0x1c   :  { %v414_v12 = vld [vmem:[%s3631_s3 + $0x1a8] sm:$0xff]  ;;  %v413_v21 = vld [vmem:[%s3631_s3 + $0x1a0] sm:$0xff]  ;;  %2010 = vmatpush1.bf16.msra.mxu0 %v2863_v15  ;;  %v64_v1 = vld [vmem:[%s3630_s2 + $0xf8] sm:$0xff] }
  0x1d   :  { %v2875_v20 = vpack.c.bf16 %v414_v12, %v410_v11  ;;  %v90_v23 = vld [vmem:[%s3630_s2 + $0x1c8] sm:$0xff]  ;;  %1948 = vmatprep.subr.bf16.mxu1 %v1947_v16  ;;  %v2893_v29 = vpack.c.bf16 %v413_v21, %v409_v19  ;;  %v89_v31 = vld [vmem:[%s3630_s2 + $0x1c0] sm:$0xff]  ;;  %v2984_v4 = vld [vmem:[%s3632_s0 + $0x10] sm:$0xff]  ;;  %v1967_v5 = vpack.c.bf16 %v64_v1, %v60_v63 }
  0x1e   :  { %v94_v24 = vld [vmem:[%s3630_s2 + $0x1e8] sm:$0xff]  ;;  %v93_v32 = vld [vmem:[%s3630_s2 + $0x1e0] sm:$0xff]  ;;  %1950 = vmatpush1.bf16.msra.mxu1 %v1949_v28  ;;  %v59_v7 = vld [vmem:[%s3630_s2 + $0xd0] sm:$0xff] }
  0x1f   :  { %v418_v25 = vld [vmem:[%s3631_s3 + $0x1c8] sm:$0xff]  ;;  %v1951_v30 = vpack.c.bf16 %v94_v24, %v90_v23  ;;  %v417_v33 = vld [vmem:[%s3631_s3 + $0x1c0] sm:$0xff]  ;;  %2012 = vmatprep.subr.bf16.mxu0 %v2875_v20  ;;  %v1953_v40 = vpack.c.bf16 %v93_v32, %v89_v31  ;;  %v63_v8 = vld [vmem:[%s3630_s2 + $0xf0] sm:$0xff] }
  0x20   :  { %v422_v27 = vld [vmem:[%s3631_s3 + $0x1e8] sm:$0xff]  ;;  %v421_v36 = vld [vmem:[%s3631_s3 + $0x1e0] sm:$0xff]  ;;  %2014 = vmatpush1.bf16.msra.mxu0 %v2893_v29  ;;  %v68_v10 = vld [vmem:[%s3630_s2 + $0x118] sm:$0xff]  ;;  %v1969_v12 = vpack.c.bf16 %v63_v8, %v59_v7 }
  0x21   :  { %v2905_v34 = vpack.c.bf16 %v422_v27, %v418_v25  ;;  %1952 = vmatprep.subr.bf16.mxu1 %v1951_v30  ;;  %v2917_v41 = vpack.c.bf16 %v421_v36, %v417_v33  ;;  %v2935_v48 = vld [vmem:[%s3632_s0] sm:$0xff]  ;;  %v2961_v59 = vld [vmem:[%s3632_s0 + $0x8] sm:$0xff]  ;;  %v72_v11 = vld [vmem:[%s3630_s2 + $0x138] sm:$0xff] }
  0x22   :  { %1954 = vmatpush1.bf16.msra.mxu1 %v1953_v40  ;;  %v2941_v50 = vld [vmem:[%s3633_s1] sm:$0xff]  ;;  %v3005_v14 = vld [vmem:[%s3632_s0 + $0x18] sm:$0xff]  ;;  %v1971_v16 = vpack.c.bf16 %v72_v11, %v68_v10  ;;  %v67_v17 = vld [vmem:[%s3630_s2 + $0x110] sm:$0xff] }
  0x23   :  { %2016 = vmatprep.subr.bf16.mxu0 %v2905_v34  ;;  %1956 = vmatprep.subr.bf16.mxu1 %v1955_v42  ;;  %v71_v18 = vld [vmem:[%s3630_s2 + $0x130] sm:$0xff]  ;;  %v76_v19 = vld [vmem:[%s3630_s2 + $0x158] sm:$0xff]  ;;  %v3026_v24 = vld [vmem:[%s3632_s0 + $0x20] sm:$0xff] }
  0x24   :  { %2018 = vmatpush1.bf16.msra.mxu0 %v2917_v41  ;;  %v80_v21 = vld [vmem:[%s3630_s2 + $0x178] sm:$0xff]  ;;  %v1973_v23 = vpack.c.bf16 %v71_v18, %v67_v17  ;;  %v75_v27 = vld [vmem:[%s3630_s2 + $0x150] sm:$0xff]  ;;  %v3047_v33 = vld [vmem:[%s3632_s0 + $0x28] sm:$0xff] }
  0x25   :  { %2052 = vmatprep.subr.bf16.mxu0 %v2693_v9  ;;  %184 = vmatmul.mubr.f32.vlgmr.msra.gmra.mrb[0].mxu1 %v2935_v48  ;;  %v1975_v25 = vpack.c.bf16 %v80_v21, %v76_v19  ;;  %v79_v28 = vld [vmem:[%s3630_s2 + $0x170] sm:$0xff]  ;;  %v84_v30 = vld [vmem:[%s3630_s2 + $0x198] sm:$0xff] }
  0x26   :  { %1958 = vmatpush1.bf16.msra.mxu1 %v1957_v49  ;;  %189 = vmatprep.mubr.f32.mxu1 %v3638_v3  ;;  %v88_v31 = vld [vmem:[%s3630_s2 + $0x1b8] sm:$0xff]  ;;  %v1977_v32 = vpack.c.bf16 %v79_v28, %v75_v27  ;;  %v83_v37 = vld [vmem:[%s3630_s2 + $0x190] sm:$0xff] }
  0x27   :  { %498 = vmatmul.mubr.f32.vlgmr.msra.gmra.mrb[0].mxu0 %v2941_v50  ;;  %1960 = vmatprep.subr.bf16.mxu1 %v1959_v51  ;;  %v1979_v36 = vpack.c.bf16 %v88_v31, %v84_v30  ;;  %v87_v38 = vld [vmem:[%s3630_s2 + $0x1b0] sm:$0xff]  ;;  %v92_v40 = vld [vmem:[%s3630_s2 + $0x1d8] sm:$0xff] }
  0x28   :  { %2054 = vmatpush1.bf16.msra.mxu0 %v2704_v13  ;;  %675 = vmatprep.mubr.f32.mxu0 %v3638_v3  ;;  %v96_v42 = vld [vmem:[%s3630_s2 + $0x1f8] sm:$0xff]  ;;  %v1981_v43 = vpack.c.bf16 %v87_v38, %v83_v37  ;;  %v3068_v45 = vld [vmem:[%s3632_s0 + $0x30] sm:$0xff] }
  0x29   :  { %190 = vmatmul.mubr.f32.gmra.mrb[2].mxu1 %v2961_v59  ;;  %2056 = vmatprep.subr.bf16.mxu0 %v2726_v22  ;;  %v1983_v46 = vpack.c.bf16 %v96_v42, %v92_v40  ;;  %v91_v47 = vld [vmem:[%s3630_s2 + $0x1d0] sm:$0xff]  ;;  %v364_v51 = vld [vmem:[%s3631_s3 + $0x18] sm:$0xff] }
  0x2a   :  { %1962 = vmatpush1.bf16.msra.mxu1 %v1961_v58  ;;  %195 = vmatprep.mubr.f32.mxu1 %v3638_v3  ;;  %v95_v49 = vld [vmem:[%s3630_s2 + $0x1f0] sm:$0xff]  ;;  %v368_v53 = vld [vmem:[%s3631_s3 + $0x38] sm:$0xff] }
  0x2b   :  { %1964 = vmatprep.subr.bf16.mxu1 %v1963_v60  ;;  %v1985_v54 = vpack.c.bf16 %v95_v49, %v91_v47  ;;  %v3086_v55 = vpack.c.bf16 %v368_v53, %v364_v51  ;;  %v363_v56 = vld [vmem:[%s3631_s3 + $0x10] sm:$0xff]  ;;  %v372_v60 = vld [vmem:[%s3631_s3 + $0x58] sm:$0xff] }
  0x2c   :  { %2058 = vmatpush1.bf16.msra.mxu0 %v2737_v26  ;;  %v367_v58 = vld [vmem:[%s3631_s3 + $0x30] sm:$0xff]  ;;  %v376_v61 = vld [vmem:[%s3631_s3 + $0x78] sm:$0xff] }
  0x2d   :  { %196 = vmatmul.mubr.f32.gmra.mrb[4].mxu1 %v2984_v4  ;;  %2060 = vmatprep.subr.bf16.mxu0 %v2758_v35  ;;  %v3102_v62 = vpack.c.bf16 %v367_v58, %v363_v56  ;;  %v3105_v63 = vpack.c.bf16 %v376_v61, %v372_v60  ;;  %v371_v1 = vld [vmem:[%s3631_s3 + $0x50] sm:$0xff]  ;;  %v384_v7 = vld [vmem:[%s3631_s3 + $0xb8] sm:$0xff]  ;;  %v97_v61 = vld [vmem:[%s3634_s4] sm:$0xf] }
  0x2e   :  { %1966 = vmatpush1.bf16.msra.mxu1 %v1965_v2  ;;  %201 = vmatprep.mubr.f32.mxu1 %v3638_v3  ;;  %v375_v2 = vld [vmem:[%s3631_s3 + $0x70] sm:$0xff]  ;;  %v408_v31 = vld [vmem:[%s3631_s3 + $0x178] sm:$0xff] }
  0x2f   :  { %1968 = vmatprep.subr.bf16.mxu1 %v1967_v5  ;;  %v380_v5 = vld [vmem:[%s3631_s3 + $0x98] sm:$0xff]  ;;  %v3123_v8 = vpack.c.bf16 %v375_v2, %v371_v1  ;;  %v379_v11 = vld [vmem:[%s3631_s3 + $0x90] sm:$0xff] }
  0x30   :  { %2062 = vmatpush1.bf16.msra.mxu0 %v2770_v39  ;;  %v3127_v10 = vpack.c.bf16 %v384_v7, %v380_v5  ;;  %v387_v19 = vld [vmem:[%s3631_s3 + $0xd0] sm:$0xff]  ;;  %v416_v40 = vld [vmem:[%s3631_s3 + $0x1b8] sm:$0xff] }
  0x31   :  { %202 = vmatmul.mubr.f32.gmra.mrb[6].mxu1 %v3005_v14  ;;  %2064 = vmatprep.subr.bf16.mxu0 %v2782_v44  ;;  %v391_v21 = vld [vmem:[%s3631_s3 + $0xf0] sm:$0xff]  ;;  %v424_v49 = vld [vmem:[%s3631_s3 + $0x1f8] sm:$0xff] }
  0x32   :  { %1970 = vmatpush1.bf16.msra.mxu1 %v1969_v12  ;;  %207 = vmatprep.mubr.f32.mxu1 %v3638_v3  ;;  %v388_v12 = vld [vmem:[%s3631_s3 + $0xd8] sm:$0xff]  ;;  %v395_v28 = vld [vmem:[%s3631_s3 + $0x110] sm:$0xff] }
  0x33   :  { %1972 = vmatprep.subr.bf16.mxu1 %v1971_v16  ;;  %v392_v16 = vld [vmem:[%s3631_s3 + $0xf8] sm:$0xff]  ;;  %v399_v30 = vld [vmem:[%s3631_s3 + $0x130] sm:$0xff] }
  0x34   :  { %2066 = vmatpush1.bf16.msra.mxu0 %v2803_v52  ;;  %v3147_v18 = vpack.c.bf16 %v392_v16, %v388_v12  ;;  %v403_v37 = vld [vmem:[%s3631_s3 + $0x150] sm:$0xff] }
  0x35   :  { %208 = vmatmul.mubr.f32.gmra.mrb[8].mxu1 %v3026_v24  ;;  %2068 = vmatprep.subr.bf16.mxu0 %v2815_v57  ;;  %v407_v38 = vld [vmem:[%s3631_s3 + $0x170] sm:$0xff] }
  0x36   :  { %1974 = vmatpush1.bf16.msra.mxu1 %v1973_v23  ;;  %213 = vmatprep.mubr.f32.mxu1 %v3638_v3  ;;  %v400_v23 = vld [vmem:[%s3631_s3 + $0x138] sm:$0xff]  ;;  %v3203_v42 = vpack.c.bf16 %v407_v38, %v403_v37  ;;  %v415_v47 = vld [vmem:[%s3631_s3 + $0x1b0] sm:$0xff] }
  0x37   :  { %1976 = vmatprep.subr.bf16.mxu1 %v1975_v25  ;;  %v3163_v25 = vpack.c.bf16 %v391_v21, %v387_v19  ;;  %v423_v56 = vld [vmem:[%s3631_s3 + $0x1f0] sm:$0xff] }
  0x38   :  { %2070 = vmatpush1.bf16.msra.mxu0 %v2833_v0 }
  0x39   :  { %214 = vmatmul.mubr.f32.gmra.mrb[10].mxu1 %v3047_v33  ;;  %2072 = vmatprep.subr.bf16.mxu0 %v2845_v6 }
  0x3a   :  { %1978 = vmatpush1.bf16.msra.mxu1 %v1977_v32  ;;  %219 = vmatprep.mubr.f32.mxu1 %v3638_v3  ;;  %v3183_v32 = vpack.c.bf16 %v399_v30, %v395_v28 }
  0x3b   :  { %1980 = vmatprep.subr.bf16.mxu1 %v1979_v36 }
  0x3c   :  { %2074 = vmatpush1.bf16.msra.mxu0 %v2863_v15 }
  0x3d   :  { %220 = vmatmul.mubr.f32.gmra.mrb[12].mxu1 %v3068_v45  ;;  %2076 = vmatprep.subr.bf16.mxu0 %v2875_v20 }
  0x3e   :  { %1982 = vmatpush1.bf16.msra.mxu1 %v1981_v43  ;;  %290 = vmatprep.mubr.f32.mxu1 %v3638_v3 }
  0x3f   :  { %1984 = vmatprep.subr.bf16.mxu1 %v1983_v46  ;;  %v411_v46 = vld [vmem:[%s3631_s3 + $0x190] sm:$0xff] }
  0x40   :  { %2078 = vmatpush1.bf16.msra.mxu0 %v2893_v29  ;;  %v3223_v51 = vpack.c.bf16 %v415_v47, %v411_v46 }
  0x41   :  { %2080 = vmatprep.subr.bf16.mxu0 %v2905_v34 }
  0x42   :  { %1986 = vmatpush1.bf16.msra.mxu1 %v1985_v54  ;;  %v419_v54 = vld [vmem:[%s3631_s3 + $0x1d0] sm:$0xff] }
  0x43   :  { %2020 = vmatprep.subr.bf16.mxu1 %v3086_v55 }
  0x44   :  { %2082 = vmatpush1.bf16.msra.mxu0 %v2917_v41 }
  0x45   :  { %291 = vmatmul.mubr.f32.vlgmr.msra.gmra.mrb[14].mxu1 %v2935_v48  ;;  %2116 = vmatprep.subr.bf16.mxu0 %v2693_v9  ;;  %v383_v48 = vld [vmem:[%s3631_s3 + $0xb0] sm:$0xff] }
  0x46   :  { %2022 = vmatpush1.bf16.msra.mxu1 %v3102_v62  ;;  %296 = vmatprep.mubr.f32.mxu1 %v3638_v3  ;;  %v3143_v17 = vpack.c.bf16 %v383_v48, %v379_v11 }
  0x47   :  { %2024 = vmatprep.subr.bf16.mxu1 %v3105_v63 }
  0x49   :  { %297 = vmatmul.mubr.f32.gmra.mrb[16].mxu1 %v2961_v59  ;;  %v396_v59 = vld [vmem:[%s3631_s3 + $0x118] sm:$0xff] }
  0x4a   :  { %2026 = vmatpush1.bf16.msra.mxu1 %v3123_v8  ;;  %302 = vmatprep.mubr.f32.mxu1 %v3638_v3  ;;  %v3167_v27 = vpack.c.bf16 %v400_v23, %v396_v59 }
  0x4b   :  { %2028 = vmatprep.subr.bf16.mxu1 %v3127_v10 }
  0x4d   :  { %303 = vmatmul.mubr.f32.gmra.mrb[18].mxu1 %v2984_v4  ;;  %v404_v4 = vld [vmem:[%s3631_s3 + $0x158] sm:$0xff] }
  0x4e   :  { %2030 = vmatpush1.bf16.msra.mxu1 %v3143_v17  ;;  %308 = vmatprep.mubr.f32.mxu1 %v3638_v3  ;;  %v3187_v36 = vpack.c.bf16 %v408_v31, %v404_v4 }
  0x4f   :  { %2032 = vmatprep.subr.bf16.mxu1 %v3147_v18 }
  0x51   :  { %309 = vmatmul.mubr.f32.gmra.mrb[20].mxu1 %v3005_v14  ;;  %v412_v14 = vld [vmem:[%s3631_s3 + $0x198] sm:$0xff] }
  0x52   :  { %2034 = vmatpush1.bf16.msra.mxu1 %v3163_v25  ;;  %314 = vmatprep.mubr.f32.mxu1 %v3638_v3  ;;  %v3207_v43 = vpack.c.bf16 %v416_v40, %v412_v14 }
  0x53   :  { %2036 = vmatprep.subr.bf16.mxu1 %v3167_v27 }
  0x55   :  { %315 = vmatmul.mubr.f32.gmra.mrb[22].mxu1 %v3026_v24  ;;  %v420_v24 = vld [vmem:[%s3631_s3 + $0x1d8] sm:$0xff] }
  0x56   :  { %2038 = vmatpush1.bf16.msra.mxu1 %v3183_v32  ;;  %320 = vmatprep.mubr.f32.mxu1 %v3638_v3  ;;  %v3227_v53 = vpack.c.bf16 %v424_v49, %v420_v24 }
  0x57   :  { %2040 = vmatprep.subr.bf16.mxu1 %v3187_v36 }
  0x59   :  { %321 = vmatmul.mubr.f32.gmra.mrb[24].mxu1 %v3047_v33  ;;  %v3237_v33 = vpack.c.bf16 %v423_v56, %v419_v54 }
  0x5a   :  { %2042 = vmatpush1.bf16.msra.mxu1 %v3203_v42  ;;  %326 = vmatprep.mubr.f32.mxu1 %v3638_v3 }
  0x5b   :  { %2044 = vmatprep.subr.bf16.mxu1 %v3207_v43 }
  0x5d   :  { %327 = vmatmul.mubr.f32.gmra.mrb[26].mxu1 %v3068_v45  ;;  %v99_v45 = vlaneseq }
  0x5e   :  { %2046 = vmatpush1.bf16.msra.mxu1 %v3223_v51  ;;  %568 = vmatprep.mubr.f32.mxu1 %v3638_v3 }
  0x5f   :  { %2048 = vmatprep.subr.bf16.mxu1 %v3227_v53  ;;  %v100_v58 = vshrl.u32 %v99_v45, 7 }
  0x61   :  { %v101_v60 = vsub.s32 0, %v100_v58  ;;  %v105_v1 = vsub.s32 1, %v100_v58 }
  0x62   :  { %2050 = vmatpush1.bf16.msra.mxu1 %v3237_v33 }
  0x63   :  { %2084 = vmatprep.subr.bf16.mxu1 %v3086_v55  ;;  %v102_v2 = vrot.slane %v97_v61, %v101_v60  ;;  %v106_v5 = vrot.slane %v97_v61, %v105_v1 }
  0x65   :  { %569 = vmatmul.mubr.f32.vlgmr.msra.gmra.mrb[14].mxu1 %v2941_v50 }
  0x66   :  { %2086 = vmatpush1.bf16.msra.mxu1 %v3102_v62  ;;  %746 = vmatprep.mubr.f32.mxu1 %v3638_v3 }
  0x67   :  { %2088 = vmatprep.subr.bf16.mxu1 %v3105_v63 }
  0x6a   :  { %2090 = vmatpush1.bf16.msra.mxu1 %v3123_v8 }
  0x6b   :  { %2092 = vmatprep.subr.bf16.mxu1 %v3127_v10 }
  0x6e   :  { %2094 = vmatpush1.bf16.msra.mxu1 %v3143_v17 }
  0x6f   :  { %2096 = vmatprep.subr.bf16.mxu1 %v3147_v18 }
  0x72   :  { %2098 = vmatpush1.bf16.msra.mxu1 %v3163_v25 }
  0x73   :  { %2100 = vmatprep.subr.bf16.mxu1 %v3167_v27 }
  0x76   :  { %2102 = vmatpush1.bf16.msra.mxu1 %v3183_v32 }
  0x77   :  { %2104 = vmatprep.subr.bf16.mxu1 %v3187_v36 }
  0x7a   :  { %2106 = vmatpush1.bf16.msra.mxu1 %v3203_v42 }
  0x7b   :  { %2108 = vmatprep.subr.bf16.mxu1 %v3207_v43 }
  0x7e   :  { %2110 = vmatpush1.bf16.msra.mxu1 %v3223_v51 }
  0x7f   :  { %2112 = vmatprep.subr.bf16.mxu1 %v3227_v53 }
  0x82   :  { %2114 = vmatpush1.bf16.msra.mxu1 %v3237_v33 }
  0x83   :  { %2148 = vmatprep.subr.bf16.mxu1 %v3086_v55 }
  0xf8   :  { %v185_v7 = vpop.f32.mrb[0].mxu1 }
  0xf9   :  { %v186_v11 = vadd.f32 %v185_v7, %v102_v2  ;;  %v187_v48 = vpop.f32.mrb[1].mxu1 }
  0xfa   :  { %v499_v12 = vpop.f32.mrb[0].mxu0  ;;  %v188_v16 = vadd.f32 %v187_v48, %v106_v5 }
  0xfb   :  { %v501_v19 = vpop.f32.mrb[1].mxu0  ;;  %v575_v21 = vadd.f32 %v499_v12, %v186_v11 }
  0xfc   :  { %v576_v59 = vadd.f32 %v501_v19, %v188_v16  ;;  %v191_v23 = vpop.f32.mrb[2].mxu1 }
  0xfd   :  { %v3264_v28 = vadd.f32 %v191_v23, %v102_v2  ;;  %v193_v30 = vpop.f32.mrb[3].mxu1 }
  0xfe   :  { %v3266_v4 = vadd.f32 %v193_v30, %v106_v5  ;;  %v1826_v23 = vmul.f32 -1.442695, %v576_v59  ;;  %v1825_v30 = vmul.f32 -1.442695, %v575_v21 }
 0x100   :  { %v197_v31 = vpop.f32.mrb[4].mxu1  ;;  %2518 = vpow2.f32 %v1826_v23 }
 0x101   :  { %v3268_v37 = vadd.f32 %v197_v31, %v102_v2  ;;  %v199_v38 = vpop.f32.mrb[5].mxu1  ;;  %2520 = vpow2.f32 %v1825_v30  ;;  %v109_v31 = vsub.s32 2, %v100_v58 }
 0x102   :  { %v3270_v14 = vadd.f32 %v199_v38, %v106_v5 }
 0x104   :  { %v203_v40 = vpop.f32.mrb[6].mxu1 }
 0x105   :  { %v3272_v46 = vadd.f32 %v203_v40, %v102_v2  ;;  %v205_v47 = vpop.f32.mrb[7].mxu1  ;;  %v113_v40 = vsub.s32 3, %v100_v58 }
 0x106   :  { %v3274_v24 = vadd.f32 %v205_v47, %v106_v5 }
 0x108   :  { %v209_v49 = vpop.f32.mrb[8].mxu1 }
 0x109   :  { %v3276_v54 = vadd.f32 %v209_v49, %v102_v2  ;;  %v211_v56 = vpop.f32.mrb[9].mxu1 }
 0x10a   :  { %v3278_v45 = vadd.f32 %v211_v56, %v106_v5  ;;  %v2519_v38 = vpop.eup %2518  ;;  %v3288_v56 = vrot.slane %v97_v61, %v109_v31 }
 0x10b   :  { %v2521_v47 = vpop.eup %2520  ;;  %v588_v49 = vadd.f32 1.0, %v2519_v38 }
 0x10c   :  { %v215_v60 = vpop.f32.mrb[10].mxu1 }
 0x10d   :  { %v3280_v1 = vadd.f32 %v215_v60, %v102_v2  ;;  %v217_v7 = vpop.f32.mrb[11].mxu1  ;;  %v582_v60 = vadd.f32 1.0, %v2521_v47  ;;  %2522 = vrcp.f32 %v588_v49 }
 0x10e   :  { %v3282_v11 = vadd.f32 %v217_v7, %v106_v5  ;;  %v3290_v7 = vrot.slane %v97_v61, %v113_v40 }
 0x10f   :  { %2524 = vrcp.f32 %v582_v60 }
 0x110   :  { %v221_v48 = vpop.f32.mrb[12].mxu1 }
 0x111   :  { %v3284_v12 = vadd.f32 %v221_v48, %v102_v2  ;;  %v223_v16 = vpop.f32.mrb[13].mxu1 }
 0x112   :  { %v3286_v19 = vadd.f32 %v223_v16, %v106_v5 }
 0x117   :  { %v2523_v48 = vpop.eup %2522 }
 0x118   :  { %v598_v23 = vmul.f32 %v2523_v48, %v2941_v50  ;;  %v3640_v50 = vmov 0.0  }
 0x119   :  { %v2525_v58 = vpop.eup %2524 }
 0x138   :  { %v570_v3 = vpop.f32.mrb[14].mxu1 }
 0x139   :  { %v2487_v2 = vadd.f32 %v570_v3, %v3288_v56  ;;  %v572_v5 = vpop.f32.mrb[15].mxu1 }
 0x13a   :  { %v2488_v21 = vadd.f32 %v572_v5, %v3290_v7 }
 0x13b   :  { %2526 = vtanh.f32 %v2487_v2 }
 0x13c   :  { %v1827_v59 = vmul.f32 -1.442695, %v2488_v21 }
 0x13e   :  { %2528 = vpow2.f32 %v1827_v59 }
 0x145   :  { %v2527_v16 = vpop.eup %2526 }
 0x146   :  { %v599_v30 = vmul.f32 %v2527_v16, %v2525_v58 }
 0x148   :  { %v2529_v31 = vpop.eup %2528  ;;  %v3295_v61 = vadd.f32 %v599_v30, %v598_v23 }
 0x149   :  { %v595_v38 = vadd.f32 1.0, %v2529_v31 }
 0x14a   :  { %2530 = vtanh.f32 %v3295_v61 }
 0x14b   :  { %2532 = vrcp.f32 %v595_v38 }
 0x154   :  { %v2531_v3 = vpop.eup %2530 }
 0x155   :  { %v2533_v40 = vpop.eup %2532 }
 0x156   :  { %v3298_v47 = vmul.f32 %v2533_v40, %v2531_v3 }
 0x158   :  { %676 = vmatmul.mubr.f32.vlgmr.msra.gmra.mrb[2].mxu0 %v3298_v47  ;;  %747 = vmatmul.mubr.f32.vlgmr.msra.gmra.mrb[16].mxu1 %v3298_v47 }
 0x159   :  { %2118 = vmatpush1.bf16.msra.mxu0 %v2704_v13  ;;  %2150 = vmatpush1.bf16.msra.mxu1 %v3102_v62 }
 0x15a   :  { %2120 = vmatprep.subr.bf16.mxu0 %v2726_v22  ;;  %2152 = vmatprep.subr.bf16.mxu1 %v3105_v63 }
 0x15b   :  { %854 = vmatprep.mubr.f32.mxu0 %v3640_v50  ;;  %925 = vmatprep.mubr.f32.mxu1 %v3640_v50 }
 0x15d   :  { %2122 = vmatpush1.bf16.msra.mxu0 %v2737_v26  ;;  %2154 = vmatpush1.bf16.msra.mxu1 %v3123_v8 }
 0x15e   :  { %2124 = vmatprep.subr.bf16.mxu0 %v2758_v35  ;;  %2156 = vmatprep.subr.bf16.mxu1 %v3127_v10 }
 0x161   :  { %2126 = vmatpush1.bf16.msra.mxu0 %v2770_v39  ;;  %2158 = vmatpush1.bf16.msra.mxu1 %v3143_v17 }
 0x162   :  { %2128 = vmatprep.subr.bf16.mxu0 %v2782_v44  ;;  %2160 = vmatprep.subr.bf16.mxu1 %v3147_v18 }
 0x165   :  { %2130 = vmatpush1.bf16.msra.mxu0 %v2803_v52  ;;  %2162 = vmatpush1.bf16.msra.mxu1 %v3163_v25 }
 0x166   :  { %2132 = vmatprep.subr.bf16.mxu0 %v2815_v57  ;;  %2164 = vmatprep.subr.bf16.mxu1 %v3167_v27 }
 0x169   :  { %2134 = vmatpush1.bf16.msra.mxu0 %v2833_v0  ;;  %2166 = vmatpush1.bf16.msra.mxu1 %v3183_v32 }
 0x16a   :  { %2136 = vmatprep.subr.bf16.mxu0 %v2845_v6  ;;  %2168 = vmatprep.subr.bf16.mxu1 %v3187_v36 }
 0x16d   :  { %2138 = vmatpush1.bf16.msra.mxu0 %v2863_v15  ;;  %2170 = vmatpush1.bf16.msra.mxu1 %v3203_v42 }
 0x16e   :  { %2140 = vmatprep.subr.bf16.mxu0 %v2875_v20  ;;  %2172 = vmatprep.subr.bf16.mxu1 %v3207_v43 }
 0x171   :  { %2142 = vmatpush1.bf16.msra.mxu0 %v2893_v29  ;;  %2174 = vmatpush1.bf16.msra.mxu1 %v3223_v51 }
 0x172   :  { %2144 = vmatprep.subr.bf16.mxu0 %v2905_v34  ;;  %2176 = vmatprep.subr.bf16.mxu1 %v3227_v53 }
 0x175   :  { %2146 = vmatpush1.bf16.msra.mxu0 %v2917_v41  ;;  %2178 = vmatpush1.bf16.msra.mxu1 %v3237_v33 }
 0x176   :  { %2180 = vmatprep.subr.bf16.mxu0 %v2693_v9  ;;  %2212 = vmatprep.subr.bf16.mxu1 %v3086_v55 }
 0x22b   :  { %v677_v49 = vpop.f32.mrb[2].mxu0  ;;  %v748_v60 = vpop.f32.mrb[16].mxu1 }
 0x22c   :  { %v753_v2 = vadd.f32 %v677_v49, %v3264_v28  ;;  %v679_v5 = vpop.f32.mrb[3].mxu0  ;;  %v750_v21 = vpop.f32.mrb[17].mxu1  ;;  %v2489_v30 = vadd.f32 %v748_v60, %v3288_v56 }
 0x22d   :  { %v754_v59 = vadd.f32 %v679_v5, %v3266_v4  ;;  %v2490_v16 = vadd.f32 %v750_v21, %v3290_v7 }
 0x22e   :  { %v1828_v48 = vmul.f32 -1.442695, %v753_v2 }
 0x22f   :  { %v1829_v58 = vmul.f32 -1.442695, %v754_v59  ;;  %v1830_v23 = vmul.f32 -1.442695, %v2490_v16 }
 0x230   :  { %2534 = vpow2.f32 %v1828_v48 }
 0x231   :  { %2536 = vpow2.f32 %v1829_v58 }
 0x232   :  { %2538 = vpow2.f32 %v1830_v23 }
 0x233   :  { %2540 = vtanh.f32 %v2489_v30 }
 0x23a   :  { %v2535_v31 = vpop.eup %2534 }
 0x23b   :  { %v2537_v38 = vpop.eup %2536  ;;  %v760_v3 = vadd.f32 1.0, %v2535_v31 }
 0x23c   :  { %v766_v40 = vadd.f32 1.0, %v2537_v38  ;;  %v2539_v28 = vpop.eup %2538 }
 0x23d   :  { %2542 = vrcp.f32 %v760_v3  ;;  %v2541_v49 = vpop.eup %2540  ;;  %v773_v59 = vadd.f32 1.0, %v2539_v28 }
 0x23e   :  { %2544 = vrcp.f32 %v766_v40 }
 0x23f   :  { %2546 = vrcp.f32 %v773_v59 }
 0x247   :  { %v2543_v4 = vpop.eup %2542 }
 0x248   :  { %v2545_v2 = vpop.eup %2544  ;;  %v777_v5 = vmul.f32 %v2543_v4, %v2541_v49 }
 0x249   :  { %v776_v48 = vmul.f32 %v2545_v2, %v3295_v61  ;;  %v2547_v60 = vpop.eup %2546 }
 0x24b   :  { %v3341_v21 = vadd.f32 %v777_v5, %v776_v48 }
 0x24d   :  { %2548 = vtanh.f32 %v3341_v21 }
 0x257   :  { %v2549_v58 = vpop.eup %2548 }
 0x258   :  { %v3344_v16 = vmul.f32 %v2549_v58, %v2547_v60 }
 0x25a   :  { %855 = vmatmul.mubr.f32.vlgmr.msra.gmra.mrb[4].mxu0 %v3344_v16  ;;  %926 = vmatmul.mubr.f32.vlgmr.msra.gmra.mrb[18].mxu1 %v3344_v16 }
 0x25b   :  { %2182 = vmatpush1.bf16.msra.mxu0 %v2704_v13  ;;  %2214 = vmatpush1.bf16.msra.mxu1 %v3102_v62 }
 0x25c   :  { %2184 = vmatprep.subr.bf16.mxu0 %v2726_v22  ;;  %2216 = vmatprep.subr.bf16.mxu1 %v3105_v63 }
 0x25d   :  { %1033 = vmatprep.mubr.f32.mxu0 %v3640_v50  ;;  %1104 = vmatprep.mubr.f32.mxu1 %v3640_v50 }
 0x25f   :  { %2186 = vmatpush1.bf16.msra.mxu0 %v2737_v26  ;;  %2218 = vmatpush1.bf16.msra.mxu1 %v3123_v8 }
 0x260   :  { %2188 = vmatprep.subr.bf16.mxu0 %v2758_v35  ;;  %2220 = vmatprep.subr.bf16.mxu1 %v3127_v10 }
 0x263   :  { %2190 = vmatpush1.bf16.msra.mxu0 %v2770_v39  ;;  %2222 = vmatpush1.bf16.msra.mxu1 %v3143_v17 }
 0x264   :  { %2192 = vmatprep.subr.bf16.mxu0 %v2782_v44  ;;  %2224 = vmatprep.subr.bf16.mxu1 %v3147_v18 }
 0x267   :  { %2194 = vmatpush1.bf16.msra.mxu0 %v2803_v52  ;;  %2226 = vmatpush1.bf16.msra.mxu1 %v3163_v25 }
 0x268   :  { %2196 = vmatprep.subr.bf16.mxu0 %v2815_v57  ;;  %2228 = vmatprep.subr.bf16.mxu1 %v3167_v27 }
 0x26b   :  { %2198 = vmatpush1.bf16.msra.mxu0 %v2833_v0  ;;  %2230 = vmatpush1.bf16.msra.mxu1 %v3183_v32 }
 0x26c   :  { %2200 = vmatprep.subr.bf16.mxu0 %v2845_v6  ;;  %2232 = vmatprep.subr.bf16.mxu1 %v3187_v36 }
 0x26f   :  { %2202 = vmatpush1.bf16.msra.mxu0 %v2863_v15  ;;  %2234 = vmatpush1.bf16.msra.mxu1 %v3203_v42 }
 0x270   :  { %2204 = vmatprep.subr.bf16.mxu0 %v2875_v20  ;;  %2236 = vmatprep.subr.bf16.mxu1 %v3207_v43 }
 0x273   :  { %2206 = vmatpush1.bf16.msra.mxu0 %v2893_v29  ;;  %2238 = vmatpush1.bf16.msra.mxu1 %v3223_v51 }
 0x274   :  { %2208 = vmatprep.subr.bf16.mxu0 %v2905_v34  ;;  %2240 = vmatprep.subr.bf16.mxu1 %v3227_v53 }
 0x277   :  { %2210 = vmatpush1.bf16.msra.mxu0 %v2917_v41  ;;  %2242 = vmatpush1.bf16.msra.mxu1 %v3237_v33 }
 0x278   :  { %2244 = vmatprep.subr.bf16.mxu0 %v2693_v9  ;;  %2276 = vmatprep.subr.bf16.mxu1 %v3086_v55 }
 0x32d   :  { %v856_v61 = vpop.f32.mrb[4].mxu0  ;;  %v927_v23 = vpop.f32.mrb[18].mxu1 }
 0x32e   :  { %v932_v30 = vadd.f32 %v856_v61, %v3268_v37  ;;  %v858_v31 = vpop.f32.mrb[5].mxu0  ;;  %v929_v38 = vpop.f32.mrb[19].mxu1  ;;  %v2491_v2 = vadd.f32 %v927_v23, %v3288_v56 }
 0x32f   :  { %v933_v3 = vadd.f32 %v858_v31, %v3270_v14  ;;  %v2492_v49 = vadd.f32 %v929_v38, %v3290_v7 }
 0x330   :  { %v1831_v40 = vmul.f32 -1.442695, %v932_v30 }
 0x331   :  { %v1832_v28 = vmul.f32 -1.442695, %v933_v3  ;;  %v1833_v4 = vmul.f32 -1.442695, %v2492_v49 }
 0x332   :  { %2550 = vpow2.f32 %v1831_v40 }
 0x333   :  { %2552 = vpow2.f32 %v1832_v28 }
 0x334   :  { %2554 = vpow2.f32 %v1833_v4 }
 0x335   :  { %2556 = vtanh.f32 %v2491_v2 }
 0x33c   :  { %v2551_v5 = vpop.eup %2550 }
 0x33d   :  { %v2553_v59 = vpop.eup %2552  ;;  %v939_v48 = vadd.f32 1.0, %v2551_v5 }
 0x33e   :  { %v945_v60 = vadd.f32 1.0, %v2553_v59  ;;  %v2555_v37 = vpop.eup %2554 }
 0x33f   :  { %2558 = vrcp.f32 %v939_v48  ;;  %v2557_v58 = vpop.eup %2556  ;;  %v952_v31 = vadd.f32 1.0, %v2555_v37 }
 0x340   :  { %2560 = vrcp.f32 %v945_v60 }
 0x341   :  { %2562 = vrcp.f32 %v952_v31 }
 0x349   :  { %v2559_v14 = vpop.eup %2558 }
 0x34a   :  { %v2561_v61 = vpop.eup %2560  ;;  %v956_v30 = vmul.f32 %v2559_v14, %v2557_v58 }
 0x34b   :  { %v955_v3 = vmul.f32 %v2561_v61, %v3341_v21  ;;  %v2563_v23 = vpop.eup %2562 }
 0x34d   :  { %v3387_v38 = vadd.f32 %v956_v30, %v955_v3 }
 0x34f   :  { %2564 = vtanh.f32 %v3387_v38 }
 0x359   :  { %v2565_v40 = vpop.eup %2564 }
 0x35a   :  { %v3390_v28 = vmul.f32 %v2565_v40, %v2563_v23 }
 0x35c   :  { %1034 = vmatmul.mubr.f32.vlgmr.msra.gmra.mrb[6].mxu0 %v3390_v28  ;;  %1105 = vmatmul.mubr.f32.vlgmr.msra.gmra.mrb[20].mxu1 %v3390_v28 }
 0x35d   :  { %2246 = vmatpush1.bf16.msra.mxu0 %v2704_v13  ;;  %2278 = vmatpush1.bf16.msra.mxu1 %v3102_v62 }
 0x35e   :  { %2248 = vmatprep.subr.bf16.mxu0 %v2726_v22  ;;  %2280 = vmatprep.subr.bf16.mxu1 %v3105_v63 }
 0x35f   :  { %1212 = vmatprep.mubr.f32.mxu0 %v3640_v50  ;;  %1283 = vmatprep.mubr.f32.mxu1 %v3640_v50 }
 0x361   :  { %2250 = vmatpush1.bf16.msra.mxu0 %v2737_v26  ;;  %2282 = vmatpush1.bf16.msra.mxu1 %v3123_v8 }
 0x362   :  { %2252 = vmatprep.subr.bf16.mxu0 %v2758_v35  ;;  %2284 = vmatprep.subr.bf16.mxu1 %v3127_v10 }
 0x365   :  { %2254 = vmatpush1.bf16.msra.mxu0 %v2770_v39  ;;  %2286 = vmatpush1.bf16.msra.mxu1 %v3143_v17 }
 0x366   :  { %2256 = vmatprep.subr.bf16.mxu0 %v2782_v44  ;;  %2288 = vmatprep.subr.bf16.mxu1 %v3147_v18 }
 0x369   :  { %2258 = vmatpush1.bf16.msra.mxu0 %v2803_v52  ;;  %2290 = vmatpush1.bf16.msra.mxu1 %v3163_v25 }
 0x36a   :  { %2260 = vmatprep.subr.bf16.mxu0 %v2815_v57  ;;  %2292 = vmatprep.subr.bf16.mxu1 %v3167_v27 }
 0x36d   :  { %2262 = vmatpush1.bf16.msra.mxu0 %v2833_v0  ;;  %2294 = vmatpush1.bf16.msra.mxu1 %v3183_v32 }
 0x36e   :  { %2264 = vmatprep.subr.bf16.mxu0 %v2845_v6  ;;  %2296 = vmatprep.subr.bf16.mxu1 %v3187_v36 }
 0x371   :  { %2266 = vmatpush1.bf16.msra.mxu0 %v2863_v15  ;;  %2298 = vmatpush1.bf16.msra.mxu1 %v3203_v42 }
 0x372   :  { %2268 = vmatprep.subr.bf16.mxu0 %v2875_v20  ;;  %2300 = vmatprep.subr.bf16.mxu1 %v3207_v43 }
 0x375   :  { %2270 = vmatpush1.bf16.msra.mxu0 %v2893_v29  ;;  %2302 = vmatpush1.bf16.msra.mxu1 %v3223_v51 }
 0x376   :  { %2272 = vmatprep.subr.bf16.mxu0 %v2905_v34  ;;  %2304 = vmatprep.subr.bf16.mxu1 %v3227_v53 }
 0x379   :  { %2274 = vmatpush1.bf16.msra.mxu0 %v2917_v41  ;;  %2306 = vmatpush1.bf16.msra.mxu1 %v3237_v33 }
 0x37a   :  { %2308 = vmatprep.subr.bf16.mxu0 %v2693_v9  ;;  %2340 = vmatprep.subr.bf16.mxu1 %v3086_v55 }
 0x42f   :  { %v1035_v21 = vpop.f32.mrb[6].mxu0  ;;  %v1106_v49 = vpop.f32.mrb[20].mxu1 }
 0x430   :  { %v1111_v4 = vadd.f32 %v1035_v21, %v3272_v46  ;;  %v1037_v2 = vpop.f32.mrb[7].mxu0  ;;  %v1108_v5 = vpop.f32.mrb[21].mxu1  ;;  %v2493_v14 = vadd.f32 %v1106_v49, %v3288_v56 }
 0x431   :  { %v1112_v59 = vadd.f32 %v1037_v2, %v3274_v24  ;;  %v2494_v37 = vadd.f32 %v1108_v5, %v3290_v7 }
 0x432   :  { %v1834_v48 = vmul.f32 -1.442695, %v1111_v4 }
 0x433   :  { %v1835_v60 = vmul.f32 -1.442695, %v1112_v59  ;;  %v1836_v58 = vmul.f32 -1.442695, %v2494_v37 }
 0x434   :  { %2566 = vpow2.f32 %v1834_v48 }
 0x435   :  { %2568 = vpow2.f32 %v1835_v60 }
 0x436   :  { %2570 = vpow2.f32 %v1836_v58 }
 0x437   :  { %2572 = vtanh.f32 %v2493_v14 }
 0x43e   :  { %v2567_v61 = vpop.eup %2566 }
 0x43f   :  { %v2569_v30 = vpop.eup %2568  ;;  %v1118_v31 = vadd.f32 1.0, %v2567_v61 }
 0x440   :  { %v1124_v3 = vadd.f32 1.0, %v2569_v30  ;;  %v2571_v46 = vpop.eup %2570 }
 0x441   :  { %2574 = vrcp.f32 %v1118_v31  ;;  %v2573_v23 = vpop.eup %2572  ;;  %v1131_v4 = vadd.f32 1.0, %v2571_v46 }
 0x442   :  { %2576 = vrcp.f32 %v1124_v3 }
 0x443   :  { %2578 = vrcp.f32 %v1131_v4 }
 0x44b   :  { %v2575_v24 = vpop.eup %2574 }
 0x44c   :  { %v2577_v40 = vpop.eup %2576  ;;  %v1135_v21 = vmul.f32 %v2575_v24, %v2573_v23 }
 0x44d   :  { %v1134_v2 = vmul.f32 %v2577_v40, %v3387_v38  ;;  %v2579_v49 = vpop.eup %2578 }
 0x44f   :  { %v3433_v5 = vadd.f32 %v1135_v21, %v1134_v2 }
 0x451   :  { %2580 = vtanh.f32 %v3433_v5 }
 0x45b   :  { %v2581_v59 = vpop.eup %2580 }
 0x45c   :  { %v3436_v48 = vmul.f32 %v2581_v59, %v2579_v49 }
 0x45e   :  { %1213 = vmatmul.mubr.f32.vlgmr.msra.gmra.mrb[8].mxu0 %v3436_v48  ;;  %1284 = vmatmul.mubr.f32.vlgmr.msra.gmra.mrb[22].mxu1 %v3436_v48 }
 0x45f   :  { %2310 = vmatpush1.bf16.msra.mxu0 %v2704_v13  ;;  %2342 = vmatpush1.bf16.msra.mxu1 %v3102_v62 }
 0x460   :  { %2312 = vmatprep.subr.bf16.mxu0 %v2726_v22  ;;  %2344 = vmatprep.subr.bf16.mxu1 %v3105_v63 }
 0x461   :  { %1391 = vmatprep.mubr.f32.mxu0 %v3640_v50  ;;  %1462 = vmatprep.mubr.f32.mxu1 %v3640_v50 }
 0x463   :  { %2314 = vmatpush1.bf16.msra.mxu0 %v2737_v26  ;;  %2346 = vmatpush1.bf16.msra.mxu1 %v3123_v8 }
 0x464   :  { %2316 = vmatprep.subr.bf16.mxu0 %v2758_v35  ;;  %2348 = vmatprep.subr.bf16.mxu1 %v3127_v10 }
 0x467   :  { %2318 = vmatpush1.bf16.msra.mxu0 %v2770_v39  ;;  %2350 = vmatpush1.bf16.msra.mxu1 %v3143_v17 }
 0x468   :  { %2320 = vmatprep.subr.bf16.mxu0 %v2782_v44  ;;  %2352 = vmatprep.subr.bf16.mxu1 %v3147_v18 }
 0x46b   :  { %2322 = vmatpush1.bf16.msra.mxu0 %v2803_v52  ;;  %2354 = vmatpush1.bf16.msra.mxu1 %v3163_v25 }
 0x46c   :  { %2324 = vmatprep.subr.bf16.mxu0 %v2815_v57  ;;  %2356 = vmatprep.subr.bf16.mxu1 %v3167_v27 }
 0x46f   :  { %2326 = vmatpush1.bf16.msra.mxu0 %v2833_v0  ;;  %2358 = vmatpush1.bf16.msra.mxu1 %v3183_v32 }
 0x470   :  { %2328 = vmatprep.subr.bf16.mxu0 %v2845_v6  ;;  %2360 = vmatprep.subr.bf16.mxu1 %v3187_v36 }
 0x473   :  { %2330 = vmatpush1.bf16.msra.mxu0 %v2863_v15  ;;  %2362 = vmatpush1.bf16.msra.mxu1 %v3203_v42 }
 0x474   :  { %2332 = vmatprep.subr.bf16.mxu0 %v2875_v20  ;;  %2364 = vmatprep.subr.bf16.mxu1 %v3207_v43 }
 0x477   :  { %2334 = vmatpush1.bf16.msra.mxu0 %v2893_v29  ;;  %2366 = vmatpush1.bf16.msra.mxu1 %v3223_v51 }
 0x478   :  { %2336 = vmatprep.subr.bf16.mxu0 %v2905_v34  ;;  %2368 = vmatprep.subr.bf16.mxu1 %v3227_v53 }
 0x47b   :  { %2338 = vmatpush1.bf16.msra.mxu0 %v2917_v41  ;;  %2370 = vmatpush1.bf16.msra.mxu1 %v3237_v33 }
 0x47c   :  { %2372 = vmatprep.subr.bf16.mxu0 %v2693_v9  ;;  %2404 = vmatprep.subr.bf16.mxu1 %v3086_v55 }
 0x531   :  { %v1214_v38 = vpop.f32.mrb[8].mxu0  ;;  %v1285_v60 = vpop.f32.mrb[22].mxu1 }
 0x532   :  { %v1290_v37 = vadd.f32 %v1214_v38, %v3276_v54  ;;  %v1216_v58 = vpop.f32.mrb[9].mxu0  ;;  %v1287_v14 = vpop.f32.mrb[23].mxu1  ;;  %v2495_v23 = vadd.f32 %v1285_v60, %v3288_v56 }
 0x533   :  { %v1291_v61 = vadd.f32 %v1216_v58, %v3278_v45  ;;  %v2496_v3 = vadd.f32 %v1287_v14, %v3290_v7  ;;  %v1689_v14 = vld [vmem:[%s3635_s5 + $0x20] sm:$0xff] }
 0x534   :  { %v1837_v30 = vmul.f32 -1.442695, %v1290_v37 }
 0x535   :  { %v1838_v31 = vmul.f32 -1.442695, %v1291_v61  ;;  %v1839_v46 = vmul.f32 -1.442695, %v2496_v3  ;;  %v1690_v61 = vld [vmem:[%s3635_s5 + $0x28] sm:$0xff]  ;;  %v1692_v3 = vld [vmem:[%s3635_s5 + $0x38] sm:$0xff] }
 0x536   :  { %2582 = vpow2.f32 %v1837_v30  ;;  %v2442_v30 = vpack.c.bf16 %v1690_v61, %v1689_v14 }
 0x537   :  { %2584 = vpow2.f32 %v1838_v31  ;;  %v1691_v31 = vld [vmem:[%s3635_s5 + $0x30] sm:$0xff] }
 0x538   :  { %2586 = vpow2.f32 %v1839_v46  ;;  %v2445_v46 = vpack.c.bf16 %v1692_v3, %v1691_v31 }
 0x539   :  { %2588 = vtanh.f32 %v2495_v23  ;;  %v1693_v23 = vld [vmem:[%s3635_s5 + $0x40] sm:$0xff] }
 0x540   :  { %v2583_v9 = vpop.eup %2582 }
 0x541   :  { %v2585_v24 = vpop.eup %2584  ;;  %v1297_v55 = vadd.f32 1.0, %v2583_v9  ;;  %v1694_v9 = vld [vmem:[%s3635_s5 + $0x48] sm:$0xff] }
 0x542   :  { %v1303_v40 = vadd.f32 1.0, %v2585_v24  ;;  %v2587_v54 = vpop.eup %2586  ;;  %v2448_v24 = vpack.c.bf16 %v1694_v9, %v1693_v23 }
 0x543   :  { %2590 = vrcp.f32 %v1297_v55  ;;  %v2589_v21 = vpop.eup %2588  ;;  %v1310_v49 = vadd.f32 1.0, %v2587_v54  ;;  %v1695_v55 = vld [vmem:[%s3635_s5 + $0x50] sm:$0xff] }
 0x544   :  { %2592 = vrcp.f32 %v1303_v40  ;;  %v1696_v40 = vld [vmem:[%s3635_s5 + $0x58] sm:$0xff] }
 0x545   :  { %2594 = vrcp.f32 %v1310_v49  ;;  %v2451_v54 = vpack.c.bf16 %v1696_v40, %v1695_v55  ;;  %v1700_v49 = vld [vmem:[%s3635_s5 + $0x78] sm:$0xff] }
 0x54d   :  { %v2591_v45 = vpop.eup %2590 }
 0x54e   :  { %v2593_v4 = vpop.eup %2592  ;;  %v1314_v2 = vmul.f32 %v2591_v45, %v2589_v21  ;;  %v1697_v21 = vld [vmem:[%s3635_s5 + $0x60] sm:$0xff]  ;;  %v1698_v45 = vld [vmem:[%s3635_s5 + $0x68] sm:$0xff] }
 0x54f   :  { %v1313_v59 = vmul.f32 %v2593_v4, %v3433_v5  ;;  %v2595_v60 = vpop.eup %2594  ;;  %v2454_v4 = vpack.c.bf16 %v1698_v45, %v1697_v21 }
 0x551   :  { %v3479_v38 = vadd.f32 %v1314_v2, %v1313_v59  ;;  %v1699_v2 = vld [vmem:[%s3635_s5 + $0x70] sm:$0xff] }
 0x552   :  { %v2457_v59 = vpack.c.bf16 %v1700_v49, %v1699_v2 }
 0x553   :  { %2596 = vtanh.f32 %v3479_v38 }
 0x55d   :  { %v2597_v37 = vpop.eup %2596 }
 0x55e   :  { %v3482_v58 = vmul.f32 %v2597_v37, %v2595_v60 }
 0x560   :  { %1392 = vmatmul.mubr.f32.vlgmr.msra.gmra.mrb[10].mxu0 %v3482_v58  ;;  %1463 = vmatmul.mubr.f32.vlgmr.msra.gmra.mrb[24].mxu1 %v3482_v58 }
 0x561   :  { %2374 = vmatpush1.bf16.msra.mxu0 %v2704_v13  ;;  %2406 = vmatpush1.bf16.msra.mxu1 %v3102_v62  ;;  %v2631_v13 = vmov 0.0|0.0  }
 0x562   :  { %2376 = vmatprep.subr.bf16.mxu0 %v2726_v22  ;;  %2408 = vmatprep.subr.bf16.mxu1 %v3105_v63 }
 0x563   :  { %1570 = vmatprep.mubr.f32.mxu0 %v3640_v50  ;;  %1641 = vmatprep.mubr.f32.mxu1 %v3640_v50 }
 0x565   :  { %2378 = vmatpush1.bf16.msra.mxu0 %v2737_v26  ;;  %2410 = vmatpush1.bf16.msra.mxu1 %v3123_v8 }
 0x566   :  { %2380 = vmatprep.subr.bf16.mxu0 %v2758_v35  ;;  %2412 = vmatprep.subr.bf16.mxu1 %v3127_v10 }
 0x569   :  { %2382 = vmatpush1.bf16.msra.mxu0 %v2770_v39  ;;  %2414 = vmatpush1.bf16.msra.mxu1 %v3143_v17 }
 0x56a   :  { %2384 = vmatprep.subr.bf16.mxu0 %v2782_v44  ;;  %2416 = vmatprep.subr.bf16.mxu1 %v3147_v18 }
 0x56d   :  { %2386 = vmatpush1.bf16.msra.mxu0 %v2803_v52  ;;  %2418 = vmatpush1.bf16.msra.mxu1 %v3163_v25 }
 0x56e   :  { %2388 = vmatprep.subr.bf16.mxu0 %v2815_v57  ;;  %2420 = vmatprep.subr.bf16.mxu1 %v3167_v27 }
 0x571   :  { %2390 = vmatpush1.bf16.msra.mxu0 %v2833_v0  ;;  %2422 = vmatpush1.bf16.msra.mxu1 %v3183_v32 }
 0x572   :  { %2392 = vmatprep.subr.bf16.mxu0 %v2845_v6  ;;  %2424 = vmatprep.subr.bf16.mxu1 %v3187_v36  ;;  %v1685_v36 = vld [vmem:[%s3635_s5] sm:$0xff] }
 0x575   :  { %2394 = vmatpush1.bf16.msra.mxu0 %v2863_v15  ;;  %2426 = vmatpush1.bf16.msra.mxu1 %v3203_v42  ;;  %v1686_v42 = vld [vmem:[%s3635_s5 + $0x8] sm:$0xff] }
 0x576   :  { %2396 = vmatprep.subr.bf16.mxu0 %v2875_v20  ;;  %2428 = vmatprep.subr.bf16.mxu1 %v3207_v43 }
 0x579   :  { %2398 = vmatpush1.bf16.msra.mxu0 %v2893_v29  ;;  %2430 = vmatpush1.bf16.msra.mxu1 %v3223_v51 }
 0x57a   :  { %2400 = vmatprep.subr.bf16.mxu0 %v2905_v34  ;;  %2432 = vmatprep.subr.bf16.mxu1 %v3227_v53  ;;  %v2436_v53 = vpack.c.bf16 %v1686_v42, %v1685_v36 }
 0x57d   :  { %2402 = vmatpush1.bf16.msra.mxu0 %v2917_v41  ;;  %2434 = vmatpush1.bf16.msra.mxu1 %v3237_v33 }
 0x57e   :  { %2435 = vmatprep.subr.bf16.mxu0 %v2631_v13 }
 0x633   :  { %v1393_v22 = vpop.f32.mrb[10].mxu0  ;;  %v1464_v26 = vpop.f32.mrb[24].mxu1 }
 0x634   :  { %v1469_v35 = vadd.f32 %v1393_v22, %v3280_v1  ;;  %v1395_v39 = vpop.f32.mrb[11].mxu0  ;;  %v1466_v44 = vpop.f32.mrb[25].mxu1  ;;  %v2497_v20 = vadd.f32 %v1464_v26, %v3288_v56  ;;  %v1687_v1 = vld [vmem:[%s3635_s5 + $0x10] sm:$0xff] }
 0x635   :  { %v1470_v52 = vadd.f32 %v1395_v39, %v3282_v11  ;;  %v2498_v6 = vadd.f32 %v1466_v44, %v3290_v7  ;;  %v1688_v11 = vld [vmem:[%s3635_s5 + $0x18] sm:$0xff] }
 0x636   :  { %v1840_v57 = vmul.f32 -1.442695, %v1469_v35  ;;  %v2439_v5 = vpack.c.bf16 %v1688_v11, %v1687_v1 }
 0x637   :  { %v1841_v0 = vmul.f32 -1.442695, %v1470_v52  ;;  %v1842_v15 = vmul.f32 -1.442695, %v2498_v6 }
 0x638   :  { %2598 = vpow2.f32 %v1840_v57 }
 0x639   :  { %2600 = vpow2.f32 %v1841_v0 }
 0x63a   :  { %2602 = vpow2.f32 %v1842_v15 }
 0x63b   :  { %2604 = vtanh.f32 %v2497_v20 }
 0x642   :  { %v2599_v29 = vpop.eup %2598 }
 0x643   :  { %v2601_v34 = vpop.eup %2600  ;;  %v1476_v41 = vadd.f32 1.0, %v2599_v29 }
 0x644   :  { %v1482_v62 = vadd.f32 1.0, %v2601_v34  ;;  %v2603_v63 = vpop.eup %2602 }
 0x645   :  { %2606 = vrcp.f32 %v1476_v41  ;;  %v2605_v8 = vpop.eup %2604  ;;  %v1489_v25 = vadd.f32 1.0, %v2603_v63 }
 0x646   :  { %2608 = vrcp.f32 %v1482_v62 }
 0x647   :  { %2610 = vrcp.f32 %v1489_v25 }
 0x64f   :  { %v2607_v10 = vpop.eup %2606 }
 0x650   :  { %v2609_v17 = vpop.eup %2608  ;;  %v1493_v18 = vmul.f32 %v2607_v10, %v2605_v8 }
 0x651   :  { %v1492_v27 = vmul.f32 %v2609_v17, %v3479_v38  ;;  %v2611_v43 = vpop.eup %2610 }
 0x653   :  { %v3524_v32 = vadd.f32 %v1493_v18, %v1492_v27 }
 0x655   :  { %2612 = vtanh.f32 %v3524_v32 }
 0x65f   :  { %v2613_v51 = vpop.eup %2612 }
 0x660   :  { %v1496_v33 = vmul.f32 %v2613_v51, %v2611_v43 }
 0x662   :  { %1571 = vmatmul.mubr.f32.vlgmr.msra.gmra.mrb[12].mxu0 %v1496_v33  ;;  %1642 = vmatmul.mubr.f32.vlgmr.msra.gmra.mrb[26].mxu1 %v1496_v33 }
 0x663   :  { %2437 = vmatpush3.bf16.msra.mxu0 %v2436_v53  ;;  %1902 = vmatprep.mubr.msk.f32.mxu0 %vm2632_vm0, %v3640_v50 }
 0x664   :  { %2438 = vmatprep.subr.bf16.mxu0 %v2631_v13 }
 0x667   :  { %2440 = vmatpush3.bf16.msra.mxu0 %v2439_v5 }
 0x668   :  { %2441 = vmatprep.subr.bf16.mxu0 %v2631_v13 }
 0x66b   :  { %2443 = vmatpush3.bf16.msra.mxu0 %v2442_v30 }
 0x66c   :  { %2444 = vmatprep.subr.bf16.mxu0 %v2631_v13 }
 0x66f   :  { %2446 = vmatpush3.bf16.msra.mxu0 %v2445_v46 }
 0x670   :  { %2447 = vmatprep.subr.bf16.mxu0 %v2631_v13 }
 0x673   :  { %2449 = vmatpush3.bf16.msra.mxu0 %v2448_v24 }
 0x674   :  { %2450 = vmatprep.subr.bf16.mxu0 %v2631_v13 }
 0x677   :  { %2452 = vmatpush3.bf16.msra.mxu0 %v2451_v54 }
 0x678   :  { %2453 = vmatprep.subr.bf16.mxu0 %v2631_v13 }
 0x67b   :  { %2455 = vmatpush3.bf16.msra.mxu0 %v2454_v4 }
 0x67c   :  { %2456 = vmatprep.subr.bf16.mxu0 %v2631_v13 }
 0x67f   :  { %2458 = vmatpush3.bf16.msra.mxu0 %v2457_v59 }
 0x682   :  { %1903 = vmatmul.mubr.f32.vlgmr.msra.gmra.mrb[14].mxu0 %v3298_v47 }
 0x683   :  { %1905 = vmatprep.mubr.msk.f32.mxu0 %vm2632_vm0, %v3640_v50 }
 0x686   :  { %1906 = vmatmul.mubr.f32.gmra.mrb[16].mxu0 %v3344_v16 }
 0x687   :  { %1908 = vmatprep.mubr.msk.f32.mxu0 %vm2632_vm0, %v3640_v50 }
 0x68a   :  { %1909 = vmatmul.mubr.f32.gmra.mrb[18].mxu0 %v3390_v28 }
 0x68b   :  { %1911 = vmatprep.mubr.msk.f32.mxu0 %vm2632_vm0, %v3640_v50 }
 0x68e   :  { %1912 = vmatmul.mubr.f32.gmra.mrb[20].mxu0 %v3436_v48 }
 0x68f   :  { %1914 = vmatprep.mubr.msk.f32.mxu0 %vm2632_vm0, %v3640_v50 }
 0x692   :  { %1915 = vmatmul.mubr.f32.gmra.mrb[22].mxu0 %v3482_v58 }
 0x693   :  { %1917 = vmatprep.mubr.msk.f32.mxu0 %vm2632_vm0, %v3640_v50 }
 0x696   :  { %1918 = vmatmul.mubr.f32.gmra.mrb[24].mxu0 %v1496_v33 }
 0x697   :  { %1920 = vmatprep.mubr.msk.f32.mxu0 %vm2632_vm0, %v3640_v50 }
 0x735   :  { %v1572_v47 = vpop.f32.mrb[12].mxu0  ;;  %v1643_v16 = vpop.f32.mrb[26].mxu1 }
 0x736   :  { %v1648_v28 = vadd.f32 %v1572_v47, %v3284_v12  ;;  %v1574_v38 = vpop.f32.mrb[13].mxu0  ;;  %v1645_v60 = vpop.f32.mrb[27].mxu1  ;;  %v2499_v26 = vadd.f32 %v1643_v16, %v3288_v56  ;;  %v1846_v56 = vld [vmem:[%s3636_s6] ss:$0 sm:$0xff] }
 0x737   :  { %v1649_v48 = vadd.f32 %v1574_v38, %v3286_v19  ;;  %v2500_v58 = vadd.f32 %v1645_v60, %v3290_v7 }
 0x738   :  { %v1843_v37 = vmul.f32 -1.442695, %v1648_v28 }
 0x739   :  { %v1844_v13 = vmul.f32 -1.442695, %v1649_v48  ;;  %v1845_v22 = vmul.f32 -1.442695, %v2500_v58 }
 0x73a   :  { %2614 = vpow2.f32 %v1843_v37 }
 0x73b   :  { %2616 = vpow2.f32 %v1844_v13 }
 0x73c   :  { %2618 = vpow2.f32 %v1845_v22 }
 0x73d   :  { %2620 = vtanh.f32 %v2499_v26 }
 0x744   :  { %v2615_v35 = vpop.eup %2614 }
 0x745   :  { %v2617_v39 = vpop.eup %2616  ;;  %v1655_v50 = vadd.f32 1.0, %v2615_v35 }
 0x746   :  { %v1661_v44 = vadd.f32 1.0, %v2617_v39  ;;  %v2619_v12 = vpop.eup %2618 }
 0x747   :  { %2622 = vrcp.f32 %v1655_v50  ;;  %v2621_v52 = vpop.eup %2620  ;;  %v1668_v6 = vadd.f32 1.0, %v2619_v12 }
 0x748   :  { %2624 = vrcp.f32 %v1661_v44 }
 0x749   :  { %2626 = vrcp.f32 %v1668_v6 }
 0x751   :  { %v2623_v19 = vpop.eup %2622 }
 0x752   :  { %v2625_v57 = vpop.eup %2624  ;;  %v1672_v0 = vmul.f32 %v2623_v19, %v2621_v52 }
 0x753   :  { %v1671_v15 = vmul.f32 %v2625_v57, %v3524_v32  ;;  %v2627_v18 = vpop.eup %2626 }
 0x755   :  { %v1774_v7 = vpop.f32.mrb[14].mxu0  ;;  %v1673_v20 = vadd.f32 %v1672_v0, %v1671_v15 }
 0x756   :  { %v1775_v29 = vadd.f32 %v1846_v56, %v1774_v7  ;;  %v1904_v34 = vpop.f32.mrb[15].mxu0 }
 0x757   :  { %2628 = vtanh.f32 %v1673_v20 }
 0x758   :  { %1808 = vst [vmem:[%s3637_s7] sm:$0xff] %v1775_v29 }
 0x759   :  { %v1779_v41 = vpop.f32.mrb[16].mxu0 }
 0x75a   :  { %v1780_v62 = vadd.f32 %v1846_v56, %v1779_v41  ;;  %v1907_v63 = vpop.f32.mrb[17].mxu0 }
 0x75c   :  { %1809 = vst [vmem:[%s3637_s7 + $0x8] sm:$0xff] %v1780_v62 }
 0x75d   :  { %v1784_v8 = vpop.f32.mrb[18].mxu0 }
 0x75e   :  { %v1785_v10 = vadd.f32 %v1846_v56, %v1784_v8  ;;  %v1910_v17 = vpop.f32.mrb[19].mxu0 }
 0x760   :  { %1810 = vst [vmem:[%s3637_s7 + $0x10] sm:$0xff] %v1785_v10 }
 0x761   :  { %v2629_v25 = vpop.eup %2628  ;;  %v1789_v27 = vpop.f32.mrb[20].mxu0 }
 0x762   :  { %v1790_v32 = vadd.f32 %v1846_v56, %v1789_v27  ;;  %v1913_v36 = vpop.f32.mrb[21].mxu0  ;;  %v1675_v42 = vmul.f32 %v2629_v25, %v2627_v18 }
 0x764   :  { %1811 = vst [vmem:[%s3637_s7 + $0x18] sm:$0xff] %v1790_v32  ;;  %1921 = vmatmul.mubr.f32.gmra.mrb[26].mxu0 %v1675_v42 }
 0x765   :  { %v1794_v43 = vpop.f32.mrb[22].mxu0 }
 0x766   :  { %v1795_v51 = vadd.f32 %v1846_v56, %v1794_v43  ;;  %v1916_v53 = vpop.f32.mrb[23].mxu0 }
 0x768   :  { %1812 = vst [vmem:[%s3637_s7 + $0x20] sm:$0xff] %v1795_v51 }
 0x769   :  { %v1799_v33 = vpop.f32.mrb[24].mxu0 }
 0x76a   :  { %v1800_v1 = vadd.f32 %v1846_v56, %v1799_v33  ;;  %v1919_v11 = vpop.f32.mrb[25].mxu0 }
 0x76c   :  { %1813 = vst [vmem:[%s3637_s7 + $0x28] sm:$0xff] %v1800_v1 }
 0x837   :  { %v1804_v5 = vpop.f32.mrb[26].mxu0 }
 0x838   :  { %v1805_v14 = vadd.f32 %v1846_v56, %v1804_v5  ;;  %v1922_v61 = vpop.f32.mrb[27].mxu0 }
 0x83a   :  { %1814 = vst [vmem:[%s3637_s7 + $0x30] sm:$0xff] %v1805_v14 }

</bundles_post_ra>
